<compile_context>
chip_gen: v7x
topology: tpu7x:2x2x1
jax: 0.10.0
libtpu: 0.0.40
codegen_flags: <defaults>
</compile_context>

<pallas_src>
import math
import functools

import jax
import jax.numpy as jnp
from jax.experimental import pallas as pl
from jax.experimental.pallas import tpu as pltpu


LN_EPS = 1e-5
NEG_INF = -1e30                 # finite mask sentinel; avoids exp(-inf - -inf) NaNs
VMEM_LIMIT = 32 * 1024 * 1024   # raise v5e scoped default (16 MiB); v6e/v7x default


# ------------------------------------------------------------------ helpers

def _layer_norm(x, g, b, eps):
    mean = jnp.mean(x, axis=-1, keepdims=True)
    var = jnp.mean(jnp.square(x - mean), axis=-1, keepdims=True)
    return (x - mean) * jax.lax.rsqrt(var + eps) * g + b


def _attend(q, k, v, bias, wo_ref, bo_ref, num_heads,
            exact_probs=False, probs_ref=None):
    """Multi-head attention core.

    q:(Sq,D) k,v:(Sk,D) f32.  Per-head scores/softmax/ctx; per-head contexts
    are concatenated head-contiguous along lanes and fed into ONE full-width
    (Sq,D)@(D,D) output-projection matmul (no per-head Wo matmuls / acc chain).
    """
    _, D = q.shape
    dk = D // num_heads
    scale = 1.0 / math.sqrt(dk)
    ctxs = []
    for h in range(num_heads):
        sl = slice(h * dk, (h + 1) * dk)
        qh = (q[:, sl] * scale).astype(jnp.bfloat16)
        kh = k[:, sl].astype(jnp.bfloat16)
        vh = v[:, sl].astype(jnp.bfloat16)
        s = jax.lax.dot_general(qh, kh, (((1,), (1,)), ((), ())),
                                preferred_element_type=jnp.float32) + bias
        m = jnp.max(s, axis=-1, keepdims=True)
        e = jnp.exp(s - m)
        den = jnp.sum(e, axis=-1, keepdims=True)
        if exact_probs:
            p = e / den                                    # user-visible probs
        else:
            p = e * pl.reciprocal(den, approx=True)        # EUP slot
        if probs_ref is not None:
            probs_ref[0, h] = p
        ctxs.append(jnp.dot(p.astype(jnp.bfloat16), vh,
                            preferred_element_type=jnp.float32))
    ctx = jnp.concatenate(ctxs, axis=-1)                   # (Sq, D) head-contig
    return jnp.dot(ctx.astype(jnp.bfloat16), wo_ref[...],
                   preferred_element_type=jnp.float32) + bo_ref[...]


# ------------------------------------------------------------------ kernels

def _encoder_layer_kernel(x_ref, kbias_ref,
                          sa_g_ref, sa_b_ref, wqkv_ref, bqkv_ref, wo_ref, bo_ref,
                          f_g_ref, f_b_ref, w1_ref, b1_ref, w2_ref, b2_ref,
                          o_ref, *, num_heads, eps):
    """Full encoder layer: LN -> self-MHA -> +res -> LN -> FFN -> +res."""
    x = x_ref[0].astype(jnp.float32)                       # (S, D)
    D = x.shape[-1]
    bias = kbias_ref[0]                                    # (1, S) key-pad bias

    xn = _layer_norm(x, sa_g_ref[...], sa_b_ref[...], eps)
    qkv = jnp.dot(xn.astype(jnp.bfloat16), wqkv_ref[...],
                  preferred_element_type=jnp.float32) + bqkv_ref[...]   # (S,3D)
    x = x + _attend(qkv[:, :D], qkv[:, D:2 * D], qkv[:, 2 * D:], bias,
                    wo_ref, bo_ref, num_heads)

    xn = _layer_norm(x, f_g_ref[...], f_b_ref[...], eps)
    h = jnp.maximum(jnp.dot(xn.astype(jnp.bfloat16), w1_ref[...],
                            preferred_element_type=jnp.float32) + b1_ref[...], 0.0)
    x = x + jnp.dot(h.astype(jnp.bfloat16), w2_ref[...],
                    preferred_element_type=jnp.float32) + b2_ref[...]
    o_ref[0] = x.astype(o_ref.dtype)


def _decoder_layer_kernel(x_ref, enc_ref, rowbias_ref, kbias_ref,
                          sa_g_ref, sa_b_ref, swqkv_ref, sbqkv_ref, swo_ref, sbo_ref,
                          ca_g_ref, ca_b_ref, cwq_ref, cbq_ref, cwkv_ref, cbkv_ref,
                          cwo_ref, cbo_ref,
                          f_g_ref, f_b_ref, w1_ref, b1_ref, w2_ref, b2_ref,
                          o_ref, w_ref, *, num_heads, eps):
    """Full decoder layer: self-MHA -> cross-MHA (emits probs) -> FFN."""
    x = x_ref[0].astype(jnp.float32)                       # (St, D)
    enc = enc_ref[0].astype(jnp.float32)                   # (Ss, D)
    St, D = x.shape

    # Self-attention: causal mask built in-kernel + per-query padding bias.
    qi = jax.lax.broadcasted_iota(jnp.int32, (St, St), 0)
    ki = jax.lax.broadcasted_iota(jnp.int32, (St, St), 1)
    self_bias = jnp.where(ki <= qi, 0.0, NEG_INF) + rowbias_ref[0]   # (St,St)

    xn = _layer_norm(x, sa_g_ref[...], sa_b_ref[...], eps)
    qkv = jnp.dot(xn.astype(jnp.bfloat16), swqkv_ref[...],
                  preferred_element_type=jnp.float32) + sbqkv_ref[...]
    x = x + _attend(qkv[:, :D], qkv[:, D:2 * D], qkv[:, 2 * D:], self_bias,
                    swo_ref, sbo_ref, num_heads)

    # Cross-attention: keys/values from the raw encoder output.
    cross_bias = kbias_ref[0]                              # (1, Ss)
    xn = _layer_norm(x, ca_g_ref[...], ca_b_ref[...], eps)
    q = jnp.dot(xn.astype(jnp.bfloat16), cwq_ref[...],
                preferred_element_type=jnp.float32) + cbq_ref[...]      # (St, D)
    kv = jnp.dot(enc.astype(jnp.bfloat16), cwkv_ref[...],
                 preferred_element_type=jnp.float32) + cbkv_ref[...]    # (Ss, 2D)
    x = x + _attend(q, kv[:, :D], kv[:, D:], cross_bias, cwo_ref, cbo_ref,
                    num_heads, exact_probs=True, probs_ref=w_ref)

    # Feed-forward.
    xn = _layer_norm(x, f_g_ref[...], f_b_ref[...], eps)
    h = jnp.maximum(jnp.dot(xn.astype(jnp.bfloat16), w1_ref[...],
                            preferred_element_type=jnp.float32) + b1_ref[...], 0.0)
    x = x + jnp.dot(h.astype(jnp.bfloat16), w2_ref[...],
                    preferred_element_type=jnp.float32) + b2_ref[...]
    o_ref[0] = x.astype(o_ref.dtype)


def _proj_kernel(x_ref, w_ref, b_ref, o_ref):
    o_ref[0] = (jnp.dot(x_ref[0], w_ref[...],
                        preferred_element_type=jnp.float32)
                + b_ref[...]).astype(o_ref.dtype)


# ------------------------------------------------------------- wrappers

def encoder_layer(x, src_kbias, p, num_heads):
    B, S, D = x.shape
    sa, ffn = p["sa"], p["ffn"]
    F = ffn["w1"].shape[1]
    H = num_heads
    flops = B * (2 * S * D * 3 * D + 4 * S * S * D + 2 * S * D * D + 4 * S * D * F)
    bytes_accessed = (2 * B * S * D * 2 + B * S * 4
                      + (D * 3 * D + D * D + D * F + F * D) * 2
                      + (3 * D + D + F + D + 4 * D) * 4)
    ce = pl.CostEstimate(flops=flops, transcendentals=B * H * S * S,
                         bytes_accessed=bytes_accessed)
    rep = lambda b: (0, 0)
    return pl.pallas_call(
        functools.partial(_encoder_layer_kernel, num_heads=num_heads, eps=LN_EPS),
        out_shape=jax.ShapeDtypeStruct((B, S, D), jnp.bfloat16),
        grid=(B,),
        in_specs=[
            pl.BlockSpec((1, S, D), lambda b: (b, 0, 0)),   # x (bf16)
            pl.BlockSpec((1, 1, S), lambda b: (b, 0, 0)),   # key-pad bias
            pl.BlockSpec((1, D), rep), pl.BlockSpec((1, D), rep),            # ln1
            pl.BlockSpec((D, 3 * D), rep), pl.BlockSpec((1, 3 * D), rep),    # Wqkv
            pl.BlockSpec((D, D), rep), pl.BlockSpec((1, D), rep),            # Wo
            pl.BlockSpec((1, D), rep), pl.BlockSpec((1, D), rep),            # ln2
            pl.BlockSpec((D, F), rep), pl.BlockSpec((1, F), rep),            # W1
            pl.BlockSpec((F, D), rep), pl.BlockSpec((1, D), rep),            # W2
        ],
        out_specs=pl.BlockSpec((1, S, D), lambda b: (b, 0, 0)),
        compiler_params=pltpu.CompilerParams(
            dimension_semantics=("parallel",), vmem_limit_bytes=VMEM_LIMIT),
        cost_estimate=ce,
    )(x, src_kbias,
      sa["ln_g"], sa["ln_b"], sa["wqkv"], sa["bqkv"], sa["wo"], sa["bo"],
      ffn["ln_g"], ffn["ln_b"], ffn["w1"], ffn["b1"], ffn["w2"], ffn["b2"])


def decoder_layer(x, enc, tgt_rowbias, src_kbias, p, num_heads):
    B, St, D = x.shape
    Ss = enc.shape[1]
    sa, ca, ffn = p["sa"], p["ca"], p["ffn"]
    F = ffn["w1"].shape[1]
    H = num_heads
    flops = B * (2 * St * D * 3 * D + 4 * St * St * D + 2 * St * D * D
                 + 2 * St * D * D + 4 * Ss * D * D + 4 * St * Ss * D + 2 * St * D * D
                 + 4 * St * D * F)
    bytes_accessed = (2 * B * St * D * 2 + B * Ss * D * 2 + B * H * St * Ss * 4
                      + B * (St + Ss) * 4
                      + (D * 3 * D + 3 * D * D + D * 2 * D + D * F + F * D) * 2
                      + (3 * D + 2 * D + 2 * D + F + 2 * D + 6 * D) * 4)
    ce = pl.CostEstimate(flops=flops,
                         transcendentals=B * H * (St * St + St * Ss),
                         bytes_accessed=bytes_accessed)
    rep = lambda b: (0, 0)
    out, attn_w = pl.pallas_call(
        functools.partial(_decoder_layer_kernel, num_heads=num_heads, eps=LN_EPS),
        out_shape=(jax.ShapeDtypeStruct((B, St, D), jnp.bfloat16),
                   jax.ShapeDtypeStruct((B, H, St, Ss), jnp.float32)),
        grid=(B,),
        in_specs=[
            pl.BlockSpec((1, St, D), lambda b: (b, 0, 0)),   # x (bf16)
            pl.BlockSpec((1, Ss, D), lambda b: (b, 0, 0)),   # encoder output
            pl.BlockSpec((1, St, 1), lambda b: (b, 0, 0)),   # tgt per-query bias
            pl.BlockSpec((1, 1, Ss), lambda b: (b, 0, 0)),   # src key-pad bias
            # self-attention params
            pl.BlockSpec((1, D), rep), pl.BlockSpec((1, D), rep),
            pl.BlockSpec((D, 3 * D), rep), pl.BlockSpec((1, 3 * D), rep),
            pl.BlockSpec((D, D), rep), pl.BlockSpec((1, D), rep),
            # cross-attention params
            pl.BlockSpec((1, D), rep), pl.BlockSpec((1, D), rep),
            pl.BlockSpec((D, D), rep), pl.BlockSpec((1, D), rep),
            pl.BlockSpec((D, 2 * D), rep), pl.BlockSpec((1, 2 * D), rep),
            pl.BlockSpec((D, D), rep), pl.BlockSpec((1, D), rep),
            # FFN params
            pl.BlockSpec((1, D), rep), pl.BlockSpec((1, D), rep),
            pl.BlockSpec((D, F), rep), pl.BlockSpec((1, F), rep),
            pl.BlockSpec((F, D), rep), pl.BlockSpec((1, D), rep),
        ],
        out_specs=(pl.BlockSpec((1, St, D), lambda b: (b, 0, 0)),
                   pl.BlockSpec((1, H, St, Ss), lambda b: (b, 0, 0, 0))),
        compiler_params=pltpu.CompilerParams(
            dimension_semantics=("parallel",), vmem_limit_bytes=VMEM_LIMIT),
        cost_estimate=ce,
    )(x, enc, tgt_rowbias, src_kbias,
      sa["ln_g"], sa["ln_b"], sa["wqkv"], sa["bqkv"], sa["wo"], sa["bo"],
      ca["ln_g"], ca["ln_b"], ca["wq"], ca["bq"], ca["wkv"], ca["bkv"],
      ca["wo"], ca["bo"],
      ffn["ln_g"], ffn["ln_b"], ffn["w1"], ffn["b1"], ffn["w2"], ffn["b2"])
    return out, attn_w


def output_projection(x, w, b):
    """logits = x @ w + b; w/b are pre-padded to a lane-aligned vocab."""
    B, S, D = x.shape
    Vp = w.shape[1]
    tn = 512 if Vp % 512 == 0 else (256 if Vp % 256 == 0 else 128)
    tn = min(tn, Vp)
    ts = 256 if S % 256 == 0 else (128 if S % 128 == 0 else S)
    ce = pl.CostEstimate(flops=2 * B * S * D * Vp, transcendentals=0,
                         bytes_accessed=B * S * D * 2 + D * Vp * 2 + Vp * 4
                         + B * S * Vp * 4)
    # TODO(synk): add a K-tiled reduction axis ("arbitrary" + f32 accumulator)
    # once D no longer fits as a single block at realistic model sizes.
    return pl.pallas_call(
        _proj_kernel,
        out_shape=jax.ShapeDtypeStruct((B, S, Vp), jnp.float32),
        grid=(B, S // ts, Vp // tn),
        in_specs=[
            pl.BlockSpec((1, ts, D), lambda bi, i, j: (bi, i, 0)),
            pl.BlockSpec((D, tn), lambda bi, i, j: (0, j)),
            pl.BlockSpec((1, tn), lambda bi, i, j: (0, j)),
        ],
        out_specs=pl.BlockSpec((1, ts, tn), lambda bi, i, j: (bi, i, j)),
        compiler_params=pltpu.CompilerParams(
            dimension_semantics=("parallel", "parallel", "parallel"),
            vmem_limit_bytes=VMEM_LIMIT),
        cost_estimate=ce,
    )(x, w, b)


# ------------------------------------------------------------- model pieces

def positional_encoding_table(d_model, max_len):
    position = jnp.arange(max_len, dtype=jnp.float32)[:, None]
    div_term = jnp.exp(jnp.arange(0, d_model, 2, dtype=jnp.float32)
                       * (-math.log(10000.0) / d_model))
    pe = jnp.zeros((max_len, d_model), dtype=jnp.float32)
    pe = pe.at[:, 0::2].set(jnp.sin(position * div_term))
    pe = pe.at[:, 1::2].set(jnp.cos(position * div_term))
    return pe[:, None, :]                              # (max_len, 1, d_model)


def build_mask_biases(src, tgt):
    """Tiny per-key / per-query additive biases; full (S,S) masks are built
    in-kernel (no O(B*S^2) HBM traffic)."""
    src_kbias = jnp.where(src != 0, 0.0, NEG_INF).astype(jnp.float32)[:, None, :]
    tgt_rowbias = jnp.where(tgt != 0, 0.0, NEG_INF).astype(jnp.float32)[:, :, None]
    return src_kbias, tgt_rowbias                      # (B,1,Ss), (B,St,1)


def transformer_forward(params, src, tgt, cfg):
    D = cfg["d_model"]
    H = cfg["num_heads"]
    B = src.shape[0]
    src_kbias, tgt_rowbias = build_mask_biases(src, tgt)

    # Embedding gather + scale + positional encoding (plain-JAX glue).
    # NB: the reference PositionalEncoding adds pe[:x.size(0)] on a batch-first
    # tensor, i.e. indexes by batch; that quirk is reproduced here.
    scale = math.sqrt(D)
    src_emb = (params["enc_emb"][src] * scale + params["pe"][:B]).astype(jnp.bfloat16)
    tgt_emb = (params["dec_emb"][tgt] * scale + params["pe"][:B]).astype(jnp.bfloat16)

    enc = src_emb
    for lp in params["encoder_layers"]:
        enc = encoder_layer(enc, src_kbias, lp, H)

    dec = tgt_emb
    attentions = []
    for lp in params["decoder_layers"]:
        dec, attn_w = decoder_layer(dec, enc, tgt_rowbias, src_kbias, lp, H)
        attentions.append(attn_w)

    logits = output_projection(dec, params["w_out"], params["b_out"])
    logits = logits[:, :, :cfg["tgt_vocab_size"]]      # drop lane padding
    return logits, attentions


# ----------------------------------------------------------------- init

def _round_up(n, m):
    return ((n + m - 1) // m) * m


def _init_linear(key, din, dout):
    k1, k2 = jax.random.split(key)
    bound = 1.0 / math.sqrt(din)
    w = jax.random.uniform(k1, (din, dout), jnp.float32, -bound, bound)
    b = jax.random.uniform(k2, (dout,), jnp.float32, -bound, bound)
    return w, b


def _ln_params(d):
    return jnp.ones((1, d), jnp.float32), jnp.zeros((1, d), jnp.float32)


def _init_self_attn(key, d_model):
    ks = jax.random.split(key, 4)
    wq, bq = _init_linear(ks[0], d_model, d_model)
    wk, bk = _init_linear(ks[1], d_model, d_model)
    wv, bv = _init_linear(ks[2], d_model, d_model)
    wo, bo = _init_linear(ks[3], d_model, d_model)
    g, b = _ln_params(d_model)
    return dict(
        ln_g=g, ln_b=b,
        wqkv=jnp.concatenate([wq, wk, wv], axis=1).astype(jnp.bfloat16),
        bqkv=jnp.concatenate([bq, bk, bv])[None, :],
        wo=wo.astype(jnp.bfloat16), bo=bo[None, :])


def _init_cross_attn(key, d_model):
    ks = jax.random.split(key, 4)
    wq, bq = _init_linear(ks[0], d_model, d_model)
    wk, bk = _init_linear(ks[1], d_model, d_model)
    wv, bv = _init_linear(ks[2], d_model, d_model)
    wo, bo = _init_linear(ks[3], d_model, d_model)
    g, b = _ln_params(d_model)
    return dict(
        ln_g=g, ln_b=b,
        wq=wq.astype(jnp.bfloat16), bq=bq[None, :],
        wkv=jnp.concatenate([wk, wv], axis=1).astype(jnp.bfloat16),
        bkv=jnp.concatenate([bk, bv])[None, :],
        wo=wo.astype(jnp.bfloat16), bo=bo[None, :])


def _init_ffn(key, d_model, d_ff):
    k1, k2 = jax.random.split(key)
    w1, b1 = _init_linear(k1, d_model, d_ff)
    w2, b2 = _init_linear(k2, d_ff, d_model)
    g, b = _ln_params(d_model)
    return dict(ln_g=g, ln_b=b,
                w1=w1.astype(jnp.bfloat16), b1=b1[None, :],
                w2=w2.astype(jnp.bfloat16), b2=b2[None, :])


def init_transformer(key, cfg):
    D, H, L, F = cfg["d_model"], cfg["num_heads"], cfg["num_layers"], cfg["d_ff"]
    assert D % H == 0
    keys = jax.random.split(key, 3 + 2 * L)
    params = {
        "enc_emb": jax.random.normal(keys[0], (cfg["src_vocab_size"], D), jnp.float32),
        "dec_emb": jax.random.normal(keys[1], (cfg["tgt_vocab_size"], D), jnp.float32),
        "pe": positional_encoding_table(D, cfg["max_seq_length"]),
        "encoder_layers": [],
        "decoder_layers": [],
    }
    for i in range(L):
        k1, k2 = jax.random.split(keys[2 + i])
        params["encoder_layers"].append(dict(sa=_init_self_attn(k1, D),
                                             ffn=_init_ffn(k2, D, F)))
    for i in range(L):
        k1, k2, k3 = jax.random.split(keys[2 + L + i], 3)
        params["decoder_layers"].append(dict(sa=_init_self_attn(k1, D),
                                             ca=_init_cross_attn(k2, D),
                                             ffn=_init_ffn(k3, D, F)))
    V = cfg["tgt_vocab_size"]
    Vp = _round_up(V, 128) if V <= 128 else _round_up(V, 256)
    w_out, b_out = _init_linear(keys[2 + 2 * L], D, V)
    w_pad = jnp.zeros((D, Vp), jnp.float32).at[:, :V].set(w_out)
    b_pad = jnp.zeros((Vp,), jnp.float32).at[:V].set(b_out)
    params["w_out"] = w_pad.astype(jnp.bfloat16)
    params["b_out"] = b_pad[None, :]
    return params


# ----------------------------------------------------------------- main

if __name__ == "__main__":
    cfg = dict(
        src_vocab_size=16,
        tgt_vocab_size=16,
        d_model=32,
        num_heads=4,
        num_layers=2,
        d_ff=64,
        max_seq_length=16,
        dropout=0.1,        # eval-mode identity
    )
    B, S_src, S_tgt = 2, 8, 8

    root = jax.random.PRNGKey(0)
    k_params, k_src, k_tgt = jax.random.split(root, 3)
    params = init_transformer(k_params, cfg)

    # token ids in [1, vocab) so there are no fully-padded rows
    src = jax.random.randint(k_src, (B, S_src), 1, cfg["src_vocab_size"], jnp.int32)
    tgt = jax.random.randint(k_tgt, (B, S_tgt), 1, cfg["tgt_vocab_size"], jnp.int32)

    fwd = jax.jit(functools.partial(transformer_forward, cfg=cfg))
    logits, attentions = fwd(params, src, tgt)
    jax.block_until_ready(logits)
    for a in attentions:
        jax.block_until_ready(a)

    assert logits.shape == (B, S_tgt, cfg["tgt_vocab_size"])
    assert len(attentions) == cfg["num_layers"]
    assert attentions[0].shape == (B, cfg["num_heads"], S_tgt, S_src)
    assert bool(jnp.all(jnp.isfinite(logits)))
    # cross-attention probabilities (exact reciprocal path) sum to ~1 per row
    row_sums = jnp.sum(attentions[0], axis=-1)
    assert bool(jnp.all(jnp.abs(row_sums - 1.0) < 1e-3))
    print("KERNEL_OK")
</pallas_src>

<mosaic_0001>
module attributes {stable_mosaic.version = 11 : i64} {
  func.func @_proj_kernel(%arg0: i32, %arg1: i32, %arg2: i32, %arg3: memref<1x8x32xbf16, #tpu.memory_space<vmem>>, %arg4: memref<32x128xbf16, #tpu.memory_space<vmem>>, %arg5: memref<1x128xf32, #tpu.memory_space<vmem>>, %arg6: memref<1x8x128xf32, #tpu.memory_space<vmem>>) attributes {dimension_semantics = [#tpu.dimension_semantics<parallel>, #tpu.dimension_semantics<parallel>, #tpu.dimension_semantics<parallel>], iteration_bounds = array<i64: 2, 1, 1>, scalar_prefetch = 0 : i64, scratch_operands = 0 : i64, tpu.core_type = #tpu.core_type<tc>, window_params = [{transform_indices = @transform_0, window_bounds = array<i64: 1, 8, 32>}, {transform_indices = @transform_1, window_bounds = array<i64: 32, 128>}, {transform_indices = @transform_2, window_bounds = array<i64: 1, 128>}, {transform_indices = @transform_3, window_bounds = array<i64: 1, 8, 128>}]} {
    %c0 = arith.constant 0 : index
    %c0_0 = arith.constant 0 : index
    %c0_1 = arith.constant 0 : index
    %0 = vector.load %arg3[%c0, %c0_0, %c0_1] : memref<1x8x32xbf16, #tpu.memory_space<vmem>>, vector<1x8x32xbf16>
    %1 = vector.shape_cast %0 : vector<1x8x32xbf16> to vector<8x32xbf16>
    %c0_2 = arith.constant 0 : index
    %c0_3 = arith.constant 0 : index
    %2 = vector.load %arg4[%c0_2, %c0_3] : memref<32x128xbf16, #tpu.memory_space<vmem>>, vector<32x128xbf16>
    %cst = arith.constant dense<0.000000e+00> : vector<8x128xf32>
    %3 = tpu.matmul %1, %2, %cst {dimension_numbers = #tpu.dot_dimension_numbers<[1], [0], [0], [1], [0, 0, 1, 1], [], []>} : vector<8x32xbf16>, vector<32x128xbf16>, vector<8x128xf32> -> vector<8x128xf32>
    %c0_4 = arith.constant 0 : index
    %c0_5 = arith.constant 0 : index
    %4 = vector.load %arg5[%c0_4, %c0_5] : memref<1x128xf32, #tpu.memory_space<vmem>>, vector<1x128xf32>
    %5 = vector.broadcast %4 : vector<1x128xf32> to vector<8x128xf32>
    %6 = arith.addf %3, %5 : vector<8x128xf32>
    %c0_6 = arith.constant 0 : index
    %c0_7 = arith.constant 0 : index
    %c0_8 = arith.constant 0 : index
    %7 = vector.load %arg6[%c0_6, %c0_7, %c0_8] : memref<1x8x128xf32, #tpu.memory_space<vmem>>, vector<1x8x128xf32>
    %8 = vector.shape_cast %7 : vector<1x8x128xf32> to vector<8x128xf32>
    %9 = vector.shape_cast %6 : vector<8x128xf32> to vector<1x8x128xf32>
    tpu.vector_store %arg6[%c0_6, %c0_7, %c0_8], %9 {strides = array<i32>} : memref<1x8x128xf32, #tpu.memory_space<vmem>>, vector<1x8x128xf32>,
    return
  }
  func.func @transform_0(%arg0: i32, %arg1: i32, %arg2: i32) -> (i32, i32, i32) {
    %c0_i32 = arith.constant 0 : i32
    %c0_i32_0 = arith.constant 0 : i32
    return %arg0, %arg1, %c0_i32 : i32, i32, i32
  }
  func.func @transform_1(%arg0: i32, %arg1: i32, %arg2: i32) -> (i32, i32) {
    %c0_i32 = arith.constant 0 : i32
    %c0_i32_0 = arith.constant 0 : i32
    return %c0_i32, %arg2 : i32, i32
  }
  func.func @transform_2(%arg0: i32, %arg1: i32, %arg2: i32) -> (i32, i32) {
    %c0_i32 = arith.constant 0 : i32
    %c0_i32_0 = arith.constant 0 : i32
    return %c0_i32, %arg2 : i32, i32
  }
  func.func @transform_3(%arg0: i32, %arg1: i32, %arg2: i32) -> (i32, i32, i32) {
    %c0_i32 = arith.constant 0 : i32
    return %arg0, %arg1, %arg2 : i32, i32, i32
  }
}

module attributes {stable_mosaic.version = 11 : i64} {
  func.func @_encoder_layer_kernel(%arg0: i32, %arg1: memref<1x8x32xbf16, #tpu.memory_space<vmem>>, %arg2: memref<1x1x8xf32, #tpu.memory_space<vmem>>, %arg3: memref<1x32xf32, #tpu.memory_space<vmem>>, %arg4: memref<1x32xf32, #tpu.memory_space<vmem>>, %arg5: memref<32x96xbf16, #tpu.memory_space<vmem>>, %arg6: memref<1x96xf32, #tpu.memory_space<vmem>>, %arg7: memref<32x32xbf16, #tpu.memory_space<vmem>>, %arg8: memref<1x32xf32, #tpu.memory_space<vmem>>, %arg9: memref<1x32xf32, #tpu.memory_space<vmem>>, %arg10: memref<1x32xf32, #tpu.memory_space<vmem>>, %arg11: memref<32x64xbf16, #tpu.memory_space<vmem>>, %arg12: memref<1x64xf32, #tpu.memory_space<vmem>>, %arg13: memref<64x32xbf16, #tpu.memory_space<vmem>>, %arg14: memref<1x32xf32, #tpu.memory_space<vmem>>, %arg15: memref<1x8x32xbf16, #tpu.memory_space<vmem>>) attributes {dimension_semantics = [#tpu.dimension_semantics<parallel>], iteration_bounds = array<i64: 2>, scalar_prefetch = 0 : i64, scratch_operands = 0 : i64, tpu.core_type = #tpu.core_type<tc>, window_params = [{transform_indices = @transform_0, window_bounds = array<i64: 1, 8, 32>}, {transform_indices = @transform_1, window_bounds = array<i64: 1, 1, 8>}, {pipeline_mode = #tpu.pipeline_mode<synchronous>, transform_indices = @transform_2, window_bounds = array<i64: 1, 32>}, {pipeline_mode = #tpu.pipeline_mode<synchronous>, transform_indices = @transform_3, window_bounds = array<i64: 1, 32>}, {pipeline_mode = #tpu.pipeline_mode<synchronous>, transform_indices = @transform_4, window_bounds = array<i64: 32, 96>}, {pipeline_mode = #tpu.pipeline_mode<synchronous>, transform_indices = @transform_5, window_bounds = array<i64: 1, 96>}, {pipeline_mode = #tpu.pipeline_mode<synchronous>, transform_indices = @transform_6, window_bounds = array<i64: 32, 32>}, {pipeline_mode = #tpu.pipeline_mode<synchronous>, transform_indices = @transform_7, window_bounds = array<i64: 1, 32>}, {pipeline_mode = #tpu.pipeline_mode<synchronous>, transform_indices = @transform_8, window_bounds = array<i64: 1, 32>}, {pipeline_mode = #tpu.pipeline_mode<synchronous>, transform_indices = @transform_9, window_bounds = array<i64: 1, 32>}, {pipeline_mode = #tpu.pipeline_mode<synchronous>, transform_indices = @transform_10, window_bounds = array<i64: 32, 64>}, {pipeline_mode = #tpu.pipeline_mode<synchronous>, transform_indices = @transform_11, window_bounds = array<i64: 1, 64>}, {pipeline_mode = #tpu.pipeline_mode<synchronous>, transform_indices = @transform_12, window_bounds = array<i64: 64, 32>}, {pipeline_mode = #tpu.pipeline_mode<synchronous>, transform_indices = @transform_13, window_bounds = array<i64: 1, 32>}, {transform_indices = @transform_14, window_bounds = array<i64: 1, 8, 32>}]} {
    %c0 = arith.constant 0 : index
    %c0_0 = arith.constant 0 : index
    %c0_1 = arith.constant 0 : index
    %0 = vector.load %arg1[%c0, %c0_0, %c0_1] : memref<1x8x32xbf16, #tpu.memory_space<vmem>>, vector<1x8x32xbf16>
    %1 = vector.shape_cast %0 : vector<1x8x32xbf16> to vector<8x32xbf16>
    %2 = arith.extf %1 : vector<8x32xbf16> to vector<8x32xf32>
    %c0_2 = arith.constant 0 : index
    %c0_3 = arith.constant 0 : index
    %c0_4 = arith.constant 0 : index
    %3 = vector.load %arg2[%c0_2, %c0_3, %c0_4] : memref<1x1x8xf32, #tpu.memory_space<vmem>>, vector<1x1x8xf32>
    %4 = vector.shape_cast %3 : vector<1x1x8xf32> to vector<1x8xf32>
    %c0_5 = arith.constant 0 : index
    %c0_6 = arith.constant 0 : index
    %5 = vector.load %arg3[%c0_5, %c0_6] : memref<1x32xf32, #tpu.memory_space<vmem>>, vector<1x32xf32>
    %c0_7 = arith.constant 0 : index
    %c0_8 = arith.constant 0 : index
    %6 = vector.load %arg4[%c0_7, %c0_8] : memref<1x32xf32, #tpu.memory_space<vmem>>, vector<1x32xf32>
    %cst = arith.constant dense<0.000000e+00> : vector<8xf32>
    %7 = vector.multi_reduction <add>, %2, %cst [1] : vector<8x32xf32> to vector<8xf32>
    %8 = vector.shape_cast %7 : vector<8xf32> to vector<8x1xf32>
    %cst_9 = arith.constant 3.200000e+01 : f32
    %9 = vector.broadcast %cst_9 : f32 to vector<8x1xf32>
    %10 = arith.divf %8, %9 : vector<8x1xf32>
    %11 = vector.broadcast %10 : vector<8x1xf32> to vector<8x32xf32>
    %12 = arith.subf %2, %11 : vector<8x32xf32>
    %13 = arith.mulf %12, %12 : vector<8x32xf32>
    %cst_10 = arith.constant dense<0.000000e+00> : vector<8xf32>
    %14 = vector.multi_reduction <add>, %13, %cst_10 [1] : vector<8x32xf32> to vector<8xf32>
    %15 = vector.shape_cast %14 : vector<8xf32> to vector<8x1xf32>
    %cst_11 = arith.constant 3.200000e+01 : f32
    %16 = vector.broadcast %cst_11 : f32 to vector<8x1xf32>
    %17 = arith.divf %15, %16 : vector<8x1xf32>
    %18 = vector.broadcast %10 : vector<8x1xf32> to vector<8x32xf32>
    %19 = arith.subf %2, %18 : vector<8x32xf32>
    %cst_12 = arith.constant 9.99999974E-6 : f32
    %20 = vector.broadcast %cst_12 : f32 to vector<8x1xf32>
    %21 = arith.addf %17, %20 : vector<8x1xf32>
    %22 = math.rsqrt %21 : vector<8x1xf32>
    %23 = vector.broadcast %22 : vector<8x1xf32> to vector<8x32xf32>
    %24 = arith.mulf %19, %23 : vector<8x32xf32>
    %25 = vector.broadcast %5 : vector<1x32xf32> to vector<8x32xf32>
    %26 = arith.mulf %24, %25 : vector<8x32xf32>
    %27 = vector.broadcast %6 : vector<1x32xf32> to vector<8x32xf32>
    %28 = arith.addf %26, %27 : vector<8x32xf32>
    %29 = arith.truncf %28 : vector<8x32xf32> to vector<8x32xbf16>
    %c0_13 = arith.constant 0 : index
    %c0_14 = arith.constant 0 : index
    %30 = vector.load %arg5[%c0_13, %c0_14] : memref<32x96xbf16, #tpu.memory_space<vmem>>, vector<32x96xbf16>
    %cst_15 = arith.constant dense<0.000000e+00> : vector<8x96xf32>
    %31 = tpu.matmul %29, %30, %cst_15 {dimension_numbers = #tpu.dot_dimension_numbers<[1], [0], [0], [1], [0, 0, 1, 1], [], []>} : vector<8x32xbf16>, vector<32x96xbf16>, vector<8x96xf32> -> vector<8x96xf32>
    %c0_16 = arith.constant 0 : index
    %c0_17 = arith.constant 0 : index
    %32 = vector.load %arg6[%c0_16, %c0_17] : memref<1x96xf32, #tpu.memory_space<vmem>>, vector<1x96xf32>
    %33 = vector.broadcast %32 : vector<1x96xf32> to vector<8x96xf32>
    %34 = arith.addf %31, %33 : vector<8x96xf32>
    %35 = vector.extract_strided_slice %34 {offsets = [0, 0], sizes = [8, 32], strides = [1, 1]} : vector<8x96xf32> to vector<8x32xf32>
    %36 = vector.extract_strided_slice %34 {offsets = [0, 32], sizes = [8, 32], strides = [1, 1]} : vector<8x96xf32> to vector<8x32xf32>
    %37 = vector.extract_strided_slice %34 {offsets = [0, 64], sizes = [8, 32], strides = [1, 1]} : vector<8x96xf32> to vector<8x32xf32>
    %38 = vector.extract_strided_slice %35 {offsets = [0, 0], sizes = [8, 8], strides = [1, 1]} : vector<8x32xf32> to vector<8x8xf32>
    %cst_18 = arith.constant 0.353553385 : f32
    %39 = vector.broadcast %cst_18 : f32 to vector<8x8xf32>
    %40 = arith.mulf %38, %39 : vector<8x8xf32>
    %41 = arith.truncf %40 : vector<8x8xf32> to vector<8x8xbf16>
    %42 = vector.extract_strided_slice %36 {offsets = [0, 0], sizes = [8, 8], strides = [1, 1]} : vector<8x32xf32> to vector<8x8xf32>
    %43 = arith.truncf %42 : vector<8x8xf32> to vector<8x8xbf16>
    %44 = vector.extract_strided_slice %37 {offsets = [0, 0], sizes = [8, 8], strides = [1, 1]} : vector<8x32xf32> to vector<8x8xf32>
    %45 = arith.truncf %44 : vector<8x8xf32> to vector<8x8xbf16>
    %cst_19 = arith.constant dense<0.000000e+00> : vector<8x8xf32>
    %46 = tpu.matmul %41, %43, %cst_19 {dimension_numbers = #tpu.dot_dimension_numbers<[1], [1], [0], [0], [0, 0, 1, 0], [], []>} : vector<8x8xbf16>, vector<8x8xbf16>, vector<8x8xf32> -> vector<8x8xf32>
    %47 = vector.broadcast %4 : vector<1x8xf32> to vector<8x8xf32>
    %48 = arith.addf %46, %47 : vector<8x8xf32>
    %cst_20 = arith.constant dense<0xFF800000> : vector<8xf32>
    %49 = vector.multi_reduction <maximumf>, %48, %cst_20 [1] : vector<8x8xf32> to vector<8xf32>
    %50 = vector.shape_cast %49 : vector<8xf32> to vector<8x1xf32>
    %51 = vector.broadcast %50 : vector<8x1xf32> to vector<8x8xf32>
    %52 = arith.subf %48, %51 : vector<8x8xf32>
    %53 = math.exp %52 : vector<8x8xf32>
    %cst_21 = arith.constant dense<0.000000e+00> : vector<8xf32>
    %54 = vector.multi_reduction <add>, %53, %cst_21 [1] : vector<8x8xf32> to vector<8xf32>
    %55 = vector.shape_cast %54 : vector<8xf32> to vector<8x1xf32>
    %56 = tpu.reciprocal %55 {approx = true} : vector<8x1xf32> -> vector<8x1xf32>
    %57 = vector.broadcast %56 : vector<8x1xf32> to vector<8x8xf32>
    %58 = arith.mulf %53, %57 : vector<8x8xf32>
    %59 = arith.truncf %58 : vector<8x8xf32> to vector<8x8xbf16>
    %cst_22 = arith.constant dense<0.000000e+00> : vector<8x8xf32>
    %60 = tpu.matmul %59, %45, %cst_22 {dimension_numbers = #tpu.dot_dimension_numbers<[1], [0], [0], [1], [0, 0, 1, 1], [], []>} : vector<8x8xbf16>, vector<8x8xbf16>, vector<8x8xf32> -> vector<8x8xf32>
    %61 = vector.extract_strided_slice %35 {offsets = [0, 8], sizes = [8, 8], strides = [1, 1]} : vector<8x32xf32> to vector<8x8xf32>
    %cst_23 = arith.constant 0.353553385 : f32
    %62 = vector.broadcast %cst_23 : f32 to vector<8x8xf32>
    %63 = arith.mulf %61, %62 : vector<8x8xf32>
    %64 = arith.truncf %63 : vector<8x8xf32> to vector<8x8xbf16>
    %65 = vector.extract_strided_slice %36 {offsets = [0, 8], sizes = [8, 8], strides = [1, 1]} : vector<8x32xf32> to vector<8x8xf32>
    %66 = arith.truncf %65 : vector<8x8xf32> to vector<8x8xbf16>
    %67 = vector.extract_strided_slice %37 {offsets = [0, 8], sizes = [8, 8], strides = [1, 1]} : vector<8x32xf32> to vector<8x8xf32>
    %68 = arith.truncf %67 : vector<8x8xf32> to vector<8x8xbf16>
    %cst_24 = arith.constant dense<0.000000e+00> : vector<8x8xf32>
    %69 = tpu.matmul %64, %66, %cst_24 {dimension_numbers = #tpu.dot_dimension_numbers<[1], [1], [0], [0], [0, 0, 1, 0], [], []>} : vector<8x8xbf16>, vector<8x8xbf16>, vector<8x8xf32> -> vector<8x8xf32>
    %70 = vector.broadcast %4 : vector<1x8xf32> to vector<8x8xf32>
    %71 = arith.addf %69, %70 : vector<8x8xf32>
    %cst_25 = arith.constant dense<0xFF800000> : vector<8xf32>
    %72 = vector.multi_reduction <maximumf>, %71, %cst_25 [1] : vector<8x8xf32> to vector<8xf32>
    %73 = vector.shape_cast %72 : vector<8xf32> to vector<8x1xf32>
    %74 = vector.broadcast %73 : vector<8x1xf32> to vector<8x8xf32>
    %75 = arith.subf %71, %74 : vector<8x8xf32>
    %76 = math.exp %75 : vector<8x8xf32>
    %cst_26 = arith.constant dense<0.000000e+00> : vector<8xf32>
    %77 = vector.multi_reduction <add>, %76, %cst_26 [1] : vector<8x8xf32> to vector<8xf32>
    %78 = vector.shape_cast %77 : vector<8xf32> to vector<8x1xf32>
    %79 = tpu.reciprocal %78 {approx = true} : vector<8x1xf32> -> vector<8x1xf32>
    %80 = vector.broadcast %79 : vector<8x1xf32> to vector<8x8xf32>
    %81 = arith.mulf %76, %80 : vector<8x8xf32>
    %82 = arith.truncf %81 : vector<8x8xf32> to vector<8x8xbf16>
    %cst_27 = arith.constant dense<0.000000e+00> : vector<8x8xf32>
    %83 = tpu.matmul %82, %68, %cst_27 {dimension_numbers = #tpu.dot_dimension_numbers<[1], [0], [0], [1], [0, 0, 1, 1], [], []>} : vector<8x8xbf16>, vector<8x8xbf16>, vector<8x8xf32> -> vector<8x8xf32>
    %84 = vector.extract_strided_slice %35 {offsets = [0, 16], sizes = [8, 8], strides = [1, 1]} : vector<8x32xf32> to vector<8x8xf32>
    %cst_28 = arith.constant 0.353553385 : f32
    %85 = vector.broadcast %cst_28 : f32 to vector<8x8xf32>
    %86 = arith.mulf %84, %85 : vector<8x8xf32>
    %87 = arith.truncf %86 : vector<8x8xf32> to vector<8x8xbf16>
    %88 = vector.extract_strided_slice %36 {offsets = [0, 16], sizes = [8, 8], strides = [1, 1]} : vector<8x32xf32> to vector<8x8xf32>
    %89 = arith.truncf %88 : vector<8x8xf32> to vector<8x8xbf16>
    %90 = vector.extract_strided_slice %37 {offsets = [0, 16], sizes = [8, 8], strides = [1, 1]} : vector<8x32xf32> to vector<8x8xf32>
    %91 = arith.truncf %90 : vector<8x8xf32> to vector<8x8xbf16>
    %cst_29 = arith.constant dense<0.000000e+00> : vector<8x8xf32>
    %92 = tpu.matmul %87, %89, %cst_29 {dimension_numbers = #tpu.dot_dimension_numbers<[1], [1], [0], [0], [0, 0, 1, 0], [], []>} : vector<8x8xbf16>, vector<8x8xbf16>, vector<8x8xf32> -> vector<8x8xf32>
    %93 = vector.broadcast %4 : vector<1x8xf32> to vector<8x8xf32>
    %94 = arith.addf %92, %93 : vector<8x8xf32>
    %cst_30 = arith.constant dense<0xFF800000> : vector<8xf32>
    %95 = vector.multi_reduction <maximumf>, %94, %cst_30 [1] : vector<8x8xf32> to vector<8xf32>
    %96 = vector.shape_cast %95 : vector<8xf32> to vector<8x1xf32>
    %97 = vector.broadcast %96 : vector<8x1xf32> to vector<8x8xf32>
    %98 = arith.subf %94, %97 : vector<8x8xf32>
    %99 = math.exp %98 : vector<8x8xf32>
    %cst_31 = arith.constant dense<0.000000e+00> : vector<8xf32>
    %100 = vector.multi_reduction <add>, %99, %cst_31 [1] : vector<8x8xf32> to vector<8xf32>
    %101 = vector.shape_cast %100 : vector<8xf32> to vector<8x1xf32>
    %102 = tpu.reciprocal %101 {approx = true} : vector<8x1xf32> -> vector<8x1xf32>
    %103 = vector.broadcast %102 : vector<8x1xf32> to vector<8x8xf32>
    %104 = arith.mulf %99, %103 : vector<8x8xf32>
    %105 = arith.truncf %104 : vector<8x8xf32> to vector<8x8xbf16>
    %cst_32 = arith.constant dense<0.000000e+00> : vector<8x8xf32>
    %106 = tpu.matmul %105, %91, %cst_32 {dimension_numbers = #tpu.dot_dimension_numbers<[1], [0], [0], [1], [0, 0, 1, 1], [], []>} : vector<8x8xbf16>, vector<8x8xbf16>, vector<8x8xf32> -> vector<8x8xf32>
    %107 = vector.extract_strided_slice %35 {offsets = [0, 24], sizes = [8, 8], strides = [1, 1]} : vector<8x32xf32> to vector<8x8xf32>
    %cst_33 = arith.constant 0.353553385 : f32
    %108 = vector.broadcast %cst_33 : f32 to vector<8x8xf32>
    %109 = arith.mulf %107, %108 : vector<8x8xf32>
    %110 = arith.truncf %109 : vector<8x8xf32> to vector<8x8xbf16>
    %111 = vector.extract_strided_slice %36 {offsets = [0, 24], sizes = [8, 8], strides = [1, 1]} : vector<8x32xf32> to vector<8x8xf32>
    %112 = arith.truncf %111 : vector<8x8xf32> to vector<8x8xbf16>
    %113 = vector.extract_strided_slice %37 {offsets = [0, 24], sizes = [8, 8], strides = [1, 1]} : vector<8x32xf32> to vector<8x8xf32>
    %114 = arith.truncf %113 : vector<8x8xf32> to vector<8x8xbf16>
    %cst_34 = arith.constant dense<0.000000e+00> : vector<8x8xf32>
    %115 = tpu.matmul %110, %112, %cst_34 {dimension_numbers = #tpu.dot_dimension_numbers<[1], [1], [0], [0], [0, 0, 1, 0], [], []>} : vector<8x8xbf16>, vector<8x8xbf16>, vector<8x8xf32> -> vector<8x8xf32>
    %116 = vector.broadcast %4 : vector<1x8xf32> to vector<8x8xf32>
    %117 = arith.addf %115, %116 : vector<8x8xf32>
    %cst_35 = arith.constant dense<0xFF800000> : vector<8xf32>
    %118 = vector.multi_reduction <maximumf>, %117, %cst_35 [1] : vector<8x8xf32> to vector<8xf32>
    %119 = vector.shape_cast %118 : vector<8xf32> to vector<8x1xf32>
    %120 = vector.broadcast %119 : vector<8x1xf32> to vector<8x8xf32>
    %121 = arith.subf %117, %120 : vector<8x8xf32>
    %122 = math.exp %121 : vector<8x8xf32>
    %cst_36 = arith.constant dense<0.000000e+00> : vector<8xf32>
    %123 = vector.multi_reduction <add>, %122, %cst_36 [1] : vector<8x8xf32> to vector<8xf32>
    %124 = vector.shape_cast %123 : vector<8xf32> to vector<8x1xf32>
    %125 = tpu.reciprocal %124 {approx = true} : vector<8x1xf32> -> vector<8x1xf32>
    %126 = vector.broadcast %125 : vector<8x1xf32> to vector<8x8xf32>
    %127 = arith.mulf %122, %126 : vector<8x8xf32>
    %128 = arith.truncf %127 : vector<8x8xf32> to vector<8x8xbf16>
    %cst_37 = arith.constant dense<0.000000e+00> : vector<8x8xf32>
    %129 = tpu.matmul %128, %114, %cst_37 {dimension_numbers = #tpu.dot_dimension_numbers<[1], [0], [0], [1], [0, 0, 1, 1], [], []>} : vector<8x8xbf16>, vector<8x8xbf16>, vector<8x8xf32> -> vector<8x8xf32>
    %130 = tpu.concatenate %60, %83, %106, %129 in 1 : vector<8x8xf32>, vector<8x8xf32>, vector<8x8xf32>, vector<8x8xf32> -> vector<8x32xf32>
    %131 = arith.truncf %130 : vector<8x32xf32> to vector<8x32xbf16>
    %c0_38 = arith.constant 0 : index
    %c0_39 = arith.constant 0 : index
    %132 = vector.load %arg7[%c0_38, %c0_39] : memref<32x32xbf16, #tpu.memory_space<vmem>>, vector<32x32xbf16>
    %cst_40 = arith.constant dense<0.000000e+00> : vector<8x32xf32>
    %133 = tpu.matmul %131, %132, %cst_40 {dimension_numbers = #tpu.dot_dimension_numbers<[1], [0], [0], [1], [0, 0, 1, 1], [], []>} : vector<8x32xbf16>, vector<32x32xbf16>, vector<8x32xf32> -> vector<8x32xf32>
    %c0_41 = arith.constant 0 : index
    %c0_42 = arith.constant 0 : index
    %134 = vector.load %arg8[%c0_41, %c0_42] : memref<1x32xf32, #tpu.memory_space<vmem>>, vector<1x32xf32>
    %135 = vector.broadcast %134 : vector<1x32xf32> to vector<8x32xf32>
    %136 = arith.addf %133, %135 : vector<8x32xf32>
    %137 = arith.addf %2, %136 : vector<8x32xf32>
    %c0_43 = arith.constant 0 : index
    %c0_44 = arith.constant 0 : index
    %138 = vector.load %arg9[%c0_43, %c0_44] : memref<1x32xf32, #tpu.memory_space<vmem>>, vector<1x32xf32>
    %c0_45 = arith.constant 0 : index
    %c0_46 = arith.constant 0 : index
    %139 = vector.load %arg10[%c0_45, %c0_46] : memref<1x32xf32, #tpu.memory_space<vmem>>, vector<1x32xf32>
    %cst_47 = arith.constant dense<0.000000e+00> : vector<8xf32>
    %140 = vector.multi_reduction <add>, %137, %cst_47 [1] : vector<8x32xf32> to vector<8xf32>
    %141 = vector.shape_cast %140 : vector<8xf32> to vector<8x1xf32>
    %cst_48 = arith.constant 3.200000e+01 : f32
    %142 = vector.broadcast %cst_48 : f32 to vector<8x1xf32>
    %143 = arith.divf %141, %142 : vector<8x1xf32>
    %144 = vector.broadcast %143 : vector<8x1xf32> to vector<8x32xf32>
    %145 = arith.subf %137, %144 : vector<8x32xf32>
    %146 = arith.mulf %145, %145 : vector<8x32xf32>
    %cst_49 = arith.constant dense<0.000000e+00> : vector<8xf32>
    %147 = vector.multi_reduction <add>, %146, %cst_49 [1] : vector<8x32xf32> to vector<8xf32>
    %148 = vector.shape_cast %147 : vector<8xf32> to vector<8x1xf32>
    %cst_50 = arith.constant 3.200000e+01 : f32
    %149 = vector.broadcast %cst_50 : f32 to vector<8x1xf32>
    %150 = arith.divf %148, %149 : vector<8x1xf32>
    %151 = vector.broadcast %143 : vector<8x1xf32> to vector<8x32xf32>
    %152 = arith.subf %137, %151 : vector<8x32xf32>
    %cst_51 = arith.constant 9.99999974E-6 : f32
    %153 = vector.broadcast %cst_51 : f32 to vector<8x1xf32>
    %154 = arith.addf %150, %153 : vector<8x1xf32>
    %155 = math.rsqrt %154 : vector<8x1xf32>
    %156 = vector.broadcast %155 : vector<8x1xf32> to vector<8x32xf32>
    %157 = arith.mulf %152, %156 : vector<8x32xf32>
    %158 = vector.broadcast %138 : vector<1x32xf32> to vector<8x32xf32>
    %159 = arith.mulf %157, %158 : vector<8x32xf32>
    %160 = vector.broadcast %139 : vector<1x32xf32> to vector<8x32xf32>
    %161 = arith.addf %159, %160 : vector<8x32xf32>
    %162 = arith.truncf %161 : vector<8x32xf32> to vector<8x32xbf16>
    %c0_52 = arith.constant 0 : index
    %c0_53 = arith.constant 0 : index
    %163 = vector.load %arg11[%c0_52, %c0_53] : memref<32x64xbf16, #tpu.memory_space<vmem>>, vector<32x64xbf16>
    %cst_54 = arith.constant dense<0.000000e+00> : vector<8x64xf32>
    %164 = tpu.matmul %162, %163, %cst_54 {dimension_numbers = #tpu.dot_dimension_numbers<[1], [0], [0], [1], [0, 0, 1, 1], [], []>} : vector<8x32xbf16>, vector<32x64xbf16>, vector<8x64xf32> -> vector<8x64xf32>
    %c0_55 = arith.constant 0 : index
    %c0_56 = arith.constant 0 : index
    %165 = vector.load %arg12[%c0_55, %c0_56] : memref<1x64xf32, #tpu.memory_space<vmem>>, vector<1x64xf32>
    %166 = vector.broadcast %165 : vector<1x64xf32> to vector<8x64xf32>
    %167 = arith.addf %164, %166 : vector<8x64xf32>
    %cst_57 = arith.constant 0.000000e+00 : f32
    %168 = vector.broadcast %cst_57 : f32 to vector<8x64xf32>
    %169 = arith.maximumf %167, %168 : vector<8x64xf32>
    %170 = arith.truncf %169 : vector<8x64xf32> to vector<8x64xbf16>
    %c0_58 = arith.constant 0 : index
    %c0_59 = arith.constant 0 : index
    %171 = vector.load %arg13[%c0_58, %c0_59] : memref<64x32xbf16, #tpu.memory_space<vmem>>, vector<64x32xbf16>
    %cst_60 = arith.constant dense<0.000000e+00> : vector<8x32xf32>
    %172 = tpu.matmul %170, %171, %cst_60 {dimension_numbers = #tpu.dot_dimension_numbers<[1], [0], [0], [1], [0, 0, 1, 1], [], []>} : vector<8x64xbf16>, vector<64x32xbf16>, vector<8x32xf32> -> vector<8x32xf32>
    %173 = arith.addf %137, %172 : vector<8x32xf32>
    %c0_61 = arith.constant 0 : index
    %c0_62 = arith.constant 0 : index
    %174 = vector.load %arg14[%c0_61, %c0_62] : memref<1x32xf32, #tpu.memory_space<vmem>>, vector<1x32xf32>
    %175 = vector.broadcast %174 : vector<1x32xf32> to vector<8x32xf32>
    %176 = arith.addf %173, %175 : vector<8x32xf32>
    %177 = arith.truncf %176 : vector<8x32xf32> to vector<8x32xbf16>
    %c0_63 = arith.constant 0 : index
    %c0_64 = arith.constant 0 : index
    %c0_65 = arith.constant 0 : index
    %178 = vector.load %arg15[%c0_63, %c0_64, %c0_65] : memref<1x8x32xbf16, #tpu.memory_space<vmem>>, vector<1x8x32xbf16>
    %179 = vector.shape_cast %178 : vector<1x8x32xbf16> to vector<8x32xbf16>
    %180 = vector.shape_cast %177 : vector<8x32xbf16> to vector<1x8x32xbf16>
    tpu.vector_store %arg15[%c0_63, %c0_64, %c0_65], %180 {strides = array<i32>} : memref<1x8x32xbf16, #tpu.memory_space<vmem>>, vector<1x8x32xbf16>,
    return
  }
  func.func @transform_0(%arg0: i32) -> (i32, i32, i32) {
    %c0_i32 = arith.constant 0 : i32
    %c0_i32_0 = arith.constant 0 : i32
    %c0_i32_1 = arith.constant 0 : i32
    return %arg0, %c0_i32, %c0_i32_0 : i32, i32, i32
  }
  func.func @transform_1(%arg0: i32) -> (i32, i32, i32) {
    %c0_i32 = arith.constant 0 : i32
    %c0_i32_0 = arith.constant 0 : i32
    %c0_i32_1 = arith.constant 0 : i32
    return %arg0, %c0_i32, %c0_i32_0 : i32, i32, i32
  }
  func.func @transform_2(%arg0: i32) -> (i32, i32) {
    %c0_i32 = arith.constant 0 : i32
    %c0_i32_0 = arith.constant 0 : i32
    %c0_i32_1 = arith.constant 0 : i32
    return %c0_i32, %c0_i32_0 : i32, i32
  }
  func.func @transform_3(%arg0: i32) -> (i32, i32) {
    %c0_i32 = arith.constant 0 : i32
    %c0_i32_0 = arith.constant 0 : i32
    %c0_i32_1 = arith.constant 0 : i32
    return %c0_i32, %c0_i32_0 : i32, i32
  }
  func.func @transform_4(%arg0: i32) -> (i32, i32) {
    %c0_i32 = arith.constant 0 : i32
    %c0_i32_0 = arith.constant 0 : i32
    %c0_i32_1 = arith.constant 0 : i32
    return %c0_i32, %c0_i32_0 : i32, i32
  }
  func.func @transform_5(%arg0: i32) -> (i32, i32) {
    %c0_i32 = arith.constant 0 : i32
    %c0_i32_0 = arith.constant 0 : i32
    %c0_i32_1 = arith.constant 0 : i32
    return %c0_i32, %c0_i32_0 : i32, i32
  }
  func.func @transform_6(%arg0: i32) -> (i32, i32) {
    %c0_i32 = arith.constant 0 : i32
    %c0_i32_0 = arith.constant 0 : i32
    %c0_i32_1 = arith.constant 0 : i32
    return %c0_i32, %c0_i32_0 : i32, i32
  }
  func.func @transform_7(%arg0: i32) -> (i32, i32) {
    %c0_i32 = arith.constant 0 : i32
    %c0_i32_0 = arith.constant 0 : i32
    %c0_i32_1 = arith.constant 0 : i32
    return %c0_i32, %c0_i32_0 : i32, i32
  }
  func.func @transform_8(%arg0: i32) -> (i32, i32) {
    %c0_i32 = arith.constant 0 : i32
    %c0_i32_0 = arith.constant 0 : i32
    %c0_i32_1 = arith.constant 0 : i32
    return %c0_i32, %c0_i32_0 : i32, i32
  }
  func.func @transform_9(%arg0: i32) -> (i32, i32) {
    %c0_i32 = arith.constant 0 : i32
    %c0_i32_0 = arith.constant 0 : i32
    %c0_i32_1 = arith.constant 0 : i32
    return %c0_i32, %c0_i32_0 : i32, i32
  }
  func.func @transform_10(%arg0: i32) -> (i32, i32) {
    %c0_i32 = arith.constant 0 : i32
    %c0_i32_0 = arith.constant 0 : i32
    %c0_i32_1 = arith.constant 0 : i32
    return %c0_i32, %c0_i32_0 : i32, i32
  }
  func.func @transform_11(%arg0: i32) -> (i32, i32) {
    %c0_i32 = arith.constant 0 : i32
    %c0_i32_0 = arith.constant 0 : i32
    %c0_i32_1 = arith.constant 0 : i32
    return %c0_i32, %c0_i32_0 : i32, i32
  }
  func.func @transform_12(%arg0: i32) -> (i32, i32) {
    %c0_i32 = arith.constant 0 : i32
    %c0_i32_0 = arith.constant 0 : i32
    %c0_i32_1 = arith.constant 0 : i32
    return %c0_i32, %c0_i32_0 : i32, i32
  }
  func.func @transform_13(%arg0: i32) -> (i32, i32) {
    %c0_i32 = arith.constant 0 : i32
    %c0_i32_0 = arith.constant 0 : i32
    %c0_i32_1 = arith.constant 0 : i32
    return %c0_i32, %c0_i32_0 : i32, i32
  }
  func.func @transform_14(%arg0: i32) -> (i32, i32, i32) {
    %c0_i32 = arith.constant 0 : i32
    %c0_i32_0 = arith.constant 0 : i32
    %c0_i32_1 = arith.constant 0 : i32
    return %arg0, %c0_i32, %c0_i32_0 : i32, i32, i32
  }
}

module attributes {stable_mosaic.version = 11 : i64} {
  func.func @_decoder_layer_kernel(%arg0: i32, %arg1: memref<1x8x32xbf16, #tpu.memory_space<vmem>>, %arg2: memref<1x8x32xbf16, #tpu.memory_space<vmem>>, %arg3: memref<1x8x1xf32, #tpu.memory_space<vmem>>, %arg4: memref<1x1x8xf32, #tpu.memory_space<vmem>>, %arg5: memref<1x32xf32, #tpu.memory_space<vmem>>, %arg6: memref<1x32xf32, #tpu.memory_space<vmem>>, %arg7: memref<32x96xbf16, #tpu.memory_space<vmem>>, %arg8: memref<1x96xf32, #tpu.memory_space<vmem>>, %arg9: memref<32x32xbf16, #tpu.memory_space<vmem>>, %arg10: memref<1x32xf32, #tpu.memory_space<vmem>>, %arg11: memref<1x32xf32, #tpu.memory_space<vmem>>, %arg12: memref<1x32xf32, #tpu.memory_space<vmem>>, %arg13: memref<32x32xbf16, #tpu.memory_space<vmem>>, %arg14: memref<1x32xf32, #tpu.memory_space<vmem>>, %arg15: memref<32x64xbf16, #tpu.memory_space<vmem>>, %arg16: memref<1x64xf32, #tpu.memory_space<vmem>>, %arg17: memref<32x32xbf16, #tpu.memory_space<vmem>>, %arg18: memref<1x32xf32, #tpu.memory_space<vmem>>, %arg19: memref<1x32xf32, #tpu.memory_space<vmem>>, %arg20: memref<1x32xf32, #tpu.memory_space<vmem>>, %arg21: memref<32x64xbf16, #tpu.memory_space<vmem>>, %arg22: memref<1x64xf32, #tpu.memory_space<vmem>>, %arg23: memref<64x32xbf16, #tpu.memory_space<vmem>>, %arg24: memref<1x32xf32, #tpu.memory_space<vmem>>, %arg25: memref<1x8x32xbf16, #tpu.memory_space<vmem>>, %arg26: memref<1x4x8x8xf32, #tpu.memory_space<vmem>>) attributes {dimension_semantics = [#tpu.dimension_semantics<parallel>], iteration_bounds = array<i64: 2>, scalar_prefetch = 0 : i64, scratch_operands = 0 : i64, tpu.core_type = #tpu.core_type<tc>, window_params = [{transform_indices = @transform_0, window_bounds = array<i64: 1, 8, 32>}, {transform_indices = @transform_1, window_bounds = array<i64: 1, 8, 32>}, {transform_indices = @transform_2, window_bounds = array<i64: 1, 8, 1>}, {transform_indices = @transform_3, window_bounds = array<i64: 1, 1, 8>}, {pipeline_mode = #tpu.pipeline_mode<synchronous>, transform_indices = @transform_4, window_bounds = array<i64: 1, 32>}, {pipeline_mode = #tpu.pipeline_mode<synchronous>, transform_indices = @transform_5, window_bounds = array<i64: 1, 32>}, {pipeline_mode = #tpu.pipeline_mode<synchronous>, transform_indices = @transform_6, window_bounds = array<i64: 32, 96>}, {pipeline_mode = #tpu.pipeline_mode<synchronous>, transform_indices = @transform_7, window_bounds = array<i64: 1, 96>}, {pipeline_mode = #tpu.pipeline_mode<synchronous>, transform_indices = @transform_8, window_bounds = array<i64: 32, 32>}, {pipeline_mode = #tpu.pipeline_mode<synchronous>, transform_indices = @transform_9, window_bounds = array<i64: 1, 32>}, {pipeline_mode = #tpu.pipeline_mode<synchronous>, transform_indices = @transform_10, window_bounds = array<i64: 1, 32>}, {pipeline_mode = #tpu.pipeline_mode<synchronous>, transform_indices = @transform_11, window_bounds = array<i64: 1, 32>}, {pipeline_mode = #tpu.pipeline_mode<synchronous>, transform_indices = @transform_12, window_bounds = array<i64: 32, 32>}, {pipeline_mode = #tpu.pipeline_mode<synchronous>, transform_indices = @transform_13, window_bounds = array<i64: 1, 32>}, {pipeline_mode = #tpu.pipeline_mode<synchronous>, transform_indices = @transform_14, window_bounds = array<i64: 32, 64>}, {pipeline_mode = #tpu.pipeline_mode<synchronous>, transform_indices = @transform_15, window_bounds = array<i64: 1, 64>}, {pipeline_mode = #tpu.pipeline_mode<synchronous>, transform_indices = @transform_16, window_bounds = array<i64: 32, 32>}, {pipeline_mode = #tpu.pipeline_mode<synchronous>, transform_indices = @transform_17, window_bounds = array<i64: 1, 32>}, {pipeline_mode = #tpu.pipeline_mode<synchronous>, transform_indices = @transform_18, window_bounds = array<i64: 1, 32>}, {pipeline_mode = #tpu.pipeline_mode<synchronous>, transform_indices = @transform_19, window_bounds = array<i64: 1, 32>}, {pipeline_mode = #tpu.pipeline_mode<synchronous>, transform_indices = @transform_20, window_bounds = array<i64: 32, 64>}, {pipeline_mode = #tpu.pipeline_mode<synchronous>, transform_indices = @transform_21, window_bounds = array<i64: 1, 64>}, {pipeline_mode = #tpu.pipeline_mode<synchronous>, transform_indices = @transform_22, window_bounds = array<i64: 64, 32>}, {pipeline_mode = #tpu.pipeline_mode<synchronous>, transform_indices = @transform_23, window_bounds = array<i64: 1, 32>}, {transform_indices = @transform_24, window_bounds = array<i64: 1, 8, 32>}, {transform_indices = @transform_25, window_bounds = array<i64: 1, 4, 8, 8>}]} {
    %c0 = arith.constant 0 : index
    %c0_0 = arith.constant 0 : index
    %c0_1 = arith.constant 0 : index
    %0 = vector.load %arg1[%c0, %c0_0, %c0_1] : memref<1x8x32xbf16, #tpu.memory_space<vmem>>, vector<1x8x32xbf16>
    %1 = vector.shape_cast %0 : vector<1x8x32xbf16> to vector<8x32xbf16>
    %2 = arith.extf %1 : vector<8x32xbf16> to vector<8x32xf32>
    %c0_2 = arith.constant 0 : index
    %c0_3 = arith.constant 0 : index
    %c0_4 = arith.constant 0 : index
    %3 = vector.load %arg2[%c0_2, %c0_3, %c0_4] : memref<1x8x32xbf16, #tpu.memory_space<vmem>>, vector<1x8x32xbf16>
    %4 = vector.shape_cast %3 : vector<1x8x32xbf16> to vector<8x32xbf16>
    %5 = arith.extf %4 : vector<8x32xbf16> to vector<8x32xf32>
    %6 = tpu.iota {dimensions = array<i32: 0>} : vector<8x8xi32>
    %7 = tpu.iota {dimensions = array<i32: 1>} : vector<8x8xi32>
    %8 = arith.cmpi sle, %7, %6 : vector<8x8xi32>
    %cst = arith.constant 0.000000e+00 : f32
    %cst_5 = arith.constant -1.000000e+30 : f32
    %9 = vector.broadcast %cst : f32 to vector<8x8xf32>
    %10 = vector.broadcast %cst_5 : f32 to vector<8x8xf32>
    %11 = arith.select %8, %9, %10 : vector<8x8xi1>, vector<8x8xf32>
    %c0_6 = arith.constant 0 : index
    %c0_7 = arith.constant 0 : index
    %c0_8 = arith.constant 0 : index
    %12 = vector.load %arg3[%c0_6, %c0_7, %c0_8] : memref<1x8x1xf32, #tpu.memory_space<vmem>>, vector<1x8x1xf32>
    %13 = vector.shape_cast %12 : vector<1x8x1xf32> to vector<8x1xf32>
    %14 = vector.broadcast %13 : vector<8x1xf32> to vector<8x8xf32>
    %15 = arith.addf %11, %14 : vector<8x8xf32>
    %c0_9 = arith.constant 0 : index
    %c0_10 = arith.constant 0 : index
    %16 = vector.load %arg5[%c0_9, %c0_10] : memref<1x32xf32, #tpu.memory_space<vmem>>, vector<1x32xf32>
    %c0_11 = arith.constant 0 : index
    %c0_12 = arith.constant 0 : index
    %17 = vector.load %arg6[%c0_11, %c0_12] : memref<1x32xf32, #tpu.memory_space<vmem>>, vector<1x32xf32>
    %cst_13 = arith.constant dense<0.000000e+00> : vector<8xf32>
    %18 = vector.multi_reduction <add>, %2, %cst_13 [1] : vector<8x32xf32> to vector<8xf32>
    %19 = vector.shape_cast %18 : vector<8xf32> to vector<8x1xf32>
    %cst_14 = arith.constant 3.200000e+01 : f32
    %20 = vector.broadcast %cst_14 : f32 to vector<8x1xf32>
    %21 = arith.divf %19, %20 : vector<8x1xf32>
    %22 = vector.broadcast %21 : vector<8x1xf32> to vector<8x32xf32>
    %23 = arith.subf %2, %22 : vector<8x32xf32>
    %24 = arith.mulf %23, %23 : vector<8x32xf32>
    %cst_15 = arith.constant dense<0.000000e+00> : vector<8xf32>
    %25 = vector.multi_reduction <add>, %24, %cst_15 [1] : vector<8x32xf32> to vector<8xf32>
    %26 = vector.shape_cast %25 : vector<8xf32> to vector<8x1xf32>
    %cst_16 = arith.constant 3.200000e+01 : f32
    %27 = vector.broadcast %cst_16 : f32 to vector<8x1xf32>
    %28 = arith.divf %26, %27 : vector<8x1xf32>
    %29 = vector.broadcast %21 : vector<8x1xf32> to vector<8x32xf32>
    %30 = arith.subf %2, %29 : vector<8x32xf32>
    %cst_17 = arith.constant 9.99999974E-6 : f32
    %31 = vector.broadcast %cst_17 : f32 to vector<8x1xf32>
    %32 = arith.addf %28, %31 : vector<8x1xf32>
    %33 = math.rsqrt %32 : vector<8x1xf32>
    %34 = vector.broadcast %33 : vector<8x1xf32> to vector<8x32xf32>
    %35 = arith.mulf %30, %34 : vector<8x32xf32>
    %36 = vector.broadcast %16 : vector<1x32xf32> to vector<8x32xf32>
    %37 = arith.mulf %35, %36 : vector<8x32xf32>
    %38 = vector.broadcast %17 : vector<1x32xf32> to vector<8x32xf32>
    %39 = arith.addf %37, %38 : vector<8x32xf32>
    %40 = arith.truncf %39 : vector<8x32xf32> to vector<8x32xbf16>
    %c0_18 = arith.constant 0 : index
    %c0_19 = arith.constant 0 : index
    %41 = vector.load %arg7[%c0_18, %c0_19] : memref<32x96xbf16, #tpu.memory_space<vmem>>, vector<32x96xbf16>
    %cst_20 = arith.constant dense<0.000000e+00> : vector<8x96xf32>
    %42 = tpu.matmul %40, %41, %cst_20 {dimension_numbers = #tpu.dot_dimension_numbers<[1], [0], [0], [1], [0, 0, 1, 1], [], []>} : vector<8x32xbf16>, vector<32x96xbf16>, vector<8x96xf32> -> vector<8x96xf32>
    %c0_21 = arith.constant 0 : index
    %c0_22 = arith.constant 0 : index
    %43 = vector.load %arg8[%c0_21, %c0_22] : memref<1x96xf32, #tpu.memory_space<vmem>>, vector<1x96xf32>
    %44 = vector.broadcast %43 : vector<1x96xf32> to vector<8x96xf32>
    %45 = arith.addf %42, %44 : vector<8x96xf32>
    %46 = vector.extract_strided_slice %45 {offsets = [0, 0], sizes = [8, 32], strides = [1, 1]} : vector<8x96xf32> to vector<8x32xf32>
    %47 = vector.extract_strided_slice %45 {offsets = [0, 32], sizes = [8, 32], strides = [1, 1]} : vector<8x96xf32> to vector<8x32xf32>
    %48 = vector.extract_strided_slice %45 {offsets = [0, 64], sizes = [8, 32], strides = [1, 1]} : vector<8x96xf32> to vector<8x32xf32>
    %49 = vector.extract_strided_slice %46 {offsets = [0, 0], sizes = [8, 8], strides = [1, 1]} : vector<8x32xf32> to vector<8x8xf32>
    %cst_23 = arith.constant 0.353553385 : f32
    %50 = vector.broadcast %cst_23 : f32 to vector<8x8xf32>
    %51 = arith.mulf %49, %50 : vector<8x8xf32>
    %52 = arith.truncf %51 : vector<8x8xf32> to vector<8x8xbf16>
    %53 = vector.extract_strided_slice %47 {offsets = [0, 0], sizes = [8, 8], strides = [1, 1]} : vector<8x32xf32> to vector<8x8xf32>
    %54 = arith.truncf %53 : vector<8x8xf32> to vector<8x8xbf16>
    %55 = vector.extract_strided_slice %48 {offsets = [0, 0], sizes = [8, 8], strides = [1, 1]} : vector<8x32xf32> to vector<8x8xf32>
    %56 = arith.truncf %55 : vector<8x8xf32> to vector<8x8xbf16>
    %cst_24 = arith.constant dense<0.000000e+00> : vector<8x8xf32>
    %57 = tpu.matmul %52, %54, %cst_24 {dimension_numbers = #tpu.dot_dimension_numbers<[1], [1], [0], [0], [0, 0, 1, 0], [], []>} : vector<8x8xbf16>, vector<8x8xbf16>, vector<8x8xf32> -> vector<8x8xf32>
    %58 = arith.addf %57, %15 : vector<8x8xf32>
    %cst_25 = arith.constant dense<0xFF800000> : vector<8xf32>
    %59 = vector.multi_reduction <maximumf>, %58, %cst_25 [1] : vector<8x8xf32> to vector<8xf32>
    %60 = vector.shape_cast %59 : vector<8xf32> to vector<8x1xf32>
    %61 = vector.broadcast %60 : vector<8x1xf32> to vector<8x8xf32>
    %62 = arith.subf %58, %61 : vector<8x8xf32>
    %63 = math.exp %62 : vector<8x8xf32>
    %cst_26 = arith.constant dense<0.000000e+00> : vector<8xf32>
    %64 = vector.multi_reduction <add>, %63, %cst_26 [1] : vector<8x8xf32> to vector<8xf32>
    %65 = vector.shape_cast %64 : vector<8xf32> to vector<8x1xf32>
    %66 = tpu.reciprocal %65 {approx = true} : vector<8x1xf32> -> vector<8x1xf32>
    %67 = vector.broadcast %66 : vector<8x1xf32> to vector<8x8xf32>
    %68 = arith.mulf %63, %67 : vector<8x8xf32>
    %69 = arith.truncf %68 : vector<8x8xf32> to vector<8x8xbf16>
    %cst_27 = arith.constant dense<0.000000e+00> : vector<8x8xf32>
    %70 = tpu.matmul %69, %56, %cst_27 {dimension_numbers = #tpu.dot_dimension_numbers<[1], [0], [0], [1], [0, 0, 1, 1], [], []>} : vector<8x8xbf16>, vector<8x8xbf16>, vector<8x8xf32> -> vector<8x8xf32>
    %71 = vector.extract_strided_slice %46 {offsets = [0, 8], sizes = [8, 8], strides = [1, 1]} : vector<8x32xf32> to vector<8x8xf32>
    %cst_28 = arith.constant 0.353553385 : f32
    %72 = vector.broadcast %cst_28 : f32 to vector<8x8xf32>
    %73 = arith.mulf %71, %72 : vector<8x8xf32>
    %74 = arith.truncf %73 : vector<8x8xf32> to vector<8x8xbf16>
    %75 = vector.extract_strided_slice %47 {offsets = [0, 8], sizes = [8, 8], strides = [1, 1]} : vector<8x32xf32> to vector<8x8xf32>
    %76 = arith.truncf %75 : vector<8x8xf32> to vector<8x8xbf16>
    %77 = vector.extract_strided_slice %48 {offsets = [0, 8], sizes = [8, 8], strides = [1, 1]} : vector<8x32xf32> to vector<8x8xf32>
    %78 = arith.truncf %77 : vector<8x8xf32> to vector<8x8xbf16>
    %cst_29 = arith.constant dense<0.000000e+00> : vector<8x8xf32>
    %79 = tpu.matmul %74, %76, %cst_29 {dimension_numbers = #tpu.dot_dimension_numbers<[1], [1], [0], [0], [0, 0, 1, 0], [], []>} : vector<8x8xbf16>, vector<8x8xbf16>, vector<8x8xf32> -> vector<8x8xf32>
    %80 = arith.addf %79, %15 : vector<8x8xf32>
    %cst_30 = arith.constant dense<0xFF800000> : vector<8xf32>
    %81 = vector.multi_reduction <maximumf>, %80, %cst_30 [1] : vector<8x8xf32> to vector<8xf32>
    %82 = vector.shape_cast %81 : vector<8xf32> to vector<8x1xf32>
    %83 = vector.broadcast %82 : vector<8x1xf32> to vector<8x8xf32>
    %84 = arith.subf %80, %83 : vector<8x8xf32>
    %85 = math.exp %84 : vector<8x8xf32>
    %cst_31 = arith.constant dense<0.000000e+00> : vector<8xf32>
    %86 = vector.multi_reduction <add>, %85, %cst_31 [1] : vector<8x8xf32> to vector<8xf32>
    %87 = vector.shape_cast %86 : vector<8xf32> to vector<8x1xf32>
    %88 = tpu.reciprocal %87 {approx = true} : vector<8x1xf32> -> vector<8x1xf32>
    %89 = vector.broadcast %88 : vector<8x1xf32> to vector<8x8xf32>
    %90 = arith.mulf %85, %89 : vector<8x8xf32>
    %91 = arith.truncf %90 : vector<8x8xf32> to vector<8x8xbf16>
    %cst_32 = arith.constant dense<0.000000e+00> : vector<8x8xf32>
    %92 = tpu.matmul %91, %78, %cst_32 {dimension_numbers = #tpu.dot_dimension_numbers<[1], [0], [0], [1], [0, 0, 1, 1], [], []>} : vector<8x8xbf16>, vector<8x8xbf16>, vector<8x8xf32> -> vector<8x8xf32>
    %93 = vector.extract_strided_slice %46 {offsets = [0, 16], sizes = [8, 8], strides = [1, 1]} : vector<8x32xf32> to vector<8x8xf32>
    %cst_33 = arith.constant 0.353553385 : f32
    %94 = vector.broadcast %cst_33 : f32 to vector<8x8xf32>
    %95 = arith.mulf %93, %94 : vector<8x8xf32>
    %96 = arith.truncf %95 : vector<8x8xf32> to vector<8x8xbf16>
    %97 = vector.extract_strided_slice %47 {offsets = [0, 16], sizes = [8, 8], strides = [1, 1]} : vector<8x32xf32> to vector<8x8xf32>
    %98 = arith.truncf %97 : vector<8x8xf32> to vector<8x8xbf16>
    %99 = vector.extract_strided_slice %48 {offsets = [0, 16], sizes = [8, 8], strides = [1, 1]} : vector<8x32xf32> to vector<8x8xf32>
    %100 = arith.truncf %99 : vector<8x8xf32> to vector<8x8xbf16>
    %cst_34 = arith.constant dense<0.000000e+00> : vector<8x8xf32>
    %101 = tpu.matmul %96, %98, %cst_34 {dimension_numbers = #tpu.dot_dimension_numbers<[1], [1], [0], [0], [0, 0, 1, 0], [], []>} : vector<8x8xbf16>, vector<8x8xbf16>, vector<8x8xf32> -> vector<8x8xf32>
    %102 = arith.addf %101, %15 : vector<8x8xf32>
    %cst_35 = arith.constant dense<0xFF800000> : vector<8xf32>
    %103 = vector.multi_reduction <maximumf>, %102, %cst_35 [1] : vector<8x8xf32> to vector<8xf32>
    %104 = vector.shape_cast %103 : vector<8xf32> to vector<8x1xf32>
    %105 = vector.broadcast %104 : vector<8x1xf32> to vector<8x8xf32>
    %106 = arith.subf %102, %105 : vector<8x8xf32>
    %107 = math.exp %106 : vector<8x8xf32>
    %cst_36 = arith.constant dense<0.000000e+00> : vector<8xf32>
    %108 = vector.multi_reduction <add>, %107, %cst_36 [1] : vector<8x8xf32> to vector<8xf32>
    %109 = vector.shape_cast %108 : vector<8xf32> to vector<8x1xf32>
    %110 = tpu.reciprocal %109 {approx = true} : vector<8x1xf32> -> vector<8x1xf32>
    %111 = vector.broadcast %110 : vector<8x1xf32> to vector<8x8xf32>
    %112 = arith.mulf %107, %111 : vector<8x8xf32>
    %113 = arith.truncf %112 : vector<8x8xf32> to vector<8x8xbf16>
    %cst_37 = arith.constant dense<0.000000e+00> : vector<8x8xf32>
    %114 = tpu.matmul %113, %100, %cst_37 {dimension_numbers = #tpu.dot_dimension_numbers<[1], [0], [0], [1], [0, 0, 1, 1], [], []>} : vector<8x8xbf16>, vector<8x8xbf16>, vector<8x8xf32> -> vector<8x8xf32>
    %115 = vector.extract_strided_slice %46 {offsets = [0, 24], sizes = [8, 8], strides = [1, 1]} : vector<8x32xf32> to vector<8x8xf32>
    %cst_38 = arith.constant 0.353553385 : f32
    %116 = vector.broadcast %cst_38 : f32 to vector<8x8xf32>
    %117 = arith.mulf %115, %116 : vector<8x8xf32>
    %118 = arith.truncf %117 : vector<8x8xf32> to vector<8x8xbf16>
    %119 = vector.extract_strided_slice %47 {offsets = [0, 24], sizes = [8, 8], strides = [1, 1]} : vector<8x32xf32> to vector<8x8xf32>
    %120 = arith.truncf %119 : vector<8x8xf32> to vector<8x8xbf16>
    %121 = vector.extract_strided_slice %48 {offsets = [0, 24], sizes = [8, 8], strides = [1, 1]} : vector<8x32xf32> to vector<8x8xf32>
    %122 = arith.truncf %121 : vector<8x8xf32> to vector<8x8xbf16>
    %cst_39 = arith.constant dense<0.000000e+00> : vector<8x8xf32>
    %123 = tpu.matmul %118, %120, %cst_39 {dimension_numbers = #tpu.dot_dimension_numbers<[1], [1], [0], [0], [0, 0, 1, 0], [], []>} : vector<8x8xbf16>, vector<8x8xbf16>, vector<8x8xf32> -> vector<8x8xf32>
    %124 = arith.addf %123, %15 : vector<8x8xf32>
    %cst_40 = arith.constant dense<0xFF800000> : vector<8xf32>
    %125 = vector.multi_reduction <maximumf>, %124, %cst_40 [1] : vector<8x8xf32> to vector<8xf32>
    %126 = vector.shape_cast %125 : vector<8xf32> to vector<8x1xf32>
    %127 = vector.broadcast %126 : vector<8x1xf32> to vector<8x8xf32>
    %128 = arith.subf %124, %127 : vector<8x8xf32>
    %129 = math.exp %128 : vector<8x8xf32>
    %cst_41 = arith.constant dense<0.000000e+00> : vector<8xf32>
    %130 = vector.multi_reduction <add>, %129, %cst_41 [1] : vector<8x8xf32> to vector<8xf32>
    %131 = vector.shape_cast %130 : vector<8xf32> to vector<8x1xf32>
    %132 = tpu.reciprocal %131 {approx = true} : vector<8x1xf32> -> vector<8x1xf32>
    %133 = vector.broadcast %132 : vector<8x1xf32> to vector<8x8xf32>
    %134 = arith.mulf %129, %133 : vector<8x8xf32>
    %135 = arith.truncf %134 : vector<8x8xf32> to vector<8x8xbf16>
    %cst_42 = arith.constant dense<0.000000e+00> : vector<8x8xf32>
    %136 = tpu.matmul %135, %122, %cst_42 {dimension_numbers = #tpu.dot_dimension_numbers<[1], [0], [0], [1], [0, 0, 1, 1], [], []>} : vector<8x8xbf16>, vector<8x8xbf16>, vector<8x8xf32> -> vector<8x8xf32>
    %137 = tpu.concatenate %70, %92, %114, %136 in 1 : vector<8x8xf32>, vector<8x8xf32>, vector<8x8xf32>, vector<8x8xf32> -> vector<8x32xf32>
    %138 = arith.truncf %137 : vector<8x32xf32> to vector<8x32xbf16>
    %c0_43 = arith.constant 0 : index
    %c0_44 = arith.constant 0 : index
    %139 = vector.load %arg9[%c0_43, %c0_44] : memref<32x32xbf16, #tpu.memory_space<vmem>>, vector<32x32xbf16>
    %cst_45 = arith.constant dense<0.000000e+00> : vector<8x32xf32>
    %140 = tpu.matmul %138, %139, %cst_45 {dimension_numbers = #tpu.dot_dimension_numbers<[1], [0], [0], [1], [0, 0, 1, 1], [], []>} : vector<8x32xbf16>, vector<32x32xbf16>, vector<8x32xf32> -> vector<8x32xf32>
    %c0_46 = arith.constant 0 : index
    %c0_47 = arith.constant 0 : index
    %141 = vector.load %arg10[%c0_46, %c0_47] : memref<1x32xf32, #tpu.memory_space<vmem>>, vector<1x32xf32>
    %142 = vector.broadcast %141 : vector<1x32xf32> to vector<8x32xf32>
    %143 = arith.addf %140, %142 : vector<8x32xf32>
    %144 = arith.addf %2, %143 : vector<8x32xf32>
    %c0_48 = arith.constant 0 : index
    %c0_49 = arith.constant 0 : index
    %c0_50 = arith.constant 0 : index
    %145 = vector.load %arg4[%c0_48, %c0_49, %c0_50] : memref<1x1x8xf32, #tpu.memory_space<vmem>>, vector<1x1x8xf32>
    %146 = vector.shape_cast %145 : vector<1x1x8xf32> to vector<1x8xf32>
    %c0_51 = arith.constant 0 : index
    %c0_52 = arith.constant 0 : index
    %147 = vector.load %arg11[%c0_51, %c0_52] : memref<1x32xf32, #tpu.memory_space<vmem>>, vector<1x32xf32>
    %c0_53 = arith.constant 0 : index
    %c0_54 = arith.constant 0 : index
    %148 = vector.load %arg12[%c0_53, %c0_54] : memref<1x32xf32, #tpu.memory_space<vmem>>, vector<1x32xf32>
    %cst_55 = arith.constant dense<0.000000e+00> : vector<8xf32>
    %149 = vector.multi_reduction <add>, %144, %cst_55 [1] : vector<8x32xf32> to vector<8xf32>
    %150 = vector.shape_cast %149 : vector<8xf32> to vector<8x1xf32>
    %cst_56 = arith.constant 3.200000e+01 : f32
    %151 = vector.broadcast %cst_56 : f32 to vector<8x1xf32>
    %152 = arith.divf %150, %151 : vector<8x1xf32>
    %153 = vector.broadcast %152 : vector<8x1xf32> to vector<8x32xf32>
    %154 = arith.subf %144, %153 : vector<8x32xf32>
    %155 = arith.mulf %154, %154 : vector<8x32xf32>
    %cst_57 = arith.constant dense<0.000000e+00> : vector<8xf32>
    %156 = vector.multi_reduction <add>, %155, %cst_57 [1] : vector<8x32xf32> to vector<8xf32>
    %157 = vector.shape_cast %156 : vector<8xf32> to vector<8x1xf32>
    %cst_58 = arith.constant 3.200000e+01 : f32
    %158 = vector.broadcast %cst_58 : f32 to vector<8x1xf32>
    %159 = arith.divf %157, %158 : vector<8x1xf32>
    %160 = vector.broadcast %152 : vector<8x1xf32> to vector<8x32xf32>
    %161 = arith.subf %144, %160 : vector<8x32xf32>
    %cst_59 = arith.constant 9.99999974E-6 : f32
    %162 = vector.broadcast %cst_59 : f32 to vector<8x1xf32>
    %163 = arith.addf %159, %162 : vector<8x1xf32>
    %164 = math.rsqrt %163 : vector<8x1xf32>
    %165 = vector.broadcast %164 : vector<8x1xf32> to vector<8x32xf32>
    %166 = arith.mulf %161, %165 : vector<8x32xf32>
    %167 = vector.broadcast %147 : vector<1x32xf32> to vector<8x32xf32>
    %168 = arith.mulf %166, %167 : vector<8x32xf32>
    %169 = vector.broadcast %148 : vector<1x32xf32> to vector<8x32xf32>
    %170 = arith.addf %168, %169 : vector<8x32xf32>
    %171 = arith.truncf %170 : vector<8x32xf32> to vector<8x32xbf16>
    %c0_60 = arith.constant 0 : index
    %c0_61 = arith.constant 0 : index
    %172 = vector.load %arg13[%c0_60, %c0_61] : memref<32x32xbf16, #tpu.memory_space<vmem>>, vector<32x32xbf16>
    %cst_62 = arith.constant dense<0.000000e+00> : vector<8x32xf32>
    %173 = tpu.matmul %171, %172, %cst_62 {dimension_numbers = #tpu.dot_dimension_numbers<[1], [0], [0], [1], [0, 0, 1, 1], [], []>} : vector<8x32xbf16>, vector<32x32xbf16>, vector<8x32xf32> -> vector<8x32xf32>
    %c0_63 = arith.constant 0 : index
    %c0_64 = arith.constant 0 : index
    %174 = vector.load %arg14[%c0_63, %c0_64] : memref<1x32xf32, #tpu.memory_space<vmem>>, vector<1x32xf32>
    %175 = vector.broadcast %174 : vector<1x32xf32> to vector<8x32xf32>
    %176 = arith.addf %173, %175 : vector<8x32xf32>
    %177 = arith.truncf %5 : vector<8x32xf32> to vector<8x32xbf16>
    %c0_65 = arith.constant 0 : index
    %c0_66 = arith.constant 0 : index
    %178 = vector.load %arg15[%c0_65, %c0_66] : memref<32x64xbf16, #tpu.memory_space<vmem>>, vector<32x64xbf16>
    %cst_67 = arith.constant dense<0.000000e+00> : vector<8x64xf32>
    %179 = tpu.matmul %177, %178, %cst_67 {dimension_numbers = #tpu.dot_dimension_numbers<[1], [0], [0], [1], [0, 0, 1, 1], [], []>} : vector<8x32xbf16>, vector<32x64xbf16>, vector<8x64xf32> -> vector<8x64xf32>
    %c0_68 = arith.constant 0 : index
    %c0_69 = arith.constant 0 : index
    %180 = vector.load %arg16[%c0_68, %c0_69] : memref<1x64xf32, #tpu.memory_space<vmem>>, vector<1x64xf32>
    %181 = vector.broadcast %180 : vector<1x64xf32> to vector<8x64xf32>
    %182 = arith.addf %179, %181 : vector<8x64xf32>
    %183 = vector.extract_strided_slice %182 {offsets = [0, 0], sizes = [8, 32], strides = [1, 1]} : vector<8x64xf32> to vector<8x32xf32>
    %184 = vector.extract_strided_slice %182 {offsets = [0, 32], sizes = [8, 32], strides = [1, 1]} : vector<8x64xf32> to vector<8x32xf32>
    %185 = vector.extract_strided_slice %176 {offsets = [0, 0], sizes = [8, 8], strides = [1, 1]} : vector<8x32xf32> to vector<8x8xf32>
    %cst_70 = arith.constant 0.353553385 : f32
    %186 = vector.broadcast %cst_70 : f32 to vector<8x8xf32>
    %187 = arith.mulf %185, %186 : vector<8x8xf32>
    %188 = arith.truncf %187 : vector<8x8xf32> to vector<8x8xbf16>
    %189 = vector.extract_strided_slice %183 {offsets = [0, 0], sizes = [8, 8], strides = [1, 1]} : vector<8x32xf32> to vector<8x8xf32>
    %190 = arith.truncf %189 : vector<8x8xf32> to vector<8x8xbf16>
    %191 = vector.extract_strided_slice %184 {offsets = [0, 0], sizes = [8, 8], strides = [1, 1]} : vector<8x32xf32> to vector<8x8xf32>
    %192 = arith.truncf %191 : vector<8x8xf32> to vector<8x8xbf16>
    %cst_71 = arith.constant dense<0.000000e+00> : vector<8x8xf32>
    %193 = tpu.matmul %188, %190, %cst_71 {dimension_numbers = #tpu.dot_dimension_numbers<[1], [1], [0], [0], [0, 0, 1, 0], [], []>} : vector<8x8xbf16>, vector<8x8xbf16>, vector<8x8xf32> -> vector<8x8xf32>
    %194 = vector.broadcast %146 : vector<1x8xf32> to vector<8x8xf32>
    %195 = arith.addf %193, %194 : vector<8x8xf32>
    %cst_72 = arith.constant dense<0xFF800000> : vector<8xf32>
    %196 = vector.multi_reduction <maximumf>, %195, %cst_72 [1] : vector<8x8xf32> to vector<8xf32>
    %197 = vector.shape_cast %196 : vector<8xf32> to vector<8x1xf32>
    %198 = vector.broadcast %197 : vector<8x1xf32> to vector<8x8xf32>
    %199 = arith.subf %195, %198 : vector<8x8xf32>
    %200 = math.exp %199 : vector<8x8xf32>
    %cst_73 = arith.constant dense<0.000000e+00> : vector<8xf32>
    %201 = vector.multi_reduction <add>, %200, %cst_73 [1] : vector<8x8xf32> to vector<8xf32>
    %202 = vector.shape_cast %201 : vector<8xf32> to vector<8x1xf32>
    %203 = vector.broadcast %202 : vector<8x1xf32> to vector<8x8xf32>
    %204 = arith.divf %200, %203 : vector<8x8xf32>
    %c0_74 = arith.constant 0 : index
    %c0_75 = arith.constant 0 : index
    %c0_76 = arith.constant 0 : index
    %c0_77 = arith.constant 0 : index
    %205 = vector.load %arg26[%c0_74, %c0_75, %c0_76, %c0_77] : memref<1x4x8x8xf32, #tpu.memory_space<vmem>>, vector<1x1x8x8xf32>
    %206 = vector.shape_cast %205 : vector<1x1x8x8xf32> to vector<8x8xf32>
    %207 = vector.shape_cast %204 : vector<8x8xf32> to vector<1x1x8x8xf32>
    tpu.vector_store %arg26[%c0_74, %c0_75, %c0_76, %c0_77], %207 {strides = array<i32>} : memref<1x4x8x8xf32, #tpu.memory_space<vmem>>, vector<1x1x8x8xf32>,
    %208 = arith.truncf %204 : vector<8x8xf32> to vector<8x8xbf16>
    %cst_78 = arith.constant dense<0.000000e+00> : vector<8x8xf32>
    %209 = tpu.matmul %208, %192, %cst_78 {dimension_numbers = #tpu.dot_dimension_numbers<[1], [0], [0], [1], [0, 0, 1, 1], [], []>} : vector<8x8xbf16>, vector<8x8xbf16>, vector<8x8xf32> -> vector<8x8xf32>
    %210 = vector.extract_strided_slice %176 {offsets = [0, 8], sizes = [8, 8], strides = [1, 1]} : vector<8x32xf32> to vector<8x8xf32>
    %cst_79 = arith.constant 0.353553385 : f32
    %211 = vector.broadcast %cst_79 : f32 to vector<8x8xf32>
    %212 = arith.mulf %210, %211 : vector<8x8xf32>
    %213 = arith.truncf %212 : vector<8x8xf32> to vector<8x8xbf16>
    %214 = vector.extract_strided_slice %183 {offsets = [0, 8], sizes = [8, 8], strides = [1, 1]} : vector<8x32xf32> to vector<8x8xf32>
    %215 = arith.truncf %214 : vector<8x8xf32> to vector<8x8xbf16>
    %216 = vector.extract_strided_slice %184 {offsets = [0, 8], sizes = [8, 8], strides = [1, 1]} : vector<8x32xf32> to vector<8x8xf32>
    %217 = arith.truncf %216 : vector<8x8xf32> to vector<8x8xbf16>
    %cst_80 = arith.constant dense<0.000000e+00> : vector<8x8xf32>
    %218 = tpu.matmul %213, %215, %cst_80 {dimension_numbers = #tpu.dot_dimension_numbers<[1], [1], [0], [0], [0, 0, 1, 0], [], []>} : vector<8x8xbf16>, vector<8x8xbf16>, vector<8x8xf32> -> vector<8x8xf32>
    %219 = vector.broadcast %146 : vector<1x8xf32> to vector<8x8xf32>
    %220 = arith.addf %218, %219 : vector<8x8xf32>
    %cst_81 = arith.constant dense<0xFF800000> : vector<8xf32>
    %221 = vector.multi_reduction <maximumf>, %220, %cst_81 [1] : vector<8x8xf32> to vector<8xf32>
    %222 = vector.shape_cast %221 : vector<8xf32> to vector<8x1xf32>
    %223 = vector.broadcast %222 : vector<8x1xf32> to vector<8x8xf32>
    %224 = arith.subf %220, %223 : vector<8x8xf32>
    %225 = math.exp %224 : vector<8x8xf32>
    %cst_82 = arith.constant dense<0.000000e+00> : vector<8xf32>
    %226 = vector.multi_reduction <add>, %225, %cst_82 [1] : vector<8x8xf32> to vector<8xf32>
    %227 = vector.shape_cast %226 : vector<8xf32> to vector<8x1xf32>
    %228 = vector.broadcast %227 : vector<8x1xf32> to vector<8x8xf32>
    %229 = arith.divf %225, %228 : vector<8x8xf32>
    %c0_83 = arith.constant 0 : index
    %c1 = arith.constant 1 : index
    %c0_84 = arith.constant 0 : index
    %c0_85 = arith.constant 0 : index
    %230 = vector.load %arg26[%c0_83, %c1, %c0_84, %c0_85] : memref<1x4x8x8xf32, #tpu.memory_space<vmem>>, vector<1x1x8x8xf32>
    %231 = vector.shape_cast %230 : vector<1x1x8x8xf32> to vector<8x8xf32>
    %232 = vector.shape_cast %229 : vector<8x8xf32> to vector<1x1x8x8xf32>
    tpu.vector_store %arg26[%c0_83, %c1, %c0_84, %c0_85], %232 {strides = array<i32>} : memref<1x4x8x8xf32, #tpu.memory_space<vmem>>, vector<1x1x8x8xf32>,
    %233 = arith.truncf %229 : vector<8x8xf32> to vector<8x8xbf16>
    %cst_86 = arith.constant dense<0.000000e+00> : vector<8x8xf32>
    %234 = tpu.matmul %233, %217, %cst_86 {dimension_numbers = #tpu.dot_dimension_numbers<[1], [0], [0], [1], [0, 0, 1, 1], [], []>} : vector<8x8xbf16>, vector<8x8xbf16>, vector<8x8xf32> -> vector<8x8xf32>
    %235 = vector.extract_strided_slice %176 {offsets = [0, 16], sizes = [8, 8], strides = [1, 1]} : vector<8x32xf32> to vector<8x8xf32>
    %cst_87 = arith.constant 0.353553385 : f32
    %236 = vector.broadcast %cst_87 : f32 to vector<8x8xf32>
    %237 = arith.mulf %235, %236 : vector<8x8xf32>
    %238 = arith.truncf %237 : vector<8x8xf32> to vector<8x8xbf16>
    %239 = vector.extract_strided_slice %183 {offsets = [0, 16], sizes = [8, 8], strides = [1, 1]} : vector<8x32xf32> to vector<8x8xf32>
    %240 = arith.truncf %239 : vector<8x8xf32> to vector<8x8xbf16>
    %241 = vector.extract_strided_slice %184 {offsets = [0, 16], sizes = [8, 8], strides = [1, 1]} : vector<8x32xf32> to vector<8x8xf32>
    %242 = arith.truncf %241 : vector<8x8xf32> to vector<8x8xbf16>
    %cst_88 = arith.constant dense<0.000000e+00> : vector<8x8xf32>
    %243 = tpu.matmul %238, %240, %cst_88 {dimension_numbers = #tpu.dot_dimension_numbers<[1], [1], [0], [0], [0, 0, 1, 0], [], []>} : vector<8x8xbf16>, vector<8x8xbf16>, vector<8x8xf32> -> vector<8x8xf32>
    %244 = vector.broadcast %146 : vector<1x8xf32> to vector<8x8xf32>
    %245 = arith.addf %243, %244 : vector<8x8xf32>
    %cst_89 = arith.constant dense<0xFF800000> : vector<8xf32>
    %246 = vector.multi_reduction <maximumf>, %245, %cst_89 [1] : vector<8x8xf32> to vector<8xf32>
    %247 = vector.shape_cast %246 : vector<8xf32> to vector<8x1xf32>
    %248 = vector.broadcast %247 : vector<8x1xf32> to vector<8x8xf32>
    %249 = arith.subf %245, %248 : vector<8x8xf32>
    %250 = math.exp %249 : vector<8x8xf32>
    %cst_90 = arith.constant dense<0.000000e+00> : vector<8xf32>
    %251 = vector.multi_reduction <add>, %250, %cst_90 [1] : vector<8x8xf32> to vector<8xf32>
    %252 = vector.shape_cast %251 : vector<8xf32> to vector<8x1xf32>
    %253 = vector.broadcast %252 : vector<8x1xf32> to vector<8x8xf32>
    %254 = arith.divf %250, %253 : vector<8x8xf32>
    %c0_91 = arith.constant 0 : index
    %c2 = arith.constant 2 : index
    %c0_92 = arith.constant 0 : index
    %c0_93 = arith.constant 0 : index
    %255 = vector.load %arg26[%c0_91, %c2, %c0_92, %c0_93] : memref<1x4x8x8xf32, #tpu.memory_space<vmem>>, vector<1x1x8x8xf32>
    %256 = vector.shape_cast %255 : vector<1x1x8x8xf32> to vector<8x8xf32>
    %257 = vector.shape_cast %254 : vector<8x8xf32> to vector<1x1x8x8xf32>
    tpu.vector_store %arg26[%c0_91, %c2, %c0_92, %c0_93], %257 {strides = array<i32>} : memref<1x4x8x8xf32, #tpu.memory_space<vmem>>, vector<1x1x8x8xf32>,
    %258 = arith.truncf %254 : vector<8x8xf32> to vector<8x8xbf16>
    %cst_94 = arith.constant dense<0.000000e+00> : vector<8x8xf32>
    %259 = tpu.matmul %258, %242, %cst_94 {dimension_numbers = #tpu.dot_dimension_numbers<[1], [0], [0], [1], [0, 0, 1, 1], [], []>} : vector<8x8xbf16>, vector<8x8xbf16>, vector<8x8xf32> -> vector<8x8xf32>
    %260 = vector.extract_strided_slice %176 {offsets = [0, 24], sizes = [8, 8], strides = [1, 1]} : vector<8x32xf32> to vector<8x8xf32>
    %cst_95 = arith.constant 0.353553385 : f32
    %261 = vector.broadcast %cst_95 : f32 to vector<8x8xf32>
    %262 = arith.mulf %260, %261 : vector<8x8xf32>
    %263 = arith.truncf %262 : vector<8x8xf32> to vector<8x8xbf16>
    %264 = vector.extract_strided_slice %183 {offsets = [0, 24], sizes = [8, 8], strides = [1, 1]} : vector<8x32xf32> to vector<8x8xf32>
    %265 = arith.truncf %264 : vector<8x8xf32> to vector<8x8xbf16>
    %266 = vector.extract_strided_slice %184 {offsets = [0, 24], sizes = [8, 8], strides = [1, 1]} : vector<8x32xf32> to vector<8x8xf32>
    %267 = arith.truncf %266 : vector<8x8xf32> to vector<8x8xbf16>
    %cst_96 = arith.constant dense<0.000000e+00> : vector<8x8xf32>
    %268 = tpu.matmul %263, %265, %cst_96 {dimension_numbers = #tpu.dot_dimension_numbers<[1], [1], [0], [0], [0, 0, 1, 0], [], []>} : vector<8x8xbf16>, vector<8x8xbf16>, vector<8x8xf32> -> vector<8x8xf32>
    %269 = vector.broadcast %146 : vector<1x8xf32> to vector<8x8xf32>
    %270 = arith.addf %268, %269 : vector<8x8xf32>
    %cst_97 = arith.constant dense<0xFF800000> : vector<8xf32>
    %271 = vector.multi_reduction <maximumf>, %270, %cst_97 [1] : vector<8x8xf32> to vector<8xf32>
    %272 = vector.shape_cast %271 : vector<8xf32> to vector<8x1xf32>
    %273 = vector.broadcast %272 : vector<8x1xf32> to vector<8x8xf32>
    %274 = arith.subf %270, %273 : vector<8x8xf32>
    %275 = math.exp %274 : vector<8x8xf32>
    %cst_98 = arith.constant dense<0.000000e+00> : vector<8xf32>
    %276 = vector.multi_reduction <add>, %275, %cst_98 [1] : vector<8x8xf32> to vector<8xf32>
    %277 = vector.shape_cast %276 : vector<8xf32> to vector<8x1xf32>
    %278 = vector.broadcast %277 : vector<8x1xf32> to vector<8x8xf32>
    %279 = arith.divf %275, %278 : vector<8x8xf32>
    %c0_99 = arith.constant 0 : index
    %c3 = arith.constant 3 : index
    %c0_100 = arith.constant 0 : index
    %c0_101 = arith.constant 0 : index
    %280 = vector.load %arg26[%c0_99, %c3, %c0_100, %c0_101] : memref<1x4x8x8xf32, #tpu.memory_space<vmem>>, vector<1x1x8x8xf32>
    %281 = vector.shape_cast %280 : vector<1x1x8x8xf32> to vector<8x8xf32>
    %282 = vector.shape_cast %279 : vector<8x8xf32> to vector<1x1x8x8xf32>
    tpu.vector_store %arg26[%c0_99, %c3, %c0_100, %c0_101], %282 {strides = array<i32>} : memref<1x4x8x8xf32, #tpu.memory_space<vmem>>, vector<1x1x8x8xf32>,
    %283 = arith.truncf %279 : vector<8x8xf32> to vector<8x8xbf16>
    %cst_102 = arith.constant dense<0.000000e+00> : vector<8x8xf32>
    %284 = tpu.matmul %283, %267, %cst_102 {dimension_numbers = #tpu.dot_dimension_numbers<[1], [0], [0], [1], [0, 0, 1, 1], [], []>} : vector<8x8xbf16>, vector<8x8xbf16>, vector<8x8xf32> -> vector<8x8xf32>
    %285 = tpu.concatenate %209, %234, %259, %284 in 1 : vector<8x8xf32>, vector<8x8xf32>, vector<8x8xf32>, vector<8x8xf32> -> vector<8x32xf32>
    %286 = arith.truncf %285 : vector<8x32xf32> to vector<8x32xbf16>
    %c0_103 = arith.constant 0 : index
    %c0_104 = arith.constant 0 : index
    %287 = vector.load %arg17[%c0_103, %c0_104] : memref<32x32xbf16, #tpu.memory_space<vmem>>, vector<32x32xbf16>
    %cst_105 = arith.constant dense<0.000000e+00> : vector<8x32xf32>
    %288 = tpu.matmul %286, %287, %cst_105 {dimension_numbers = #tpu.dot_dimension_numbers<[1], [0], [0], [1], [0, 0, 1, 1], [], []>} : vector<8x32xbf16>, vector<32x32xbf16>, vector<8x32xf32> -> vector<8x32xf32>
    %c0_106 = arith.constant 0 : index
    %c0_107 = arith.constant 0 : index
    %289 = vector.load %arg18[%c0_106, %c0_107] : memref<1x32xf32, #tpu.memory_space<vmem>>, vector<1x32xf32>
    %290 = vector.broadcast %289 : vector<1x32xf32> to vector<8x32xf32>
    %291 = arith.addf %288, %290 : vector<8x32xf32>
    %292 = arith.addf %144, %291 : vector<8x32xf32>
    %c0_108 = arith.constant 0 : index
    %c0_109 = arith.constant 0 : index
    %293 = vector.load %arg19[%c0_108, %c0_109] : memref<1x32xf32, #tpu.memory_space<vmem>>, vector<1x32xf32>
    %c0_110 = arith.constant 0 : index
    %c0_111 = arith.constant 0 : index
    %294 = vector.load %arg20[%c0_110, %c0_111] : memref<1x32xf32, #tpu.memory_space<vmem>>, vector<1x32xf32>
    %cst_112 = arith.constant dense<0.000000e+00> : vector<8xf32>
    %295 = vector.multi_reduction <add>, %292, %cst_112 [1] : vector<8x32xf32> to vector<8xf32>
    %296 = vector.shape_cast %295 : vector<8xf32> to vector<8x1xf32>
    %cst_113 = arith.constant 3.200000e+01 : f32
    %297 = vector.broadcast %cst_113 : f32 to vector<8x1xf32>
    %298 = arith.divf %296, %297 : vector<8x1xf32>
    %299 = vector.broadcast %298 : vector<8x1xf32> to vector<8x32xf32>
    %300 = arith.subf %292, %299 : vector<8x32xf32>
    %301 = arith.mulf %300, %300 : vector<8x32xf32>
    %cst_114 = arith.constant dense<0.000000e+00> : vector<8xf32>
    %302 = vector.multi_reduction <add>, %301, %cst_114 [1] : vector<8x32xf32> to vector<8xf32>
    %303 = vector.shape_cast %302 : vector<8xf32> to vector<8x1xf32>
    %cst_115 = arith.constant 3.200000e+01 : f32
    %304 = vector.broadcast %cst_115 : f32 to vector<8x1xf32>
    %305 = arith.divf %303, %304 : vector<8x1xf32>
    %306 = vector.broadcast %298 : vector<8x1xf32> to vector<8x32xf32>
    %307 = arith.subf %292, %306 : vector<8x32xf32>
    %cst_116 = arith.constant 9.99999974E-6 : f32
    %308 = vector.broadcast %cst_116 : f32 to vector<8x1xf32>
    %309 = arith.addf %305, %308 : vector<8x1xf32>
    %310 = math.rsqrt %309 : vector<8x1xf32>
    %311 = vector.broadcast %310 : vector<8x1xf32> to vector<8x32xf32>
    %312 = arith.mulf %307, %311 : vector<8x32xf32>
    %313 = vector.broadcast %293 : vector<1x32xf32> to vector<8x32xf32>
    %314 = arith.mulf %312, %313 : vector<8x32xf32>
    %315 = vector.broadcast %294 : vector<1x32xf32> to vector<8x32xf32>
    %316 = arith.addf %314, %315 : vector<8x32xf32>
    %317 = arith.truncf %316 : vector<8x32xf32> to vector<8x32xbf16>
    %c0_117 = arith.constant 0 : index
    %c0_118 = arith.constant 0 : index
    %318 = vector.load %arg21[%c0_117, %c0_118] : memref<32x64xbf16, #tpu.memory_space<vmem>>, vector<32x64xbf16>
    %cst_119 = arith.constant dense<0.000000e+00> : vector<8x64xf32>
    %319 = tpu.matmul %317, %318, %cst_119 {dimension_numbers = #tpu.dot_dimension_numbers<[1], [0], [0], [1], [0, 0, 1, 1], [], []>} : vector<8x32xbf16>, vector<32x64xbf16>, vector<8x64xf32> -> vector<8x64xf32>
    %c0_120 = arith.constant 0 : index
    %c0_121 = arith.constant 0 : index
    %320 = vector.load %arg22[%c0_120, %c0_121] : memref<1x64xf32, #tpu.memory_space<vmem>>, vector<1x64xf32>
    %321 = vector.broadcast %320 : vector<1x64xf32> to vector<8x64xf32>
    %322 = arith.addf %319, %321 : vector<8x64xf32>
    %cst_122 = arith.constant 0.000000e+00 : f32
    %323 = vector.broadcast %cst_122 : f32 to vector<8x64xf32>
    %324 = arith.maximumf %322, %323 : vector<8x64xf32>
    %325 = arith.truncf %324 : vector<8x64xf32> to vector<8x64xbf16>
    %c0_123 = arith.constant 0 : index
    %c0_124 = arith.constant 0 : index
    %326 = vector.load %arg23[%c0_123, %c0_124] : memref<64x32xbf16, #tpu.memory_space<vmem>>, vector<64x32xbf16>
    %cst_125 = arith.constant dense<0.000000e+00> : vector<8x32xf32>
    %327 = tpu.matmul %325, %326, %cst_125 {dimension_numbers = #tpu.dot_dimension_numbers<[1], [0], [0], [1], [0, 0, 1, 1], [], []>} : vector<8x64xbf16>, vector<64x32xbf16>, vector<8x32xf32> -> vector<8x32xf32>
    %328 = arith.addf %292, %327 : vector<8x32xf32>
    %c0_126 = arith.constant 0 : index
    %c0_127 = arith.constant 0 : index
    %329 = vector.load %arg24[%c0_126, %c0_127] : memref<1x32xf32, #tpu.memory_space<vmem>>, vector<1x32xf32>
    %330 = vector.broadcast %329 : vector<1x32xf32> to vector<8x32xf32>
    %331 = arith.addf %328, %330 : vector<8x32xf32>
    %332 = arith.truncf %331 : vector<8x32xf32> to vector<8x32xbf16>
    %c0_128 = arith.constant 0 : index
    %c0_129 = arith.constant 0 : index
    %c0_130 = arith.constant 0 : index
    %333 = vector.load %arg25[%c0_128, %c0_129, %c0_130] : memref<1x8x32xbf16, #tpu.memory_space<vmem>>, vector<1x8x32xbf16>
    %334 = vector.shape_cast %333 : vector<1x8x32xbf16> to vector<8x32xbf16>
    %335 = vector.shape_cast %332 : vector<8x32xbf16> to vector<1x8x32xbf16>
    tpu.vector_store %arg25[%c0_128, %c0_129, %c0_130], %335 {strides = array<i32>} : memref<1x8x32xbf16, #tpu.memory_space<vmem>>, vector<1x8x32xbf16>,
    return
  }
  func.func @transform_0(%arg0: i32) -> (i32, i32, i32) {
    %c0_i32 = arith.constant 0 : i32
    %c0_i32_0 = arith.constant 0 : i32
    %c0_i32_1 = arith.constant 0 : i32
    return %arg0, %c0_i32, %c0_i32_0 : i32, i32, i32
  }
  func.func @transform_1(%arg0: i32) -> (i32, i32, i32) {
    %c0_i32 = arith.constant 0 : i32
    %c0_i32_0 = arith.constant 0 : i32
    %c0_i32_1 = arith.constant 0 : i32
    return %arg0, %c0_i32, %c0_i32_0 : i32, i32, i32
  }
  func.func @transform_2(%arg0: i32) -> (i32, i32, i32) {
    %c0_i32 = arith.constant 0 : i32
    %c0_i32_0 = arith.constant 0 : i32
    %c0_i32_1 = arith.constant 0 : i32
    return %arg0, %c0_i32, %c0_i32_0 : i32, i32, i32
  }
  func.func @transform_3(%arg0: i32) -> (i32, i32, i32) {
    %c0_i32 = arith.constant 0 : i32
    %c0_i32_0 = arith.constant 0 : i32
    %c0_i32_1 = arith.constant 0 : i32
    return %arg0, %c0_i32, %c0_i32_0 : i32, i32, i32
  }
  func.func @transform_4(%arg0: i32) -> (i32, i32) {
    %c0_i32 = arith.constant 0 : i32
    %c0_i32_0 = arith.constant 0 : i32
    %c0_i32_1 = arith.constant 0 : i32
    return %c0_i32, %c0_i32_0 : i32, i32
  }
  func.func @transform_5(%arg0: i32) -> (i32, i32) {
    %c0_i32 = arith.constant 0 : i32
    %c0_i32_0 = arith.constant 0 : i32
    %c0_i32_1 = arith.constant 0 : i32
    return %c0_i32, %c0_i32_0 : i32, i32
  }
  func.func @transform_6(%arg0: i32) -> (i32, i32) {
    %c0_i32 = arith.constant 0 : i32
    %c0_i32_0 = arith.constant 0 : i32
    %c0_i32_1 = arith.constant 0 : i32
    return %c0_i32, %c0_i32_0 : i32, i32
  }
  func.func @transform_7(%arg0: i32) -> (i32, i32) {
    %c0_i32 = arith.constant 0 : i32
    %c0_i32_0 = arith.constant 0 : i32
    %c0_i32_1 = arith.constant 0 : i32
    return %c0_i32, %c0_i32_0 : i32, i32
  }
  func.func @transform_8(%arg0: i32) -> (i32, i32) {
    %c0_i32 = arith.constant 0 : i32
    %c0_i32_0 = arith.constant 0 : i32
    %c0_i32_1 = arith.constant 0 : i32
    return %c0_i32, %c0_i32_0 : i32, i32
  }
  func.func @transform_9(%arg0: i32) -> (i32, i32) {
    %c0_i32 = arith.constant 0 : i32
    %c0_i32_0 = arith.constant 0 : i32
    %c0_i32_1 = arith.constant 0 : i32
    return %c0_i32, %c0_i32_0 : i32, i32
  }
  func.func @transform_10(%arg0: i32) -> (i32, i32) {
    %c0_i32 = arith.constant 0 : i32
    %c0_i32_0 = arith.constant 0 : i32
    %c0_i32_1 = arith.constant 0 : i32
    return %c0_i32, %c0_i32_0 : i32, i32
  }
  func.func @transform_11(%arg0: i32) -> (i32, i32) {
    %c0_i32 = arith.constant 0 : i32
    %c0_i32_0 = arith.constant 0 : i32
    %c0_i32_1 = arith.constant 0 : i32
    return %c0_i32, %c0_i32_0 : i32, i32
  }
  func.func @transform_12(%arg0: i32) -> (i32, i32) {
    %c0_i32 = arith.constant 0 : i32
    %c0_i32_0 = arith.constant 0 : i32
    %c0_i32_1 = arith.constant 0 : i32
    return %c0_i32, %c0_i32_0 : i32, i32
  }
  func.func @transform_13(%arg0: i32) -> (i32, i32) {
    %c0_i32 = arith.constant 0 : i32
    %c0_i32_0 = arith.constant 0 : i32
    %c0_i32_1 = arith.constant 0 : i32
    return %c0_i32, %c0_i32_0 : i32, i32
  }
  func.func @transform_14(%arg0: i32) -> (i32, i32) {
    %c0_i32 = arith.constant 0 : i32
    %c0_i32_0 = arith.constant 0 : i32
    %c0_i32_1 = arith.constant 0 : i32
    return %c0_i32, %c0_i32_0 : i32, i32
  }
  func.func @transform_15(%arg0: i32) -> (i32, i32) {
    %c0_i32 = arith.constant 0 : i32
    %c0_i32_0 = arith.constant 0 : i32
    %c0_i32_1 = arith.constant 0 : i32
    return %c0_i32, %c0_i32_0 : i32, i32
  }
  func.func @transform_16(%arg0: i32) -> (i32, i32) {
    %c0_i32 = arith.constant 0 : i32
    %c0_i32_0 = arith.constant 0 : i32
    %c0_i32_1 = arith.constant 0 : i32
    return %c0_i32, %c0_i32_0 : i32, i32
  }
  func.func @transform_17(%arg0: i32) -> (i32, i32) {
    %c0_i32 = arith.constant 0 : i32
    %c0_i32_0 = arith.constant 0 : i32
    %c0_i32_1 = arith.constant 0 : i32
    return %c0_i32, %c0_i32_0 : i32, i32
  }
  func.func @transform_18(%arg0: i32) -> (i32, i32) {
    %c0_i32 = arith.constant 0 : i32
    %c0_i32_0 = arith.constant 0 : i32
    %c0_i32_1 = arith.constant 0 : i32
    return %c0_i32, %c0_i32_0 : i32, i32
  }
  func.func @transform_19(%arg0: i32) -> (i32, i32) {
    %c0_i32 = arith.constant 0 : i32
    %c0_i32_0 = arith.constant 0 : i32
    %c0_i32_1 = arith.constant 0 : i32
    return %c0_i32, %c0_i32_0 : i32, i32
  }
  func.func @transform_20(%arg0: i32) -> (i32, i32) {
    %c0_i32 = arith.constant 0 : i32
    %c0_i32_0 = arith.constant 0 : i32
    %c0_i32_1 = arith.constant 0 : i32
    return %c0_i32, %c0_i32_0 : i32, i32
  }
  func.func @transform_21(%arg0: i32) -> (i32, i32) {
    %c0_i32 = arith.constant 0 : i32
    %c0_i32_0 = arith.constant 0 : i32
    %c0_i32_1 = arith.constant 0 : i32
    return %c0_i32, %c0_i32_0 : i32, i32
  }
  func.func @transform_22(%arg0: i32) -> (i32, i32) {
    %c0_i32 = arith.constant 0 : i32
    %c0_i32_0 = arith.constant 0 : i32
    %c0_i32_1 = arith.constant 0 : i32
    return %c0_i32, %c0_i32_0 : i32, i32
  }
  func.func @transform_23(%arg0: i32) -> (i32, i32) {
    %c0_i32 = arith.constant 0 : i32
    %c0_i32_0 = arith.constant 0 : i32
    %c0_i32_1 = arith.constant 0 : i32
    return %c0_i32, %c0_i32_0 : i32, i32
  }
  func.func @transform_24(%arg0: i32) -> (i32, i32, i32) {
    %c0_i32 = arith.constant 0 : i32
    %c0_i32_0 = arith.constant 0 : i32
    %c0_i32_1 = arith.constant 0 : i32
    return %arg0, %c0_i32, %c0_i32_0 : i32, i32, i32
  }
  func.func @transform_25(%arg0: i32) -> (i32, i32, i32, i32) {
    %c0_i32 = arith.constant 0 : i32
    %c0_i32_0 = arith.constant 0 : i32
    %c0_i32_1 = arith.constant 0 : i32
    %c0_i32_2 = arith.constant 0 : i32
    return %arg0, %c0_i32, %c0_i32_0, %c0_i32_1 : i32, i32, i32, i32
  }
}

module attributes {stable_mosaic.version = 11 : i64} {
  func.func @_decoder_layer_kernel(%arg0: i32, %arg1: memref<1x8x32xbf16, #tpu.memory_space<vmem>>, %arg2: memref<1x8x32xbf16, #tpu.memory_space<vmem>>, %arg3: memref<1x8x1xf32, #tpu.memory_space<vmem>>, %arg4: memref<1x1x8xf32, #tpu.memory_space<vmem>>, %arg5: memref<1x32xf32, #tpu.memory_space<vmem>>, %arg6: memref<1x32xf32, #tpu.memory_space<vmem>>, %arg7: memref<32x96xbf16, #tpu.memory_space<vmem>>, %arg8: memref<1x96xf32, #tpu.memory_space<vmem>>, %arg9: memref<32x32xbf16, #tpu.memory_space<vmem>>, %arg10: memref<1x32xf32, #tpu.memory_space<vmem>>, %arg11: memref<1x32xf32, #tpu.memory_space<vmem>>, %arg12: memref<1x32xf32, #tpu.memory_space<vmem>>, %arg13: memref<32x32xbf16, #tpu.memory_space<vmem>>, %arg14: memref<1x32xf32, #tpu.memory_space<vmem>>, %arg15: memref<32x64xbf16, #tpu.memory_space<vmem>>, %arg16: memref<1x64xf32, #tpu.memory_space<vmem>>, %arg17: memref<32x32xbf16, #tpu.memory_space<vmem>>, %arg18: memref<1x32xf32, #tpu.memory_space<vmem>>, %arg19: memref<1x32xf32, #tpu.memory_space<vmem>>, %arg20: memref<1x32xf32, #tpu.memory_space<vmem>>, %arg21: memref<32x64xbf16, #tpu.memory_space<vmem>>, %arg22: memref<1x64xf32, #tpu.memory_space<vmem>>, %arg23: memref<64x32xbf16, #tpu.memory_space<vmem>>, %arg24: memref<1x32xf32, #tpu.memory_space<vmem>>, %arg25: memref<1x8x32xbf16, #tpu.memory_space<vmem>>, %arg26: memref<1x4x8x8xf32, #tpu.memory_space<vmem>>) attributes {dimension_semantics = [#tpu.dimension_semantics<parallel>], iteration_bounds = array<i64: 2>, scalar_prefetch = 0 : i64, scratch_operands = 0 : i64, tpu.core_type = #tpu.core_type<tc>, window_params = [{transform_indices = @transform_0, window_bounds = array<i64: 1, 8, 32>}, {transform_indices = @transform_1, window_bounds = array<i64: 1, 8, 32>}, {transform_indices = @transform_2, window_bounds = array<i64: 1, 8, 1>}, {transform_indices = @transform_3, window_bounds = array<i64: 1, 1, 8>}, {pipeline_mode = #tpu.pipeline_mode<synchronous>, transform_indices = @transform_4, window_bounds = array<i64: 1, 32>}, {pipeline_mode = #tpu.pipeline_mode<synchronous>, transform_indices = @transform_5, window_bounds = array<i64: 1, 32>}, {pipeline_mode = #tpu.pipeline_mode<synchronous>, transform_indices = @transform_6, window_bounds = array<i64: 32, 96>}, {pipeline_mode = #tpu.pipeline_mode<synchronous>, transform_indices = @transform_7, window_bounds = array<i64: 1, 96>}, {pipeline_mode = #tpu.pipeline_mode<synchronous>, transform_indices = @transform_8, window_bounds = array<i64: 32, 32>}, {pipeline_mode = #tpu.pipeline_mode<synchronous>, transform_indices = @transform_9, window_bounds = array<i64: 1, 32>}, {pipeline_mode = #tpu.pipeline_mode<synchronous>, transform_indices = @transform_10, window_bounds = array<i64: 1, 32>}, {pipeline_mode = #tpu.pipeline_mode<synchronous>, transform_indices = @transform_11, window_bounds = array<i64: 1, 32>}, {pipeline_mode = #tpu.pipeline_mode<synchronous>, transform_indices = @transform_12, window_bounds = array<i64: 32, 32>}, {pipeline_mode = #tpu.pipeline_mode<synchronous>, transform_indices = @transform_13, window_bounds = array<i64: 1, 32>}, {pipeline_mode = #tpu.pipeline_mode<synchronous>, transform_indices = @transform_14, window_bounds = array<i64: 32, 64>}, {pipeline_mode = #tpu.pipeline_mode<synchronous>, transform_indices = @transform_15, window_bounds = array<i64: 1, 64>}, {pipeline_mode = #tpu.pipeline_mode<synchronous>, transform_indices = @transform_16, window_bounds = array<i64: 32, 32>}, {pipeline_mode = #tpu.pipeline_mode<synchronous>, transform_indices = @transform_17, window_bounds = array<i64: 1, 32>}, {pipeline_mode = #tpu.pipeline_mode<synchronous>, transform_indices = @transform_18, window_bounds = array<i64: 1, 32>}, {pipeline_mode = #tpu.pipeline_mode<synchronous>, transform_indices = @transform_19, window_bounds = array<i64: 1, 32>}, {pipeline_mode = #tpu.pipeline_mode<synchronous>, transform_indices = @transform_20, window_bounds = array<i64: 32, 64>}, {pipeline_mode = #tpu.pipeline_mode<synchronous>, transform_indices = @transform_21, window_bounds = array<i64: 1, 64>}, {pipeline_mode = #tpu.pipeline_mode<synchronous>, transform_indices = @transform_22, window_bounds = array<i64: 64, 32>}, {pipeline_mode = #tpu.pipeline_mode<synchronous>, transform_indices = @transform_23, window_bounds = array<i64: 1, 32>}, {transform_indices = @transform_24, window_bounds = array<i64: 1, 8, 32>}, {transform_indices = @transform_25, window_bounds = array<i64: 1, 4, 8, 8>}]} {
    %c0 = arith.constant 0 : index
    %c0_0 = arith.constant 0 : index
    %c0_1 = arith.constant 0 : index
    %0 = vector.load %arg1[%c0, %c0_0, %c0_1] : memref<1x8x32xbf16, #tpu.memory_space<vmem>>, vector<1x8x32xbf16>
    %1 = vector.shape_cast %0 : vector<1x8x32xbf16> to vector<8x32xbf16>
    %2 = arith.extf %1 : vector<8x32xbf16> to vector<8x32xf32>
    %c0_2 = arith.constant 0 : index
    %c0_3 = arith.constant 0 : index
    %c0_4 = arith.constant 0 : index
    %3 = vector.load %arg2[%c0_2, %c0_3, %c0_4] : memref<1x8x32xbf16, #tpu.memory_space<vmem>>, vector<1x8x32xbf16>
    %4 = vector.shape_cast %3 : vector<1x8x32xbf16> to vector<8x32xbf16>
    %5 = arith.extf %4 : vector<8x32xbf16> to vector<8x32xf32>
    %6 = tpu.iota {dimensions = array<i32: 0>} : vector<8x8xi32>
    %7 = tpu.iota {dimensions = array<i32: 1>} : vector<8x8xi32>
    %8 = arith.cmpi sle, %7, %6 : vector<8x8xi32>
    %cst = arith.constant 0.000000e+00 : f32
    %cst_5 = arith.constant -1.000000e+30 : f32
    %9 = vector.broadcast %cst : f32 to vector<8x8xf32>
    %10 = vector.broadcast %cst_5 : f32 to vector<8x8xf32>
    %11 = arith.select %8, %9, %10 : vector<8x8xi1>, vector<8x8xf32>
    %c0_6 = arith.constant 0 : index
    %c0_7 = arith.constant 0 : index
    %c0_8 = arith.constant 0 : index
    %12 = vector.load %arg3[%c0_6, %c0_7, %c0_8] : memref<1x8x1xf32, #tpu.memory_space<vmem>>, vector<1x8x1xf32>
    %13 = vector.shape_cast %12 : vector<1x8x1xf32> to vector<8x1xf32>
    %14 = vector.broadcast %13 : vector<8x1xf32> to vector<8x8xf32>
    %15 = arith.addf %11, %14 : vector<8x8xf32>
    %c0_9 = arith.constant 0 : index
    %c0_10 = arith.constant 0 : index
    %16 = vector.load %arg5[%c0_9, %c0_10] : memref<1x32xf32, #tpu.memory_space<vmem>>, vector<1x32xf32>
    %c0_11 = arith.constant 0 : index
    %c0_12 = arith.constant 0 : index
    %17 = vector.load %arg6[%c0_11, %c0_12] : memref<1x32xf32, #tpu.memory_space<vmem>>, vector<1x32xf32>
    %cst_13 = arith.constant dense<0.000000e+00> : vector<8xf32>
    %18 = vector.multi_reduction <add>, %2, %cst_13 [1] : vector<8x32xf32> to vector<8xf32>
    %19 = vector.shape_cast %18 : vector<8xf32> to vector<8x1xf32>
    %cst_14 = arith.constant 3.200000e+01 : f32
    %20 = vector.broadcast %cst_14 : f32 to vector<8x1xf32>
    %21 = arith.divf %19, %20 : vector<8x1xf32>
    %22 = vector.broadcast %21 : vector<8x1xf32> to vector<8x32xf32>
    %23 = arith.subf %2, %22 : vector<8x32xf32>
    %24 = arith.mulf %23, %23 : vector<8x32xf32>
    %cst_15 = arith.constant dense<0.000000e+00> : vector<8xf32>
    %25 = vector.multi_reduction <add>, %24, %cst_15 [1] : vector<8x32xf32> to vector<8xf32>
    %26 = vector.shape_cast %25 : vector<8xf32> to vector<8x1xf32>
    %cst_16 = arith.constant 3.200000e+01 : f32
    %27 = vector.broadcast %cst_16 : f32 to vector<8x1xf32>
    %28 = arith.divf %26, %27 : vector<8x1xf32>
    %29 = vector.broadcast %21 : vector<8x1xf32> to vector<8x32xf32>
    %30 = arith.subf %2, %29 : vector<8x32xf32>
    %cst_17 = arith.constant 9.99999974E-6 : f32
    %31 = vector.broadcast %cst_17 : f32 to vector<8x1xf32>
    %32 = arith.addf %28, %31 : vector<8x1xf32>
    %33 = math.rsqrt %32 : vector<8x1xf32>
    %34 = vector.broadcast %33 : vector<8x1xf32> to vector<8x32xf32>
    %35 = arith.mulf %30, %34 : vector<8x32xf32>
    %36 = vector.broadcast %16 : vector<1x32xf32> to vector<8x32xf32>
    %37 = arith.mulf %35, %36 : vector<8x32xf32>
    %38 = vector.broadcast %17 : vector<1x32xf32> to vector<8x32xf32>
    %39 = arith.addf %37, %38 : vector<8x32xf32>
    %40 = arith.truncf %39 : vector<8x32xf32> to vector<8x32xbf16>
    %c0_18 = arith.constant 0 : index
    %c0_19 = arith.constant 0 : index
    %41 = vector.load %arg7[%c0_18, %c0_19] : memref<32x96xbf16, #tpu.memory_space<vmem>>, vector<32x96xbf16>
    %cst_20 = arith.constant dense<0.000000e+00> : vector<8x96xf32>
    %42 = tpu.matmul %40, %41, %cst_20 {dimension_numbers = #tpu.dot_dimension_numbers<[1], [0], [0], [1], [0, 0, 1, 1], [], []>} : vector<8x32xbf16>, vector<32x96xbf16>, vector<8x96xf32> -> vector<8x96xf32>
    %c0_21 = arith.constant 0 : index
    %c0_22 = arith.constant 0 : index
    %43 = vector.load %arg8[%c0_21, %c0_22] : memref<1x96xf32, #tpu.memory_space<vmem>>, vector<1x96xf32>
    %44 = vector.broadcast %43 : vector<1x96xf32> to vector<8x96xf32>
    %45 = arith.addf %42, %44 : vector<8x96xf32>
    %46 = vector.extract_strided_slice %45 {offsets = [0, 0], sizes = [8, 32], strides = [1, 1]} : vector<8x96xf32> to vector<8x32xf32>
    %47 = vector.extract_strided_slice %45 {offsets = [0, 32], sizes = [8, 32], strides = [1, 1]} : vector<8x96xf32> to vector<8x32xf32>
    %48 = vector.extract_strided_slice %45 {offsets = [0, 64], sizes = [8, 32], strides = [1, 1]} : vector<8x96xf32> to vector<8x32xf32>
    %49 = vector.extract_strided_slice %46 {offsets = [0, 0], sizes = [8, 8], strides = [1, 1]} : vector<8x32xf32> to vector<8x8xf32>
    %cst_23 = arith.constant 0.353553385 : f32
    %50 = vector.broadcast %cst_23 : f32 to vector<8x8xf32>
    %51 = arith.mulf %49, %50 : vector<8x8xf32>
    %52 = arith.truncf %51 : vector<8x8xf32> to vector<8x8xbf16>
    %53 = vector.extract_strided_slice %47 {offsets = [0, 0], sizes = [8, 8], strides = [1, 1]} : vector<8x32xf32> to vector<8x8xf32>
    %54 = arith.truncf %53 : vector<8x8xf32> to vector<8x8xbf16>
    %55 = vector.extract_strided_slice %48 {offsets = [0, 0], sizes = [8, 8], strides = [1, 1]} : vector<8x32xf32> to vector<8x8xf32>
    %56 = arith.truncf %55 : vector<8x8xf32> to vector<8x8xbf16>
    %cst_24 = arith.constant dense<0.000000e+00> : vector<8x8xf32>
    %57 = tpu.matmul %52, %54, %cst_24 {dimension_numbers = #tpu.dot_dimension_numbers<[1], [1], [0], [0], [0, 0, 1, 0], [], []>} : vector<8x8xbf16>, vector<8x8xbf16>, vector<8x8xf32> -> vector<8x8xf32>
    %58 = arith.addf %57, %15 : vector<8x8xf32>
    %cst_25 = arith.constant dense<0xFF800000> : vector<8xf32>
    %59 = vector.multi_reduction <maximumf>, %58, %cst_25 [1] : vector<8x8xf32> to vector<8xf32>
    %60 = vector.shape_cast %59 : vector<8xf32> to vector<8x1xf32>
    %61 = vector.broadcast %60 : vector<8x1xf32> to vector<8x8xf32>
    %62 = arith.subf %58, %61 : vector<8x8xf32>
    %63 = math.exp %62 : vector<8x8xf32>
    %cst_26 = arith.constant dense<0.000000e+00> : vector<8xf32>
    %64 = vector.multi_reduction <add>, %63, %cst_26 [1] : vector<8x8xf32> to vector<8xf32>
    %65 = vector.shape_cast %64 : vector<8xf32> to vector<8x1xf32>
    %66 = tpu.reciprocal %65 {approx = true} : vector<8x1xf32> -> vector<8x1xf32>
    %67 = vector.broadcast %66 : vector<8x1xf32> to vector<8x8xf32>
    %68 = arith.mulf %63, %67 : vector<8x8xf32>
    %69 = arith.truncf %68 : vector<8x8xf32> to vector<8x8xbf16>
    %cst_27 = arith.constant dense<0.000000e+00> : vector<8x8xf32>
    %70 = tpu.matmul %69, %56, %cst_27 {dimension_numbers = #tpu.dot_dimension_numbers<[1], [0], [0], [1], [0, 0, 1, 1], [], []>} : vector<8x8xbf16>, vector<8x8xbf16>, vector<8x8xf32> -> vector<8x8xf32>
    %71 = vector.extract_strided_slice %46 {offsets = [0, 8], sizes = [8, 8], strides = [1, 1]} : vector<8x32xf32> to vector<8x8xf32>
    %cst_28 = arith.constant 0.353553385 : f32
    %72 = vector.broadcast %cst_28 : f32 to vector<8x8xf32>
    %73 = arith.mulf %71, %72 : vector<8x8xf32>
    %74 = arith.truncf %73 : vector<8x8xf32> to vector<8x8xbf16>
    %75 = vector.extract_strided_slice %47 {offsets = [0, 8], sizes = [8, 8], strides = [1, 1]} : vector<8x32xf32> to vector<8x8xf32>
    %76 = arith.truncf %75 : vector<8x8xf32> to vector<8x8xbf16>
    %77 = vector.extract_strided_slice %48 {offsets = [0, 8], sizes = [8, 8], strides = [1, 1]} : vector<8x32xf32> to vector<8x8xf32>
    %78 = arith.truncf %77 : vector<8x8xf32> to vector<8x8xbf16>
    %cst_29 = arith.constant dense<0.000000e+00> : vector<8x8xf32>
    %79 = tpu.matmul %74, %76, %cst_29 {dimension_numbers = #tpu.dot_dimension_numbers<[1], [1], [0], [0], [0, 0, 1, 0], [], []>} : vector<8x8xbf16>, vector<8x8xbf16>, vector<8x8xf32> -> vector<8x8xf32>
    %80 = arith.addf %79, %15 : vector<8x8xf32>
    %cst_30 = arith.constant dense<0xFF800000> : vector<8xf32>
    %81 = vector.multi_reduction <maximumf>, %80, %cst_30 [1] : vector<8x8xf32> to vector<8xf32>
    %82 = vector.shape_cast %81 : vector<8xf32> to vector<8x1xf32>
    %83 = vector.broadcast %82 : vector<8x1xf32> to vector<8x8xf32>
    %84 = arith.subf %80, %83 : vector<8x8xf32>
    %85 = math.exp %84 : vector<8x8xf32>
    %cst_31 = arith.constant dense<0.000000e+00> : vector<8xf32>
    %86 = vector.multi_reduction <add>, %85, %cst_31 [1] : vector<8x8xf32> to vector<8xf32>
    %87 = vector.shape_cast %86 : vector<8xf32> to vector<8x1xf32>
    %88 = tpu.reciprocal %87 {approx = true} : vector<8x1xf32> -> vector<8x1xf32>
    %89 = vector.broadcast %88 : vector<8x1xf32> to vector<8x8xf32>
    %90 = arith.mulf %85, %89 : vector<8x8xf32>
    %91 = arith.truncf %90 : vector<8x8xf32> to vector<8x8xbf16>
    %cst_32 = arith.constant dense<0.000000e+00> : vector<8x8xf32>
    %92 = tpu.matmul %91, %78, %cst_32 {dimension_numbers = #tpu.dot_dimension_numbers<[1], [0], [0], [1], [0, 0, 1, 1], [], []>} : vector<8x8xbf16>, vector<8x8xbf16>, vector<8x8xf32> -> vector<8x8xf32>
    %93 = vector.extract_strided_slice %46 {offsets = [0, 16], sizes = [8, 8], strides = [1, 1]} : vector<8x32xf32> to vector<8x8xf32>
    %cst_33 = arith.constant 0.353553385 : f32
    %94 = vector.broadcast %cst_33 : f32 to vector<8x8xf32>
    %95 = arith.mulf %93, %94 : vector<8x8xf32>
    %96 = arith.truncf %95 : vector<8x8xf32> to vector<8x8xbf16>
    %97 = vector.extract_strided_slice %47 {offsets = [0, 16], sizes = [8, 8], strides = [1, 1]} : vector<8x32xf32> to vector<8x8xf32>
    %98 = arith.truncf %97 : vector<8x8xf32> to vector<8x8xbf16>
    %99 = vector.extract_strided_slice %48 {offsets = [0, 16], sizes = [8, 8], strides = [1, 1]} : vector<8x32xf32> to vector<8x8xf32>
    %100 = arith.truncf %99 : vector<8x8xf32> to vector<8x8xbf16>
    %cst_34 = arith.constant dense<0.000000e+00> : vector<8x8xf32>
    %101 = tpu.matmul %96, %98, %cst_34 {dimension_numbers = #tpu.dot_dimension_numbers<[1], [1], [0], [0], [0, 0, 1, 0], [], []>} : vector<8x8xbf16>, vector<8x8xbf16>, vector<8x8xf32> -> vector<8x8xf32>
    %102 = arith.addf %101, %15 : vector<8x8xf32>
    %cst_35 = arith.constant dense<0xFF800000> : vector<8xf32>
    %103 = vector.multi_reduction <maximumf>, %102, %cst_35 [1] : vector<8x8xf32> to vector<8xf32>
    %104 = vector.shape_cast %103 : vector<8xf32> to vector<8x1xf32>
    %105 = vector.broadcast %104 : vector<8x1xf32> to vector<8x8xf32>
    %106 = arith.subf %102, %105 : vector<8x8xf32>
    %107 = math.exp %106 : vector<8x8xf32>
    %cst_36 = arith.constant dense<0.000000e+00> : vector<8xf32>
    %108 = vector.multi_reduction <add>, %107, %cst_36 [1] : vector<8x8xf32> to vector<8xf32>
    %109 = vector.shape_cast %108 : vector<8xf32> to vector<8x1xf32>
    %110 = tpu.reciprocal %109 {approx = true} : vector<8x1xf32> -> vector<8x1xf32>
    %111 = vector.broadcast %110 : vector<8x1xf32> to vector<8x8xf32>
    %112 = arith.mulf %107, %111 : vector<8x8xf32>
    %113 = arith.truncf %112 : vector<8x8xf32> to vector<8x8xbf16>
    %cst_37 = arith.constant dense<0.000000e+00> : vector<8x8xf32>
    %114 = tpu.matmul %113, %100, %cst_37 {dimension_numbers = #tpu.dot_dimension_numbers<[1], [0], [0], [1], [0, 0, 1, 1], [], []>} : vector<8x8xbf16>, vector<8x8xbf16>, vector<8x8xf32> -> vector<8x8xf32>
    %115 = vector.extract_strided_slice %46 {offsets = [0, 24], sizes = [8, 8], strides = [1, 1]} : vector<8x32xf32> to vector<8x8xf32>
    %cst_38 = arith.constant 0.353553385 : f32
    %116 = vector.broadcast %cst_38 : f32 to vector<8x8xf32>
    %117 = arith.mulf %115, %116 : vector<8x8xf32>
    %118 = arith.truncf %117 : vector<8x8xf32> to vector<8x8xbf16>
    %119 = vector.extract_strided_slice %47 {offsets = [0, 24], sizes = [8, 8], strides = [1, 1]} : vector<8x32xf32> to vector<8x8xf32>
    %120 = arith.truncf %119 : vector<8x8xf32> to vector<8x8xbf16>
    %121 = vector.extract_strided_slice %48 {offsets = [0, 24], sizes = [8, 8], strides = [1, 1]} : vector<8x32xf32> to vector<8x8xf32>
    %122 = arith.truncf %121 : vector<8x8xf32> to vector<8x8xbf16>
    %cst_39 = arith.constant dense<0.000000e+00> : vector<8x8xf32>
    %123 = tpu.matmul %118, %120, %cst_39 {dimension_numbers = #tpu.dot_dimension_numbers<[1], [1], [0], [0], [0, 0, 1, 0], [], []>} : vector<8x8xbf16>, vector<8x8xbf16>, vector<8x8xf32> -> vector<8x8xf32>
    %124 = arith.addf %123, %15 : vector<8x8xf32>
    %cst_40 = arith.constant dense<0xFF800000> : vector<8xf32>
    %125 = vector.multi_reduction <maximumf>, %124, %cst_40 [1] : vector<8x8xf32> to vector<8xf32>
    %126 = vector.shape_cast %125 : vector<8xf32> to vector<8x1xf32>
    %127 = vector.broadcast %126 : vector<8x1xf32> to vector<8x8xf32>
    %128 = arith.subf %124, %127 : vector<8x8xf32>
    %129 = math.exp %128 : vector<8x8xf32>
    %cst_41 = arith.constant dense<0.000000e+00> : vector<8xf32>
    %130 = vector.multi_reduction <add>, %129, %cst_41 [1] : vector<8x8xf32> to vector<8xf32>
    %131 = vector.shape_cast %130 : vector<8xf32> to vector<8x1xf32>
    %132 = tpu.reciprocal %131 {approx = true} : vector<8x1xf32> -> vector<8x1xf32>
    %133 = vector.broadcast %132 : vector<8x1xf32> to vector<8x8xf32>
    %134 = arith.mulf %129, %133 : vector<8x8xf32>
    %135 = arith.truncf %134 : vector<8x8xf32> to vector<8x8xbf16>
    %cst_42 = arith.constant dense<0.000000e+00> : vector<8x8xf32>
    %136 = tpu.matmul %135, %122, %cst_42 {dimension_numbers = #tpu.dot_dimension_numbers<[1], [0], [0], [1], [0, 0, 1, 1], [], []>} : vector<8x8xbf16>, vector<8x8xbf16>, vector<8x8xf32> -> vector<8x8xf32>
    %137 = tpu.concatenate %70, %92, %114, %136 in 1 : vector<8x8xf32>, vector<8x8xf32>, vector<8x8xf32>, vector<8x8xf32> -> vector<8x32xf32>
    %138 = arith.truncf %137 : vector<8x32xf32> to vector<8x32xbf16>
    %c0_43 = arith.constant 0 : index
    %c0_44 = arith.constant 0 : index
    %139 = vector.load %arg9[%c0_43, %c0_44] : memref<32x32xbf16, #tpu.memory_space<vmem>>, vector<32x32xbf16>
    %cst_45 = arith.constant dense<0.000000e+00> : vector<8x32xf32>
    %140 = tpu.matmul %138, %139, %cst_45 {dimension_numbers = #tpu.dot_dimension_numbers<[1], [0], [0], [1], [0, 0, 1, 1], [], []>} : vector<8x32xbf16>, vector<32x32xbf16>, vector<8x32xf32> -> vector<8x32xf32>
    %c0_46 = arith.constant 0 : index
    %c0_47 = arith.constant 0 : index
    %141 = vector.load %arg10[%c0_46, %c0_47] : memref<1x32xf32, #tpu.memory_space<vmem>>, vector<1x32xf32>
    %142 = vector.broadcast %141 : vector<1x32xf32> to vector<8x32xf32>
    %143 = arith.addf %140, %142 : vector<8x32xf32>
    %144 = arith.addf %2, %143 : vector<8x32xf32>
    %c0_48 = arith.constant 0 : index
    %c0_49 = arith.constant 0 : index
    %c0_50 = arith.constant 0 : index
    %145 = vector.load %arg4[%c0_48, %c0_49, %c0_50] : memref<1x1x8xf32, #tpu.memory_space<vmem>>, vector<1x1x8xf32>
    %146 = vector.shape_cast %145 : vector<1x1x8xf32> to vector<1x8xf32>
    %c0_51 = arith.constant 0 : index
    %c0_52 = arith.constant 0 : index
    %147 = vector.load %arg11[%c0_51, %c0_52] : memref<1x32xf32, #tpu.memory_space<vmem>>, vector<1x32xf32>
    %c0_53 = arith.constant 0 : index
    %c0_54 = arith.constant 0 : index
    %148 = vector.load %arg12[%c0_53, %c0_54] : memref<1x32xf32, #tpu.memory_space<vmem>>, vector<1x32xf32>
    %cst_55 = arith.constant dense<0.000000e+00> : vector<8xf32>
    %149 = vector.multi_reduction <add>, %144, %cst_55 [1] : vector<8x32xf32> to vector<8xf32>
    %150 = vector.shape_cast %149 : vector<8xf32> to vector<8x1xf32>
    %cst_56 = arith.constant 3.200000e+01 : f32
    %151 = vector.broadcast %cst_56 : f32 to vector<8x1xf32>
    %152 = arith.divf %150, %151 : vector<8x1xf32>
    %153 = vector.broadcast %152 : vector<8x1xf32> to vector<8x32xf32>
    %154 = arith.subf %144, %153 : vector<8x32xf32>
    %155 = arith.mulf %154, %154 : vector<8x32xf32>
    %cst_57 = arith.constant dense<0.000000e+00> : vector<8xf32>
    %156 = vector.multi_reduction <add>, %155, %cst_57 [1] : vector<8x32xf32> to vector<8xf32>
    %157 = vector.shape_cast %156 : vector<8xf32> to vector<8x1xf32>
    %cst_58 = arith.constant 3.200000e+01 : f32
    %158 = vector.broadcast %cst_58 : f32 to vector<8x1xf32>
    %159 = arith.divf %157, %158 : vector<8x1xf32>
    %160 = vector.broadcast %152 : vector<8x1xf32> to vector<8x32xf32>
    %161 = arith.subf %144, %160 : vector<8x32xf32>
    %cst_59 = arith.constant 9.99999974E-6 : f32
    %162 = vector.broadcast %cst_59 : f32 to vector<8x1xf32>
    %163 = arith.addf %159, %162 : vector<8x1xf32>
    %164 = math.rsqrt %163 : vector<8x1xf32>
    %165 = vector.broadcast %164 : vector<8x1xf32> to vector<8x32xf32>
    %166 = arith.mulf %161, %165 : vector<8x32xf32>
    %167 = vector.broadcast %147 : vector<1x32xf32> to vector<8x32xf32>
    %168 = arith.mulf %166, %167 : vector<8x32xf32>
    %169 = vector.broadcast %148 : vector<1x32xf32> to vector<8x32xf32>
    %170 = arith.addf %168, %169 : vector<8x32xf32>
    %171 = arith.truncf %170 : vector<8x32xf32> to vector<8x32xbf16>
    %c0_60 = arith.constant 0 : index
    %c0_61 = arith.constant 0 : index
    %172 = vector.load %arg13[%c0_60, %c0_61] : memref<32x32xbf16, #tpu.memory_space<vmem>>, vector<32x32xbf16>
    %cst_62 = arith.constant dense<0.000000e+00> : vector<8x32xf32>
    %173 = tpu.matmul %171, %172, %cst_62 {dimension_numbers = #tpu.dot_dimension_numbers<[1], [0], [0], [1], [0, 0, 1, 1], [], []>} : vector<8x32xbf16>, vector<32x32xbf16>, vector<8x32xf32> -> vector<8x32xf32>
    %c0_63 = arith.constant 0 : index
    %c0_64 = arith.constant 0 : index
    %174 = vector.load %arg14[%c0_63, %c0_64] : memref<1x32xf32, #tpu.memory_space<vmem>>, vector<1x32xf32>
    %175 = vector.broadcast %174 : vector<1x32xf32> to vector<8x32xf32>
    %176 = arith.addf %173, %175 : vector<8x32xf32>
    %177 = arith.truncf %5 : vector<8x32xf32> to vector<8x32xbf16>
    %c0_65 = arith.constant 0 : index
    %c0_66 = arith.constant 0 : index
    %178 = vector.load %arg15[%c0_65, %c0_66] : memref<32x64xbf16, #tpu.memory_space<vmem>>, vector<32x64xbf16>
    %cst_67 = arith.constant dense<0.000000e+00> : vector<8x64xf32>
    %179 = tpu.matmul %177, %178, %cst_67 {dimension_numbers = #tpu.dot_dimension_numbers<[1], [0], [0], [1], [0, 0, 1, 1], [], []>} : vector<8x32xbf16>, vector<32x64xbf16>, vector<8x64xf32> -> vector<8x64xf32>
    %c0_68 = arith.constant 0 : index
    %c0_69 = arith.constant 0 : index
    %180 = vector.load %arg16[%c0_68, %c0_69] : memref<1x64xf32, #tpu.memory_space<vmem>>, vector<1x64xf32>
    %181 = vector.broadcast %180 : vector<1x64xf32> to vector<8x64xf32>
    %182 = arith.addf %179, %181 : vector<8x64xf32>
    %183 = vector.extract_strided_slice %182 {offsets = [0, 0], sizes = [8, 32], strides = [1, 1]} : vector<8x64xf32> to vector<8x32xf32>
    %184 = vector.extract_strided_slice %182 {offsets = [0, 32], sizes = [8, 32], strides = [1, 1]} : vector<8x64xf32> to vector<8x32xf32>
    %185 = vector.extract_strided_slice %176 {offsets = [0, 0], sizes = [8, 8], strides = [1, 1]} : vector<8x32xf32> to vector<8x8xf32>
    %cst_70 = arith.constant 0.353553385 : f32
    %186 = vector.broadcast %cst_70 : f32 to vector<8x8xf32>
    %187 = arith.mulf %185, %186 : vector<8x8xf32>
    %188 = arith.truncf %187 : vector<8x8xf32> to vector<8x8xbf16>
    %189 = vector.extract_strided_slice %183 {offsets = [0, 0], sizes = [8, 8], strides = [1, 1]} : vector<8x32xf32> to vector<8x8xf32>
    %190 = arith.truncf %189 : vector<8x8xf32> to vector<8x8xbf16>
    %191 = vector.extract_strided_slice %184 {offsets = [0, 0], sizes = [8, 8], strides = [1, 1]} : vector<8x32xf32> to vector<8x8xf32>
    %192 = arith.truncf %191 : vector<8x8xf32> to vector<8x8xbf16>
    %cst_71 = arith.constant dense<0.000000e+00> : vector<8x8xf32>
    %193 = tpu.matmul %188, %190, %cst_71 {dimension_numbers = #tpu.dot_dimension_numbers<[1], [1], [0], [0], [0, 0, 1, 0], [], []>} : vector<8x8xbf16>, vector<8x8xbf16>, vector<8x8xf32> -> vector<8x8xf32>
    %194 = vector.broadcast %146 : vector<1x8xf32> to vector<8x8xf32>
    %195 = arith.addf %193, %194 : vector<8x8xf32>
    %cst_72 = arith.constant dense<0xFF800000> : vector<8xf32>
    %196 = vector.multi_reduction <maximumf>, %195, %cst_72 [1] : vector<8x8xf32> to vector<8xf32>
    %197 = vector.shape_cast %196 : vector<8xf32> to vector<8x1xf32>
    %198 = vector.broadcast %197 : vector<8x1xf32> to vector<8x8xf32>
    %199 = arith.subf %195, %198 : vector<8x8xf32>
    %200 = math.exp %199 : vector<8x8xf32>
    %cst_73 = arith.constant dense<0.000000e+00> : vector<8xf32>
    %201 = vector.multi_reduction <add>, %200, %cst_73 [1] : vector<8x8xf32> to vector<8xf32>
    %202 = vector.shape_cast %201 : vector<8xf32> to vector<8x1xf32>
    %203 = vector.broadcast %202 : vector<8x1xf32> to vector<8x8xf32>
    %204 = arith.divf %200, %203 : vector<8x8xf32>
    %c0_74 = arith.constant 0 : index
    %c0_75 = arith.constant 0 : index
    %c0_76 = arith.constant 0 : index
    %c0_77 = arith.constant 0 : index
    %205 = vector.load %arg26[%c0_74, %c0_75, %c0_76, %c0_77] : memref<1x4x8x8xf32, #tpu.memory_space<vmem>>, vector<1x1x8x8xf32>
    %206 = vector.shape_cast %205 : vector<1x1x8x8xf32> to vector<8x8xf32>
    %207 = vector.shape_cast %204 : vector<8x8xf32> to vector<1x1x8x8xf32>
    tpu.vector_store %arg26[%c0_74, %c0_75, %c0_76, %c0_77], %207 {strides = array<i32>} : memref<1x4x8x8xf32, #tpu.memory_space<vmem>>, vector<1x1x8x8xf32>,
    %208 = arith.truncf %204 : vector<8x8xf32> to vector<8x8xbf16>
    %cst_78 = arith.constant dense<0.000000e+00> : vector<8x8xf32>
    %209 = tpu.matmul %208, %192, %cst_78 {dimension_numbers = #tpu.dot_dimension_numbers<[1], [0], [0], [1], [0, 0, 1, 1], [], []>} : vector<8x8xbf16>, vector<8x8xbf16>, vector<8x8xf32> -> vector<8x8xf32>
    %210 = vector.extract_strided_slice %176 {offsets = [0, 8], sizes = [8, 8], strides = [1, 1]} : vector<8x32xf32> to vector<8x8xf32>
    %cst_79 = arith.constant 0.353553385 : f32
    %211 = vector.broadcast %cst_79 : f32 to vector<8x8xf32>
    %212 = arith.mulf %210, %211 : vector<8x8xf32>
    %213 = arith.truncf %212 : vector<8x8xf32> to vector<8x8xbf16>
    %214 = vector.extract_strided_slice %183 {offsets = [0, 8], sizes = [8, 8], strides = [1, 1]} : vector<8x32xf32> to vector<8x8xf32>
    %215 = arith.truncf %214 : vector<8x8xf32> to vector<8x8xbf16>
    %216 = vector.extract_strided_slice %184 {offsets = [0, 8], sizes = [8, 8], strides = [1, 1]} : vector<8x32xf32> to vector<8x8xf32>
    %217 = arith.truncf %216 : vector<8x8xf32> to vector<8x8xbf16>
    %cst_80 = arith.constant dense<0.000000e+00> : vector<8x8xf32>
    %218 = tpu.matmul %213, %215, %cst_80 {dimension_numbers = #tpu.dot_dimension_numbers<[1], [1], [0], [0], [0, 0, 1, 0], [], []>} : vector<8x8xbf16>, vector<8x8xbf16>, vector<8x8xf32> -> vector<8x8xf32>
    %219 = vector.broadcast %146 : vector<1x8xf32> to vector<8x8xf32>
    %220 = arith.addf %218, %219 : vector<8x8xf32>
    %cst_81 = arith.constant dense<0xFF800000> : vector<8xf32>
    %221 = vector.multi_reduction <maximumf>, %220, %cst_81 [1] : vector<8x8xf32> to vector<8xf32>
    %222 = vector.shape_cast %221 : vector<8xf32> to vector<8x1xf32>
    %223 = vector.broadcast %222 : vector<8x1xf32> to vector<8x8xf32>
    %224 = arith.subf %220, %223 : vector<8x8xf32>
    %225 = math.exp %224 : vector<8x8xf32>
    %cst_82 = arith.constant dense<0.000000e+00> : vector<8xf32>
    %226 = vector.multi_reduction <add>, %225, %cst_82 [1] : vector<8x8xf32> to vector<8xf32>
    %227 = vector.shape_cast %226 : vector<8xf32> to vector<8x1xf32>
    %228 = vector.broadcast %227 : vector<8x1xf32> to vector<8x8xf32>
    %229 = arith.divf %225, %228 : vector<8x8xf32>
    %c0_83 = arith.constant 0 : index
    %c1 = arith.constant 1 : index
    %c0_84 = arith.constant 0 : index
    %c0_85 = arith.constant 0 : index
    %230 = vector.load %arg26[%c0_83, %c1, %c0_84, %c0_85] : memref<1x4x8x8xf32, #tpu.memory_space<vmem>>, vector<1x1x8x8xf32>
    %231 = vector.shape_cast %230 : vector<1x1x8x8xf32> to vector<8x8xf32>
    %232 = vector.shape_cast %229 : vector<8x8xf32> to vector<1x1x8x8xf32>
    tpu.vector_store %arg26[%c0_83, %c1, %c0_84, %c0_85], %232 {strides = array<i32>} : memref<1x4x8x8xf32, #tpu.memory_space<vmem>>, vector<1x1x8x8xf32>,
    %233 = arith.truncf %229 : vector<8x8xf32> to vector<8x8xbf16>
    %cst_86 = arith.constant dense<0.000000e+00> : vector<8x8xf32>
    %234 = tpu.matmul %233, %217, %cst_86 {dimension_numbers = #tpu.dot_dimension_numbers<[1], [0], [0], [1], [0, 0, 1, 1], [], []>} : vector<8x8xbf16>, vector<8x8xbf16>, vector<8x8xf32> -> vector<8x8xf32>
    %235 = vector.extract_strided_slice %176 {offsets = [0, 16], sizes = [8, 8], strides = [1, 1]} : vector<8x32xf32> to vector<8x8xf32>
    %cst_87 = arith.constant 0.353553385 : f32
    %236 = vector.broadcast %cst_87 : f32 to vector<8x8xf32>
    %237 = arith.mulf %235, %236 : vector<8x8xf32>
    %238 = arith.truncf %237 : vector<8x8xf32> to vector<8x8xbf16>
    %239 = vector.extract_strided_slice %183 {offsets = [0, 16], sizes = [8, 8], strides = [1, 1]} : vector<8x32xf32> to vector<8x8xf32>
    %240 = arith.truncf %239 : vector<8x8xf32> to vector<8x8xbf16>
    %241 = vector.extract_strided_slice %184 {offsets = [0, 16], sizes = [8, 8], strides = [1, 1]} : vector<8x32xf32> to vector<8x8xf32>
    %242 = arith.truncf %241 : vector<8x8xf32> to vector<8x8xbf16>
    %cst_88 = arith.constant dense<0.000000e+00> : vector<8x8xf32>
    %243 = tpu.matmul %238, %240, %cst_88 {dimension_numbers = #tpu.dot_dimension_numbers<[1], [1], [0], [0], [0, 0, 1, 0], [], []>} : vector<8x8xbf16>, vector<8x8xbf16>, vector<8x8xf32> -> vector<8x8xf32>
    %244 = vector.broadcast %146 : vector<1x8xf32> to vector<8x8xf32>
    %245 = arith.addf %243, %244 : vector<8x8xf32>
    %cst_89 = arith.constant dense<0xFF800000> : vector<8xf32>
    %246 = vector.multi_reduction <maximumf>, %245, %cst_89 [1] : vector<8x8xf32> to vector<8xf32>
    %247 = vector.shape_cast %246 : vector<8xf32> to vector<8x1xf32>
    %248 = vector.broadcast %247 : vector<8x1xf32> to vector<8x8xf32>
    %249 = arith.subf %245, %248 : vector<8x8xf32>
    %250 = math.exp %249 : vector<8x8xf32>
    %cst_90 = arith.constant dense<0.000000e+00> : vector<8xf32>
    %251 = vector.multi_reduction <add>, %250, %cst_90 [1] : vector<8x8xf32> to vector<8xf32>
    %252 = vector.shape_cast %251 : vector<8xf32> to vector<8x1xf32>
    %253 = vector.broadcast %252 : vector<8x1xf32> to vector<8x8xf32>
    %254 = arith.divf %250, %253 : vector<8x8xf32>
    %c0_91 = arith.constant 0 : index
    %c2 = arith.constant 2 : index
    %c0_92 = arith.constant 0 : index
    %c0_93 = arith.constant 0 : index
    %255 = vector.load %arg26[%c0_91, %c2, %c0_92, %c0_93] : memref<1x4x8x8xf32, #tpu.memory_space<vmem>>, vector<1x1x8x8xf32>
    %256 = vector.shape_cast %255 : vector<1x1x8x8xf32> to vector<8x8xf32>
    %257 = vector.shape_cast %254 : vector<8x8xf32> to vector<1x1x8x8xf32>
    tpu.vector_store %arg26[%c0_91, %c2, %c0_92, %c0_93], %257 {strides = array<i32>} : memref<1x4x8x8xf32, #tpu.memory_space<vmem>>, vector<1x1x8x8xf32>,
    %258 = arith.truncf %254 : vector<8x8xf32> to vector<8x8xbf16>
    %cst_94 = arith.constant dense<0.000000e+00> : vector<8x8xf32>
    %259 = tpu.matmul %258, %242, %cst_94 {dimension_numbers = #tpu.dot_dimension_numbers<[1], [0], [0], [1], [0, 0, 1, 1], [], []>} : vector<8x8xbf16>, vector<8x8xbf16>, vector<8x8xf32> -> vector<8x8xf32>
    %260 = vector.extract_strided_slice %176 {offsets = [0, 24], sizes = [8, 8], strides = [1, 1]} : vector<8x32xf32> to vector<8x8xf32>
    %cst_95 = arith.constant 0.353553385 : f32
    %261 = vector.broadcast %cst_95 : f32 to vector<8x8xf32>
    %262 = arith.mulf %260, %261 : vector<8x8xf32>
    %263 = arith.truncf %262 : vector<8x8xf32> to vector<8x8xbf16>
    %264 = vector.extract_strided_slice %183 {offsets = [0, 24], sizes = [8, 8], strides = [1, 1]} : vector<8x32xf32> to vector<8x8xf32>
    %265 = arith.truncf %264 : vector<8x8xf32> to vector<8x8xbf16>
    %266 = vector.extract_strided_slice %184 {offsets = [0, 24], sizes = [8, 8], strides = [1, 1]} : vector<8x32xf32> to vector<8x8xf32>
    %267 = arith.truncf %266 : vector<8x8xf32> to vector<8x8xbf16>
    %cst_96 = arith.constant dense<0.000000e+00> : vector<8x8xf32>
    %268 = tpu.matmul %263, %265, %cst_96 {dimension_numbers = #tpu.dot_dimension_numbers<[1], [1], [0], [0], [0, 0, 1, 0], [], []>} : vector<8x8xbf16>, vector<8x8xbf16>, vector<8x8xf32> -> vector<8x8xf32>
    %269 = vector.broadcast %146 : vector<1x8xf32> to vector<8x8xf32>
    %270 = arith.addf %268, %269 : vector<8x8xf32>
    %cst_97 = arith.constant dense<0xFF800000> : vector<8xf32>
    %271 = vector.multi_reduction <maximumf>, %270, %cst_97 [1] : vector<8x8xf32> to vector<8xf32>
    %272 = vector.shape_cast %271 : vector<8xf32> to vector<8x1xf32>
    %273 = vector.broadcast %272 : vector<8x1xf32> to vector<8x8xf32>
    %274 = arith.subf %270, %273 : vector<8x8xf32>
    %275 = math.exp %274 : vector<8x8xf32>
    %cst_98 = arith.constant dense<0.000000e+00> : vector<8xf32>
    %276 = vector.multi_reduction <add>, %275, %cst_98 [1] : vector<8x8xf32> to vector<8xf32>
    %277 = vector.shape_cast %276 : vector<8xf32> to vector<8x1xf32>
    %278 = vector.broadcast %277 : vector<8x1xf32> to vector<8x8xf32>
    %279 = arith.divf %275, %278 : vector<8x8xf32>
    %c0_99 = arith.constant 0 : index
    %c3 = arith.constant 3 : index
    %c0_100 = arith.constant 0 : index
    %c0_101 = arith.constant 0 : index
    %280 = vector.load %arg26[%c0_99, %c3, %c0_100, %c0_101] : memref<1x4x8x8xf32, #tpu.memory_space<vmem>>, vector<1x1x8x8xf32>
    %281 = vector.shape_cast %280 : vector<1x1x8x8xf32> to vector<8x8xf32>
    %282 = vector.shape_cast %279 : vector<8x8xf32> to vector<1x1x8x8xf32>
    tpu.vector_store %arg26[%c0_99, %c3, %c0_100, %c0_101], %282 {strides = array<i32>} : memref<1x4x8x8xf32, #tpu.memory_space<vmem>>, vector<1x1x8x8xf32>,
    %283 = arith.truncf %279 : vector<8x8xf32> to vector<8x8xbf16>
    %cst_102 = arith.constant dense<0.000000e+00> : vector<8x8xf32>
    %284 = tpu.matmul %283, %267, %cst_102 {dimension_numbers = #tpu.dot_dimension_numbers<[1], [0], [0], [1], [0, 0, 1, 1], [], []>} : vector<8x8xbf16>, vector<8x8xbf16>, vector<8x8xf32> -> vector<8x8xf32>
    %285 = tpu.concatenate %209, %234, %259, %284 in 1 : vector<8x8xf32>, vector<8x8xf32>, vector<8x8xf32>, vector<8x8xf32> -> vector<8x32xf32>
    %286 = arith.truncf %285 : vector<8x32xf32> to vector<8x32xbf16>
    %c0_103 = arith.constant 0 : index
    %c0_104 = arith.constant 0 : index
    %287 = vector.load %arg17[%c0_103, %c0_104] : memref<32x32xbf16, #tpu.memory_space<vmem>>, vector<32x32xbf16>
    %cst_105 = arith.constant dense<0.000000e+00> : vector<8x32xf32>
    %288 = tpu.matmul %286, %287, %cst_105 {dimension_numbers = #tpu.dot_dimension_numbers<[1], [0], [0], [1], [0, 0, 1, 1], [], []>} : vector<8x32xbf16>, vector<32x32xbf16>, vector<8x32xf32> -> vector<8x32xf32>
    %c0_106 = arith.constant 0 : index
    %c0_107 = arith.constant 0 : index
    %289 = vector.load %arg18[%c0_106, %c0_107] : memref<1x32xf32, #tpu.memory_space<vmem>>, vector<1x32xf32>
    %290 = vector.broadcast %289 : vector<1x32xf32> to vector<8x32xf32>
    %291 = arith.addf %288, %290 : vector<8x32xf32>
    %292 = arith.addf %144, %291 : vector<8x32xf32>
    %c0_108 = arith.constant 0 : index
    %c0_109 = arith.constant 0 : index
    %293 = vector.load %arg19[%c0_108, %c0_109] : memref<1x32xf32, #tpu.memory_space<vmem>>, vector<1x32xf32>
    %c0_110 = arith.constant 0 : index
    %c0_111 = arith.constant 0 : index
    %294 = vector.load %arg20[%c0_110, %c0_111] : memref<1x32xf32, #tpu.memory_space<vmem>>, vector<1x32xf32>
    %cst_112 = arith.constant dense<0.000000e+00> : vector<8xf32>
    %295 = vector.multi_reduction <add>, %292, %cst_112 [1] : vector<8x32xf32> to vector<8xf32>
    %296 = vector.shape_cast %295 : vector<8xf32> to vector<8x1xf32>
    %cst_113 = arith.constant 3.200000e+01 : f32
    %297 = vector.broadcast %cst_113 : f32 to vector<8x1xf32>
    %298 = arith.divf %296, %297 : vector<8x1xf32>
    %299 = vector.broadcast %298 : vector<8x1xf32> to vector<8x32xf32>
    %300 = arith.subf %292, %299 : vector<8x32xf32>
    %301 = arith.mulf %300, %300 : vector<8x32xf32>
    %cst_114 = arith.constant dense<0.000000e+00> : vector<8xf32>
    %302 = vector.multi_reduction <add>, %301, %cst_114 [1] : vector<8x32xf32> to vector<8xf32>
    %303 = vector.shape_cast %302 : vector<8xf32> to vector<8x1xf32>
    %cst_115 = arith.constant 3.200000e+01 : f32
    %304 = vector.broadcast %cst_115 : f32 to vector<8x1xf32>
    %305 = arith.divf %303, %304 : vector<8x1xf32>
    %306 = vector.broadcast %298 : vector<8x1xf32> to vector<8x32xf32>
    %307 = arith.subf %292, %306 : vector<8x32xf32>
    %cst_116 = arith.constant 9.99999974E-6 : f32
    %308 = vector.broadcast %cst_116 : f32 to vector<8x1xf32>
    %309 = arith.addf %305, %308 : vector<8x1xf32>
    %310 = math.rsqrt %309 : vector<8x1xf32>
    %311 = vector.broadcast %310 : vector<8x1xf32> to vector<8x32xf32>
    %312 = arith.mulf %307, %311 : vector<8x32xf32>
    %313 = vector.broadcast %293 : vector<1x32xf32> to vector<8x32xf32>
    %314 = arith.mulf %312, %313 : vector<8x32xf32>
    %315 = vector.broadcast %294 : vector<1x32xf32> to vector<8x32xf32>
    %316 = arith.addf %314, %315 : vector<8x32xf32>
    %317 = arith.truncf %316 : vector<8x32xf32> to vector<8x32xbf16>
    %c0_117 = arith.constant 0 : index
    %c0_118 = arith.constant 0 : index
    %318 = vector.load %arg21[%c0_117, %c0_118] : memref<32x64xbf16, #tpu.memory_space<vmem>>, vector<32x64xbf16>
    %cst_119 = arith.constant dense<0.000000e+00> : vector<8x64xf32>
    %319 = tpu.matmul %317, %318, %cst_119 {dimension_numbers = #tpu.dot_dimension_numbers<[1], [0], [0], [1], [0, 0, 1, 1], [], []>} : vector<8x32xbf16>, vector<32x64xbf16>, vector<8x64xf32> -> vector<8x64xf32>
    %c0_120 = arith.constant 0 : index
    %c0_121 = arith.constant 0 : index
    %320 = vector.load %arg22[%c0_120, %c0_121] : memref<1x64xf32, #tpu.memory_space<vmem>>, vector<1x64xf32>
    %321 = vector.broadcast %320 : vector<1x64xf32> to vector<8x64xf32>
    %322 = arith.addf %319, %321 : vector<8x64xf32>
    %cst_122 = arith.constant 0.000000e+00 : f32
    %323 = vector.broadcast %cst_122 : f32 to vector<8x64xf32>
    %324 = arith.maximumf %322, %323 : vector<8x64xf32>
    %325 = arith.truncf %324 : vector<8x64xf32> to vector<8x64xbf16>
    %c0_123 = arith.constant 0 : index
    %c0_124 = arith.constant 0 : index
    %326 = vector.load %arg23[%c0_123, %c0_124] : memref<64x32xbf16, #tpu.memory_space<vmem>>, vector<64x32xbf16>
    %cst_125 = arith.constant dense<0.000000e+00> : vector<8x32xf32>
    %327 = tpu.matmul %325, %326, %cst_125 {dimension_numbers = #tpu.dot_dimension_numbers<[1], [0], [0], [1], [0, 0, 1, 1], [], []>} : vector<8x64xbf16>, vector<64x32xbf16>, vector<8x32xf32> -> vector<8x32xf32>
    %328 = arith.addf %292, %327 : vector<8x32xf32>
    %c0_126 = arith.constant 0 : index
    %c0_127 = arith.constant 0 : index
    %329 = vector.load %arg24[%c0_126, %c0_127] : memref<1x32xf32, #tpu.memory_space<vmem>>, vector<1x32xf32>
    %330 = vector.broadcast %329 : vector<1x32xf32> to vector<8x32xf32>
    %331 = arith.addf %328, %330 : vector<8x32xf32>
    %332 = arith.truncf %331 : vector<8x32xf32> to vector<8x32xbf16>
    %c0_128 = arith.constant 0 : index
    %c0_129 = arith.constant 0 : index
    %c0_130 = arith.constant 0 : index
    %333 = vector.load %arg25[%c0_128, %c0_129, %c0_130] : memref<1x8x32xbf16, #tpu.memory_space<vmem>>, vector<1x8x32xbf16>
    %334 = vector.shape_cast %333 : vector<1x8x32xbf16> to vector<8x32xbf16>
    %335 = vector.shape_cast %332 : vector<8x32xbf16> to vector<1x8x32xbf16>
    tpu.vector_store %arg25[%c0_128, %c0_129, %c0_130], %335 {strides = array<i32>} : memref<1x8x32xbf16, #tpu.memory_space<vmem>>, vector<1x8x32xbf16>,
    return
  }
  func.func @transform_0(%arg0: i32) -> (i32, i32, i32) {
    %c0_i32 = arith.constant 0 : i32
    %c0_i32_0 = arith.constant 0 : i32
    %c0_i32_1 = arith.constant 0 : i32
    return %arg0, %c0_i32, %c0_i32_0 : i32, i32, i32
  }
  func.func @transform_1(%arg0: i32) -> (i32, i32, i32) {
    %c0_i32 = arith.constant 0 : i32
    %c0_i32_0 = arith.constant 0 : i32
    %c0_i32_1 = arith.constant 0 : i32
    return %arg0, %c0_i32, %c0_i32_0 : i32, i32, i32
  }
  func.func @transform_2(%arg0: i32) -> (i32, i32, i32) {
    %c0_i32 = arith.constant 0 : i32
    %c0_i32_0 = arith.constant 0 : i32
    %c0_i32_1 = arith.constant 0 : i32
    return %arg0, %c0_i32, %c0_i32_0 : i32, i32, i32
  }
  func.func @transform_3(%arg0: i32) -> (i32, i32, i32) {
    %c0_i32 = arith.constant 0 : i32
    %c0_i32_0 = arith.constant 0 : i32
    %c0_i32_1 = arith.constant 0 : i32
    return %arg0, %c0_i32, %c0_i32_0 : i32, i32, i32
  }
  func.func @transform_4(%arg0: i32) -> (i32, i32) {
    %c0_i32 = arith.constant 0 : i32
    %c0_i32_0 = arith.constant 0 : i32
    %c0_i32_1 = arith.constant 0 : i32
    return %c0_i32, %c0_i32_0 : i32, i32
  }
  func.func @transform_5(%arg0: i32) -> (i32, i32) {
    %c0_i32 = arith.constant 0 : i32
    %c0_i32_0 = arith.constant 0 : i32
    %c0_i32_1 = arith.constant 0 : i32
    return %c0_i32, %c0_i32_0 : i32, i32
  }
  func.func @transform_6(%arg0: i32) -> (i32, i32) {
    %c0_i32 = arith.constant 0 : i32
    %c0_i32_0 = arith.constant 0 : i32
    %c0_i32_1 = arith.constant 0 : i32
    return %c0_i32, %c0_i32_0 : i32, i32
  }
  func.func @transform_7(%arg0: i32) -> (i32, i32) {
    %c0_i32 = arith.constant 0 : i32
    %c0_i32_0 = arith.constant 0 : i32
    %c0_i32_1 = arith.constant 0 : i32
    return %c0_i32, %c0_i32_0 : i32, i32
  }
  func.func @transform_8(%arg0: i32) -> (i32, i32) {
    %c0_i32 = arith.constant 0 : i32
    %c0_i32_0 = arith.constant 0 : i32
    %c0_i32_1 = arith.constant 0 : i32
    return %c0_i32, %c0_i32_0 : i32, i32
  }
  func.func @transform_9(%arg0: i32) -> (i32, i32) {
    %c0_i32 = arith.constant 0 : i32
    %c0_i32_0 = arith.constant 0 : i32
    %c0_i32_1 = arith.constant 0 : i32
    return %c0_i32, %c0_i32_0 : i32, i32
  }
  func.func @transform_10(%arg0: i32) -> (i32, i32) {
    %c0_i32 = arith.constant 0 : i32
    %c0_i32_0 = arith.constant 0 : i32
    %c0_i32_1 = arith.constant 0 : i32
    return %c0_i32, %c0_i32_0 : i32, i32
  }
  func.func @transform_11(%arg0: i32) -> (i32, i32) {
    %c0_i32 = arith.constant 0 : i32
    %c0_i32_0 = arith.constant 0 : i32
    %c0_i32_1 = arith.constant 0 : i32
    return %c0_i32, %c0_i32_0 : i32, i32
  }
  func.func @transform_12(%arg0: i32) -> (i32, i32) {
    %c0_i32 = arith.constant 0 : i32
    %c0_i32_0 = arith.constant 0 : i32
    %c0_i32_1 = arith.constant 0 : i32
    return %c0_i32, %c0_i32_0 : i32, i32
  }
  func.func @transform_13(%arg0: i32) -> (i32, i32) {
    %c0_i32 = arith.constant 0 : i32
    %c0_i32_0 = arith.constant 0 : i32
    %c0_i32_1 = arith.constant 0 : i32
    return %c0_i32, %c0_i32_0 : i32, i32
  }
  func.func @transform_14(%arg0: i32) -> (i32, i32) {
    %c0_i32 = arith.constant 0 : i32
    %c0_i32_0 = arith.constant 0 : i32
    %c0_i32_1 = arith.constant 0 : i32
    return %c0_i32, %c0_i32_0 : i32, i32
  }
  func.func @transform_15(%arg0: i32) -> (i32, i32) {
    %c0_i32 = arith.constant 0 : i32
    %c0_i32_0 = arith.constant 0 : i32
    %c0_i32_1 = arith.constant 0 : i32
    return %c0_i32, %c0_i32_0 : i32, i32
  }
  func.func @transform_16(%arg0: i32) -> (i32, i32) {
    %c0_i32 = arith.constant 0 : i32
    %c0_i32_0 = arith.constant 0 : i32
    %c0_i32_1 = arith.constant 0 : i32
    return %c0_i32, %c0_i32_0 : i32, i32
  }
  func.func @transform_17(%arg0: i32) -> (i32, i32) {
    %c0_i32 = arith.constant 0 : i32
    %c0_i32_0 = arith.constant 0 : i32
    %c0_i32_1 = arith.constant 0 : i32
    return %c0_i32, %c0_i32_0 : i32, i32
  }
  func.func @transform_18(%arg0: i32) -> (i32, i32) {
    %c0_i32 = arith.constant 0 : i32
    %c0_i32_0 = arith.constant 0 : i32
    %c0_i32_1 = arith.constant 0 : i32
    return %c0_i32, %c0_i32_0 : i32, i32
  }
  func.func @transform_19(%arg0: i32) -> (i32, i32) {
    %c0_i32 = arith.constant 0 : i32
    %c0_i32_0 = arith.constant 0 : i32
    %c0_i32_1 = arith.constant 0 : i32
    return %c0_i32, %c0_i32_0 : i32, i32
  }
  func.func @transform_20(%arg0: i32) -> (i32, i32) {
    %c0_i32 = arith.constant 0 : i32
    %c0_i32_0 = arith.constant 0 : i32
    %c0_i32_1 = arith.constant 0 : i32
    return %c0_i32, %c0_i32_0 : i32, i32
  }
  func.func @transform_21(%arg0: i32) -> (i32, i32) {
    %c0_i32 = arith.constant 0 : i32
    %c0_i32_0 = arith.constant 0 : i32
    %c0_i32_1 = arith.constant 0 : i32
    return %c0_i32, %c0_i32_0 : i32, i32
  }
  func.func @transform_22(%arg0: i32) -> (i32, i32) {
    %c0_i32 = arith.constant 0 : i32
    %c0_i32_0 = arith.constant 0 : i32
    %c0_i32_1 = arith.constant 0 : i32
    return %c0_i32, %c0_i32_0 : i32, i32
  }
  func.func @transform_23(%arg0: i32) -> (i32, i32) {
    %c0_i32 = arith.constant 0 : i32
    %c0_i32_0 = arith.constant 0 : i32
    %c0_i32_1 = arith.constant 0 : i32
    return %c0_i32, %c0_i32_0 : i32, i32
  }
  func.func @transform_24(%arg0: i32) -> (i32, i32, i32) {
    %c0_i32 = arith.constant 0 : i32
    %c0_i32_0 = arith.constant 0 : i32
    %c0_i32_1 = arith.constant 0 : i32
    return %arg0, %c0_i32, %c0_i32_0 : i32, i32, i32
  }
  func.func @transform_25(%arg0: i32) -> (i32, i32, i32, i32) {
    %c0_i32 = arith.constant 0 : i32
    %c0_i32_0 = arith.constant 0 : i32
    %c0_i32_1 = arith.constant 0 : i32
    %c0_i32_2 = arith.constant 0 : i32
    return %arg0, %c0_i32, %c0_i32_0, %c0_i32_1 : i32, i32, i32, i32
  }
}

</mosaic_0001>

<bundles_post_ra>
// kernel: transformer_forward.9
= control target key start
LH: loop header
LB: loop body
LE: loop exit
PB: predicated region body
PF: predicated region fallthrough
CT: control target
= control target key end

     0   :  { %8 = vsyncpa [#allocation3], 0  ;;  %s730_s0 = inlined_call_operand.vmem [shape: bf16[2,8,32], index: 0, kind: input, shape index: {}]   ;;  %s731_s1 = inlined_call_operand.vmem [shape: bf16[32,128], index: 1, kind: input, shape index: {}]   ;;  %s732_s2 = inlined_call_operand.vmem [shape: f32[1,128], index: 2, kind: input, shape index: {}]   ;;  %s733_s3 = inlined_call_operand.hbm [shape: f32[2,8,128], index: 3, kind: output, shape index: {}]  }
   0x1   :  { %10 = vsyncpa [#allocation3 + $0x1], 0  ;;  %s609_s12 = smov 0   ;;  %s611_s13 = smov 0  }
   0x2   :  { %s613_s14 = smov 0   ;;  %s615_s15 = smov 0  }
   0x3   :  { %s617_s16 = smov 0   ;;  %s619_s17 = smov 0  }
   0x4 LB: > { %s419_s18 = sadd.s32 4294967295, %s584_s17   ;;  %s420_s19 = sadd.s32 4294967294, %s584_s17   ;;  %s584_s17 = sphi %s619_s17, %s16_s17   ;;  %s580_s16 = sphi %s617_s16, %s740_s16   ;;  %s576_s15 = sphi %s615_s15, %s739_s15   ;;  %s572_s14 = sphi %s613_s14, %s738_s14   ;;  %s568_s13 = sphi %s611_s13, %s737_s13   ;;  %s564_s12 = sphi %s609_s12, %s736_s12  }
   0x5   : > { %s35_s20 = sadd.s32 1, %s580_s16  ;;  %s126_s21 = sadd.s32 1, %s572_s14 }
   0x6   : > { %p37_p0 = scmp.ge.s32.totalorder %s35_s20, 2  ;;  %p136_p1 = scmp.ne.s32.totalorder %s572_s14, %s568_s13 }
   0x7   : > { %p137_p2 = scmp.eq.s32.totalorder %s419_s18, 1  ;;  %p142_p3 = scmp.ne.s32.totalorder %s568_s13, %s564_s12 }
   0x8   : > { %s742_s20 = smov (%p37_p0, %s35_s20), 0  ;;  %p143_p5 = scmp.eq.s32.totalorder %s420_s19, 1 }
   0x9   : > { %p649_p4 = por %p137_p2, %p136_p1  ;;  %s119_s23 = ssub.s32 %s580_s16, %s742_s20 }
   0xa   : > { %p425_p6 = scmp.ge.s32.totalorder %s584_s17, 1  ;;  %p124_p7 = scmp.eq.s32.totalorder %s119_s23, 0 }
   0xb   : > { %p656_p8 = por %p143_p5, %p142_p3  ;;  %p184_p9 = scmp.lt.s32.totalorder %s584_s17, 3 }
   0xc   : > { %s662_s25 = scalar_select %p124_p7, %s572_s14, %s126_s21  }
   0xd   : > { %p185_p10 = pnand %p425_p6, %p184_p9 }
   0xe   : > { %v504_v0 = vld [vmem:[%s731_s1] sm:$0xff] (!%p185_p10)   ;;  %v586_v1 = vmov (!%p185_p10), 0.0   ;;  %v505_v2 = vld [vmem:[%s731_s1 + $0x8] sm:$0xff] (!%p185_p10)   ;;  %vm587_vm0 = vmmov (!%p185_p10), 0   ;;  %p217_p11 = scmp.lt.s32.totalorder (!%p185_p10), %s576_s15, 1  ;;  %vm256_vm1 = vcmask (!%p185_p10), 261120  }
   0xf   : > { %188 = sbr.rel (%p185_p10) target bundleno = 255 (0xff), region = 32  ;;  %439 = vmatprep.subr.bf16.mxu0 (!%p185_p10), %v586_v1  ;;  %443 = vmatprep.mubr.msk.bf16.mxu0 (!%p185_p10), %vm587_vm0, %v586_v1  ;;  %s214_s8 = sand.u32 (!%p185_p10), 1, %s568_s13   ;;  %v428_v4 = vld [vmem:[%s732_s2] ss:$0 sm:$0xff] (!%p185_p10) }
  0x10   : > { %440 = vmatpush3.bf16.msra.mxu0 (!%p185_p10), %v504_v0  ;;  %s426_s9 = sshll.u32 (!%p185_p10), %s214_s8, 3  ;;  %s433_s18 = sshll.u32 (!%p185_p10), %s576_s15, 7 }
  0x11   : > { %441 = vmatprep.subr.bf16.mxu0 (!%p185_p10), %v586_v1  ;;  %s216_s19 = scalar_lea.vmem (!%p185_p10), [#allocation2], %s426_s9  ;;  %s683_s27 = scalar_lea.hbm (!%p185_p10), %s733_s3, %s433_s18 }
  0x12   : > { %s317_s21 = sshll.u32 (!%p185_p10), %s216_s19, 4  ;;  %s302_s28 = scalar_lea.sflag (!%p185_p10), [#allocation3], %s214_s8  ;;  %s685_s21 = int_to_ptr.vmem [resolvable:$true] %s317_s21 }
  0x13   : > { %s588_s29 = smov (!%p185_p10), [#allocation2]  }
  0x14   : > { %442 = vmatpush3.bf16.msra.mxu0 (!%p185_p10), %v505_v2 }
  0x16   : > { %s218_s30 = scalar_select %p217_p11, %s576_s15, 1 }
  0x17   : > { %s506_s15 = scalar_lea.vmem %s685_s21, 128 }
  0x18   : > { %s427_s4 = sshll.u32 %s218_s30, 2  ;;  %p507_p12 = scmp.ne.s32.totalorder %s685_s21, %s506_s15 }
  0x19   : > { %s223_s7 = scalar_lea.vmem %s730_s0, %s427_s4  ;;  %s510_s30 = sshll.u32 %s588_s29, 4  ;;  %s511_s30 = int_to_ptr.vmem [resolvable:$false] %s510_s30 }
  0x1a   : > { %v232_v3 = vld [vmem:[%s223_s7] sm:$0xf]  ;;  %p508_p13 = pnand %p507_p12, %p649_p4  ;;  %s512_s4 = scalar_lea.vmem %s511_s30, 256 }
  0x1b   : > { %444 = vmatmul.mubr.msk.bf16.vlgmr.msra.gmra.mrb[0].mxu0 %vm256_vm1, %v232_v3  ;;  %p513_p1 = scmp.lt.s32.totalorder %s685_s21, %s511_s30  ;;  %p514_p2 = scmp.lt.s32.totalorder %s512_s4, %s506_s15 }
  0x1c   : > { %p509_p0 = pneg %p508_p13 }
  0x1d   : > { %p515_p3 = por %p514_p2, %p513_p1 }
  0x1f   : > { %p516_p5 = pnand %p515_p3, %p509_p0 }
  0xee   : > { %v294_v5 = vpop.f32.mrb[0].mxu0 }
  0xef   : > { %v295_v6 = vadd.f32 %v428_v4, %v294_v5  ;;  %v445_v7 = vpop.f32.mrb[1].mxu0 }
  0xf0   : > { %v297_v8 = vpop.f32.mrb[2].mxu0 }
  0xf1   : > { %300 = vst [vmem:[%s216_s19] sm:$0xff] %v295_v6  ;;  %v446_v9 = vpop.f32.mrb[3].mxu0 }
  0xf2   : > { %519 = shalt.err (!%p516_p5)
}
  0xf3   : > { %s520_s5 = scalar_lea.hbm %s683_s27, 128  ;;  %s524_s8 = scalar_lea.hbm %s733_s3, 256 }
  0xf4   : > { %p521_p6 = scmp.ne.s32.totalorder %s683_s27, %s520_s5  ;;  %p525_p10 = scmp.lt.u32.totalorder %s683_s27, %s733_s3 }
  0xf5   : > { %p526_p11 = scmp.lt.u32.totalorder %s524_s8, %s520_s5  ;;  %p528_p13 = scmp.lt.u32.totalorder %s520_s5, %s683_s27 }
  0xf6   : > { %p522_p7 = pnand %p521_p6, %p649_p4 }
  0xf7   : > { %p527_p12 = por %p526_p11, %p525_p10 }
  0xf8   : > { %p523_p9 = pneg %p522_p7 }
  0xf9   : > { %p529_p0 = por %p528_p13, %p527_p12 }
  0xfb   : > { %p530_p1 = pnand %p529_p0, %p523_p9 }
  0xfd   : > { %533 = shalt.err (!%p530_p1)
}
  0xfe   : > { %447 = dma.vmem_to_hbm [thread:$0]  (%p649_p4), %s685_s21, 128, %s683_s27, %s302_s28  }
  0xff PF: > { %p453_p2 = scmp.ge.s32.totalorder %s584_s17, 2  ;;  %s329_s11 = sand.u32 1, %s564_s12  }
 0x100   : > { %s330_s18 = scalar_lea.sflag [#allocation3], %s329_s11 }
 0x101   : > { %p450_p3 = pnand %p453_p2, %p656_p8 }
 0x103   : > { %559 = dma.done.wait (!%p450_p3), %s330_s18, 128  }
 0x104   : > { %561 = vsyncadd (!%p450_p3), %s330_s18, 4294967168  ;;  %s16_s17 = sadd.s32 1, %s584_s17   ;;  %s736_s12 = smov %s568_s13 }
 0x105   : > { %p13_p5 = scmp.ge.s32.totalorder %s16_s17, 4   ;;  %s737_s13 = smov %s572_s14 }
 0x106   : > { %s738_s14 = smov %s662_s25  ;;  %s739_s15 = smov %s580_s16 }
 0x107   : > { %s740_s16 = smov %s742_s20  ;;  %15 = sbr.rel (!%p13_p5) target bundleno = 4 (0x4), region = 73 }
 0x10e   :  { %335 = vsyncpa [#allocation3], 1 }
 0x10f   :  { %337 = vsyncpa [#allocation3 + $0x1], 1 }

// kernel: transformer_forward.5
= control target key start
LH: loop header
LB: loop body
LE: loop exit
PB: predicated region body
PF: predicated region fallthrough
CT: control target
= control target key end

     0   :  { %s1670_s29 = smov 0   ;;  %s1841_s0 = inlined_call_operand.vmem [shape: bf16[2,8,32], index: 0, kind: input, shape index: {}]   ;;  %s1842_s1 = inlined_call_operand.vmem [shape: f32[2,1,8], index: 1, kind: input, shape index: {}]   ;;  %s1843_s2 = inlined_call_operand.vmem [shape: f32[1,32], index: 2, kind: input, shape index: {}]   ;;  %s1844_s3 = inlined_call_operand.vmem [shape: f32[1,32], index: 3, kind: input, shape index: {}]   ;;  %s1845_s4 = inlined_call_operand.vmem [shape: bf16[32,96], index: 4, kind: input, shape index: {}]   ;;  %s1846_s5 = inlined_call_operand.vmem [shape: f32[1,96], index: 5, kind: input, shape index: {}]   ;;  %s1847_s6 = inlined_call_operand.vmem [shape: bf16[32,32], index: 6, kind: input, shape index: {}]   ;;  %s1848_s7 = inlined_call_operand.vmem [shape: f32[1,32], index: 7, kind: input, shape index: {}]   ;;  %s1849_s8 = inlined_call_operand.vmem [shape: f32[1,32], index: 8, kind: input, shape index: {}]   ;;  %s1850_s9 = inlined_call_operand.vmem [shape: f32[1,32], index: 9, kind: input, shape index: {}]   ;;  %s1851_s10 = inlined_call_operand.vmem [shape: bf16[32,64], index: 10, kind: input, shape index: {}]   ;;  %s1852_s11 = inlined_call_operand.vmem [shape: f32[1,64], index: 11, kind: input, shape index: {}]   ;;  %s1853_s12 = inlined_call_operand.vmem [shape: bf16[64,32], index: 12, kind: input, shape index: {}]   ;;  %s1854_s13 = inlined_call_operand.vmem [shape: f32[1,32], index: 13, kind: input, shape index: {}]   ;;  %s1855_s14 = inlined_call_operand.vmem [shape: bf16[2,8,32], index: 14, kind: output, shape index: {}]  }
   0x1 LB: > { %s1363_s30 = sadd.s32 4294967295, %s1577_s29   ;;  %p1367_p0 = scmp.ge.s32.totalorder %s1577_s29, 1  ;;  %s1577_s29 = sphi %s1670_s29, %s24_s29  }
   0x2   : > { %p419_p1 = scmp.lt.s32.totalorder %s1577_s29, 3 }
   0x4   : > { %p420_p2 = pnand %p1367_p0, %p419_p1 }
   0x5   : > { %p466_p3 = scmp.lt.s32.totalorder (!%p420_p2), %s1363_s30, 1  ;;  %vm483_vm0 = vcmask (!%p420_p2), 261120   ;;  %v1541_v8 = vld [vmem:[%s1845_s4] sm:$0xff] (!%p420_p2)   ;;  %v1579_v9 = vmov (!%p420_p2), 0.0   ;;  %vm1580_vm1 = vmmov (!%p420_p2), 0   ;;  %v1542_v10 = vld [vmem:[%s1845_s4 + $0x8] sm:$0xff] (!%p420_p2)  }
   0x6   : > { %423 = sbr.rel (%p420_p2) target bundleno = 2562 (0xa02), region = 76  ;;  %1433 = vmatprep.subr.bf16.mxu0 (!%p420_p2), %v1579_v9  ;;  %1437 = vmatprep.mubr.msk.bf16.mxu0 (!%p420_p2), %vm1580_vm1, %v1579_v9  ;;  %v1370_v15 = vld [vmem:[%s1843_s2] ss:$0 sm:$0xff] (!%p420_p2)  ;;  %s1581_s16 = smov (!%p420_p2), 96   ;;  %vm591_vm2 = vcmask (!%p420_p2), 64512   ;;  %vm655_vm3 = vcmask (!%p420_p2), 1043456  }
   0x7   : > { %1434 = vmatpush3.bf16.msra.mxu0 (!%p420_p2), %v1541_v8  ;;  %1441 = vmatprep.subr.bf16.mxu1 (!%p420_p2), %v1579_v9  ;;  %v1371_v17 = vld [vmem:[%s1844_s3] ss:$0 sm:$0xff] (!%p420_p2)  ;;  %s1582_s17 = smov (!%p420_p2), 120   ;;  %s1584_s19 = smov (!%p420_p2), 80   ;;  %vm1043_vm4 = vcmask (!%p420_p2), 130048   ;;  %vm1045_vm5 = vcmask (!%p420_p2), 195584  }
   0x8   : > { %1435 = vmatprep.subr.bf16.mxu0 (!%p420_p2), %v1579_v9  ;;  %1443 = vmatprep.mubr.msk.bf16.mxu1 (!%p420_p2), %vm1580_vm1, %v1579_v9  ;;  %v1372_v21 = vld [vmem:[%s1846_s5] ss:$0 sm:$0xff] (!%p420_p2)  ;;  %s1585_s20 = smov (!%p420_p2), 112   ;;  %s1586_s21 = smov (!%p420_p2), 72   ;;  %vm1245_vm6 = vcmask (!%p420_p2), 523264   ;;  %vm1299_vm7 = vcmask (!%p420_p2), 257024  }
   0x9   : > { %s1587_s22 = smov (!%p420_p2), 104   ;;  %s1588_s26 = smov (!%p420_p2), 64  }
   0xa   : > { %s1589_s27 = smov (!%p420_p2), 56   ;;  %s1590_s28 = smov (!%p420_p2), 48  }
   0xb   : > { %1436 = vmatpush3.bf16.msra.mxu0 (!%p420_p2), %v1542_v10  ;;  %s1594_s23 = smov (!%p420_p2), 24  }
   0xc   : > { %1447 = vmatprep.subr.bf16.mxu0 (!%p420_p2), %v1579_v9 }
   0xd   : > { %s1857_s30 = smov (!%p466_p3, %s1363_s30), 1 }
   0xe   : > { %s1368_s15 = sshll.u32 %s1857_s30, 2  ;;  %s472_s25 = scalar_lea.vmem %s1842_s1, %s1857_s30 }
   0xf   : > { %s469_s18 = scalar_lea.vmem %s1841_s0, %s1368_s15  ;;  %v1376_v41 = vld [vmem:[%s472_s25] ss:$0 sm:$0xff] }
  0x10   : > { %v478_v0 = vld [vmem:[%s469_s18] sm:$0xf]  ;;  %s1583_s18 = smov 88  }
  0x11   : > { %v1686_v1 = vunpack.c.l.bf16 %v478_v0 }
  0x13   : > { %v484_v2 = vsel %vm483_vm0, %v1686_v1, 0.0 }
  0x14   : > { %485 = vadd.xlane.f32.xlu0 %v484_v2 }
  0xa1   : > { %v486_v3 = vpop.xlane.xlu0 %485 }
  0xa2   : > { %v488_v4 = vmul.f32 0.03125, %v486_v3 }
  0xa4   : > { %v489_v5 = vsub.f32 %v1686_v1, %v488_v4 }
  0xa6   : > { %v490_v6 = vmul.f32 %v489_v5, %v489_v5 }
  0xa8   : > { %v491_v7 = vsel %vm483_vm0, %v490_v6, 0.0 }
  0xa9   : > { %492 = vadd.xlane.f32.xlu0 %v491_v7 }
 0x136   : > { %v493_v11 = vpop.xlane.xlu0 %492 }
 0x137   : > { %v494_v12 = vmul.f32 0.03125, %v493_v11 }
 0x139   : > { %v495_v13 = vadd.f32 1e-05, %v494_v12 }
 0x13b   : > { %1551 = vrsqrt.f32 %v495_v13 }
 0x145   : > { %v1552_v14 = vpop.eup %1551 }
 0x146   : > { %v497_v16 = vmul.f32 %v1552_v14, %v489_v5 }
 0x148   : > { %v504_v18 = vmul.f32 %v1370_v15, %v497_v16 }
 0x14a   : > { %v511_v19 = vadd.f32 %v1371_v17, %v504_v18 }
 0x14c   : > { %v512_v20 = vpack.c.bf16 %v511_v19, %v511_v19 }
 0x14e   : > { %1438 = vmatmul.mubr.msk.bf16.vlgmr.msra.gmra.mrb[0].mxu0 %vm483_vm0, %v512_v20 }
 0x14f   : > { %1449 = vmatprep.mubr.msk.bf16.mxu0 %vm1580_vm1, %v1579_v9 }
 0x221   : > { %v573_v22 = vpop.f32.mrb[0].mxu0 }
 0x222   : > { %v574_v23 = vadd.f32 %v1372_v21, %v573_v22  ;;  %v1439_v24 = vpop.f32.mrb[1].mxu0 }
 0x223   : > { %v576_v25 = vpop.f32.mrb[2].mxu0 }
 0x224   : > { %v579_v26 = vmul.f32 0.35355338, %v574_v23  ;;  %v1718_v27 = vpack.c.bf16 %v574_v23, %v574_v23  ;;  %v1440_v28 = vpop.f32.mrb[3].mxu0 }
 0x226   : > { %v580_v29 = vpack.c.bf16 %v579_v26, %v579_v26  ;;  %589 = vrot.lane.b32.xlu1 %v1718_v27, %s1581_s16  ;;  %s1591_s16 = smov 40  }
 0x228   : > { %700 = vrot.lane.b32.xlu0 %v580_v29, %s1582_s17  ;;  %s1592_s17 = smov 8  }
 0x22a   : > { %702 = vrot.lane.b32.xlu1 %v1718_v27, %s1583_s18 }
 0x22e   : > { %812 = vrot.lane.b32.xlu1 %v1718_v27, %s1584_s19 }
 0x232   : > { %810 = vrot.lane.b32.xlu1 %v580_v29, %s1585_s20 }
 0x236   : > { %922 = vrot.lane.b32.xlu1 %v1718_v27, %s1586_s21 }
 0x23a   : > { %920 = vrot.lane.b32.xlu1 %v580_v29, %s1587_s22  ;;  %s1593_s22 = smov 16  }
 0x298   : > { %v590_v30 = vpop.permute.xlu1 %589 }
 0x299   : > { %v596_v31 = vsel %vm591_vm2, %v590_v30, 0 }
 0x29a   : > { %1442 = vmatpush3.bf16.xpose.msra.mxu1 %v596_v31  ;;  %v701_v35 = vpop.permute.xlu0 %700 }
 0x29b   : > { %1453 = vmatprep.subr.bf16.mxu1 %v1579_v9 }
 0x29c   : > { %v703_v32 = vpop.permute.xlu1 %702 }
 0x29d   : > { %v708_v33 = vsel %vm591_vm2, %v703_v32, 0 }
 0x2a0   : > { %v813_v34 = vpop.permute.xlu1 %812 }
 0x2a1   : > { %1444 = vmatmul.mubr.msk.bf16.vlgmr.msra.gmra.mrb[0].mxu1 %vm591_vm2, %v580_v29  ;;  %v818_v37 = vsel %vm591_vm2, %v813_v34, 0 }
 0x2a2   : > { %1454 = vmatpush3.bf16.xpose.msra.mxu1 %v708_v33  ;;  %1455 = vmatprep.mubr.msk.bf16.mxu1 %vm1580_vm1, %v1579_v9 }
 0x2a3   : > { %1465 = vmatprep.subr.bf16.mxu1 %v1579_v9 }
 0x2a4   : > { %v811_v36 = vpop.permute.xlu1 %810 }
 0x2a8   : > { %v923_v38 = vpop.permute.xlu1 %922 }
 0x2a9   : > { %1456 = vmatmul.mubr.msk.bf16.vlgmr.msra.gmra.mrb[4].mxu1 %vm591_vm2, %v701_v35  ;;  %v928_v39 = vsel %vm591_vm2, %v923_v38, 0 }
 0x2aa   : > { %1466 = vmatpush3.bf16.xpose.msra.mxu1 %v818_v37  ;;  %1467 = vmatprep.mubr.msk.bf16.mxu1 %vm1580_vm1, %v1579_v9 }
 0x2ab   : > { %1477 = vmatprep.subr.bf16.mxu1 %v1579_v9 }
 0x2ac   : > { %v921_v40 = vpop.permute.xlu1 %920 }
 0x2b1   : > { %1468 = vmatmul.mubr.msk.bf16.vlgmr.msra.gmra.mrb[8].mxu1 %vm591_vm2, %v811_v36 }
 0x2b2   : > { %1478 = vmatpush3.bf16.xpose.msra.mxu1 %v928_v39  ;;  %1479 = vmatprep.mubr.msk.bf16.mxu1 %vm1580_vm1, %v1579_v9 }
 0x2b3   : > { %1489 = vmatprep.subr.bf16.mxu1 %v1579_v9 }
 0x2b9   : > { %1480 = vmatmul.mubr.msk.bf16.vlgmr.msra.gmra.mrb[12].mxu1 %vm591_vm2, %v921_v40 }
 0x2ba   : > { %1493 = vmatprep.mubr.msk.bf16.mxu1 %vm1580_vm1, %v1579_v9 }
 0x374   : > { %v632_v42 = vpop.f32.mrb[0].mxu1 }
 0x375   : > { %v633_v43 = vadd.f32 %v1376_v41, %v632_v42  ;;  %v1445_v44 = vpop.f32.mrb[1].mxu1 }
 0x376   : > { %v635_v45 = vpop.f32.mrb[2].mxu1 }
 0x377   : > { %v1446_v46 = vpop.f32.mrb[3].mxu1  ;;  %v638_v47 = vsel %vm591_vm2, %v633_v43, -inf }
 0x378   : > { %639 = vmax.xlane.f32.xlu1 %v638_v47 }
 0x37c   : > { %v744_v48 = vpop.f32.mrb[4].mxu1 }
 0x37d   : > { %v745_v49 = vadd.f32 %v1376_v41, %v744_v48  ;;  %v1457_v50 = vpop.f32.mrb[5].mxu1 }
 0x37e   : > { %v747_v51 = vpop.f32.mrb[6].mxu1 }
 0x37f   : > { %v1458_v52 = vpop.f32.mrb[7].mxu1  ;;  %v750_v53 = vsel %vm591_vm2, %v745_v49, -inf }
 0x380   : > { %751 = vmax.xlane.f32.xlu0 %v750_v53 }
 0x384   : > { %v854_v54 = vpop.f32.mrb[8].mxu1 }
 0x385   : > { %v855_v55 = vadd.f32 %v1376_v41, %v854_v54  ;;  %v1469_v56 = vpop.f32.mrb[9].mxu1 }
 0x386   : > { %v857_v57 = vpop.f32.mrb[10].mxu1  ;;  %v1543_v56 = vld [vmem:[%s1847_s6] sm:$0xff]  }
 0x387   : > { %v1470_v58 = vpop.f32.mrb[11].mxu1  ;;  %v860_v59 = vsel %vm591_vm2, %v855_v55, -inf  ;;  %1490 = vmatpush3.bf16.msra.mxu1 %v1543_v56  ;;  %v1544_v57 = vld [vmem:[%s1847_s6 + $0x8] sm:$0xff]  }
 0x388   : > { %861 = vmax.xlane.f32.xlu1 %v860_v59  ;;  %1491 = vmatprep.subr.bf16.mxu1 %v1579_v9 }
 0x38b   : > { %1492 = vmatpush3.bf16.msra.mxu1 %v1544_v57 }
 0x38c   : > { %v964_v60 = vpop.f32.mrb[12].mxu1  ;;  %1505 = vmatprep.subr.bf16.mxu1 %v1579_v9 }
 0x38d   : > { %v965_v61 = vadd.f32 %v1376_v41, %v964_v60  ;;  %v1481_v62 = vpop.f32.mrb[13].mxu1 }
 0x38e   : > { %v967_v63 = vpop.f32.mrb[14].mxu1 }
 0x38f   : > { %v1482_v0 = vpop.f32.mrb[15].mxu1  ;;  %v970_v2 = vsel %vm591_vm2, %v965_v61, -inf }
 0x390   : > { %971 = vmax.xlane.f32.xlu0 %v970_v2 }
 0x405   : > { %v640_v3 = vpop.xlane.xlu1 %639 }
 0x406   : > { %v641_v4 = vsub.f32 %v633_v43, %v640_v3 }
 0x408   : > { %v642_v5 = vmul.f32 1.442695, %v641_v4 }
 0x40a   : > { %1553 = vpow2.f32 %v642_v5 }
 0x40d   : > { %v752_v6 = vpop.xlane.xlu0 %751 }
 0x40e   : > { %v753_v7 = vsub.f32 %v745_v49, %v752_v6 }
 0x410   : > { %v754_v8 = vmul.f32 1.442695, %v753_v7 }
 0x412   : > { %1555 = vpow2.f32 %v754_v8 }
 0x414   : > { %v1554_v10 = vpop.eup %1553 }
 0x415   : > { %v644_v11 = vsel %vm591_vm2, %v1554_v10, 0.0  ;;  %v862_v19 = vpop.xlane.xlu1 %861 }
 0x416   : > { %645 = vadd.xlane.f32.xlu1 %v644_v11  ;;  %v863_v20 = vsub.f32 %v855_v55, %v862_v19  ;;  %v1385_v11 = vld [vmem:[%s1848_s7] ss:$0 sm:$0xff] }
 0x418   : > { %v864_v21 = vmul.f32 1.442695, %v863_v20 }
 0x41c   : > { %v1556_v12 = vpop.eup %1555 }
 0x41d   : > { %v972_v13 = vpop.xlane.xlu0 %971  ;;  %v756_v14 = vsel %vm591_vm2, %v1556_v12, 0.0 }
 0x41e   : > { %v973_v15 = vsub.f32 %v965_v61, %v972_v13  ;;  %757 = vadd.xlane.f32.xlu0 %v756_v14 }
 0x420   : > { %v974_v16 = vmul.f32 1.442695, %v973_v15 }
 0x422   : > { %1557 = vpow2.f32 %v974_v16 }
 0x423   : > { %1559 = vpow2.f32 %v864_v21 }
 0x427   : > { %650 = vrot.lane.b32.xlu1 %v1718_v27, %s1588_s26 }
 0x42c   : > { %v1558_v17 = vpop.eup %1557 }
 0x42d   : > { %v976_v18 = vsel %vm591_vm2, %v1558_v17, 0.0  ;;  %v1560_v22 = vpop.eup %1559 }
 0x42e   : > { %977 = vadd.xlane.f32.xlu0 %v976_v18  ;;  %v866_v23 = vsel %vm591_vm2, %v1560_v22, 0.0 }
 0x444   : > { %762 = vrot.lane.b32.xlu0 %v1718_v27, %s1589_s27 }
 0x44b   : > { %867 = vadd.xlane.f32.xlu1 %v866_v23 }
 0x45c   : > { %872 = vrot.lane.b32.xlu1 %v1718_v27, %s1590_s28 }
 0x460   : > { %982 = vrot.lane.b32.xlu1 %v1718_v27, %s1591_s16 }
 0x4a3   : > { %v646_v24 = vpop.xlane.xlu1 %645 }
 0x4a4   : > { %1561 = vrcp.f32 %v646_v24  ;;  %v1545_v24 = vld [vmem:[%s1851_s10] sm:$0xff]  }
 0x4a7   : > { %v651_v25 = vpop.permute.xlu1 %650 }
 0x4a8   : > { %v657_v26 = vsel %vm655_vm3, %v651_v25, 0  ;;  %v1547_v25 = vld [vmem:[%s1853_s12] sm:$0xff]  }
 0x4a9   : > { %1448 = vmatpush3.bf16.msra.mxu0 %v657_v26  ;;  %v1548_v26 = vld [vmem:[%s1853_s12 + $0x8] sm:$0xff]  }
 0x4aa   : > { %1459 = vmatprep.subr.bf16.mxu0 %v1579_v9 }
 0x4ab   : > { %v758_v29 = vpop.xlane.xlu0 %757 }
 0x4ac   : > { %1563 = vrcp.f32 %v758_v29 }
 0x4ae   : > { %v1562_v28 = vpop.eup %1561 }
 0x4af   : > { %v648_v30 = vmul.f32 %v1562_v28, %v1554_v10 }
 0x4b1   : > { %v649_v31 = vpack.c.bf16 %v648_v30, %v648_v30 }
 0x4b3   : > { %1450 = vmatmul.mubr.msk.bf16.vlgmr.msra.gmra.mrb[4].mxu0 %vm591_vm2, %v649_v31 }
 0x4b4   : > { %1461 = vmatprep.mubr.msk.bf16.mxu0 %vm1580_vm1, %v1579_v9 }
 0x4b6   : > { %v1564_v27 = vpop.eup %1563 }
 0x4b7   : > { %v760_v33 = vmul.f32 %v1564_v27, %v1556_v12  ;;  %v1389_v27 = vld [vmem:[%s1849_s8] ss:$0 sm:$0xff] }
 0x4b9   : > { %v761_v36 = vpack.c.bf16 %v760_v33, %v760_v33  ;;  %v1390_v33 = vld [vmem:[%s1850_s9] ss:$0 sm:$0xff] }
 0x4bb   : > { %v978_v32 = vpop.xlane.xlu0 %977 }
 0x4bf   : > { %v763_v34 = vpop.permute.xlu0 %762 }
 0x4c0   : > { %v768_v35 = vsel %vm655_vm3, %v763_v34, 0 }
 0x4c1   : > { %1460 = vmatpush3.bf16.msra.mxu0 %v768_v35 }
 0x4c2   : > { %1471 = vmatprep.subr.bf16.mxu0 %v1579_v9 }
 0x4c4   : > { %1462 = vmatmul.mubr.msk.bf16.vlgmr.msra.gmra.mrb[8].mxu0 %vm591_vm2, %v761_v36 }
 0x4c5   : > { %1473 = vmatprep.mubr.msk.bf16.mxu0 %vm1580_vm1, %v1579_v9 }
 0x4d8   : > { %v868_v37 = vpop.xlane.xlu1 %867 }
 0x4d9   : > { %1565 = vrcp.f32 %v868_v37  ;;  %v1549_v37 = vld [vmem:[%s1853_s12 + $0x10] sm:$0xff]  }
 0x4da   : > { %1567 = vrcp.f32 %v978_v32 }
 0x4dc   : > { %v873_v38 = vpop.permute.xlu1 %872 }
 0x4dd   : > { %v878_v39 = vsel %vm655_vm3, %v873_v38, 0  ;;  %v1550_v38 = vld [vmem:[%s1853_s12 + $0x18] sm:$0xff]  }
 0x4de   : > { %1472 = vmatpush3.bf16.msra.mxu0 %v878_v39  ;;  %v1391_v39 = vld [vmem:[%s1852_s11] ss:$0 sm:$0xff] }
 0x4df   : > { %1483 = vmatprep.subr.bf16.mxu0 %v1579_v9 }
 0x4e0   : > { %v983_v42 = vpop.permute.xlu1 %982 }
 0x4e1   : > { %v988_v45 = vsel %vm655_vm3, %v983_v42, 0 }
 0x4e3   : > { %v1566_v40 = vpop.eup %1565 }
 0x4e4   : > { %v870_v41 = vmul.f32 %v1566_v40, %v1560_v22  ;;  %v1568_v44 = vpop.eup %1567 }
 0x4e5   : > { %v980_v46 = vmul.f32 %v1568_v44, %v1558_v17 }
 0x4e6   : > { %v871_v43 = vpack.c.bf16 %v870_v41, %v870_v41 }
 0x4e7   : > { %v981_v47 = vpack.c.bf16 %v980_v46, %v980_v46 }
 0x4e8   : > { %1474 = vmatmul.mubr.msk.bf16.vlgmr.msra.gmra.mrb[12].mxu0 %vm591_vm2, %v871_v43 }
 0x4e9   : > { %1484 = vmatpush3.bf16.msra.mxu0 %v988_v45  ;;  %1485 = vmatprep.mubr.msk.bf16.mxu0 %vm1580_vm1, %v1579_v9 }
 0x4ea   : > { %1497 = vmatprep.subr.bf16.mxu0 %v1579_v9 }
 0x4f0   : > { %1486 = vmatmul.mubr.msk.bf16.vlgmr.msra.gmra.mrb[16].mxu0 %vm591_vm2, %v981_v47  ;;  %v1400_v47 = vld [vmem:[%s1854_s13] ss:$0 sm:$0xff] }
 0x4f1   : > { %1501 = vmatprep.mubr.msk.bf16.mxu0 %vm1580_vm1, %v1579_v9  ;;  %1498 = vmatpush3.bf16.msra.mxu0 %v1545_v24 }
 0x4f2   : > { %1499 = vmatprep.subr.bf16.mxu0 %v1579_v9 }
 0x586   : > { %v693_v48 = vpop.f32.mrb[4].mxu0 }
 0x587   : > { %v1451_v49 = vpop.f32.mrb[5].mxu0 }
 0x588   : > { %v696_v50 = vpop.f32.mrb[6].mxu0 }
 0x589   : > { %v1452_v51 = vpop.f32.mrb[7].mxu0 }
 0x597   : > { %v804_v52 = vpop.f32.mrb[8].mxu0 }
 0x598   : > { %1031 = vrot.lane.b32.xlu0 %v804_v52, %s1592_s17  ;;  %v1463_v53 = vpop.f32.mrb[9].mxu0 }
 0x599   : > { %v807_v54 = vpop.f32.mrb[10].mxu0 }
 0x59a   : > { %v1464_v55 = vpop.f32.mrb[11].mxu0 }
 0x5bb   : > { %v914_v58 = vpop.f32.mrb[12].mxu0 }
 0x5bc   : > { %1035 = vrot.lane.b32.xlu1 %v914_v58, %s1593_s22  ;;  %v1475_v59 = vpop.f32.mrb[13].mxu0  ;;  %s476_s22 = scalar_lea.vmem %s1855_s14, %s1368_s15 }
 0x5bd   : > { %v917_v60 = vpop.f32.mrb[14].mxu0 }
 0x5be   : > { %v1476_v61 = vpop.f32.mrb[15].mxu0 }
 0x5c3   : > { %v1024_v62 = vpop.f32.mrb[16].mxu0 }
 0x5c4   : > { %1039 = vrot.lane.b32.xlu0 %v1024_v62, %s1594_s23  ;;  %v1487_v63 = vpop.f32.mrb[17].mxu0 }
 0x5c5   : > { %v1027_v0 = vpop.f32.mrb[18].mxu0 }
 0x5c6   : > { %v1488_v2 = vpop.f32.mrb[19].mxu0 }
 0x60a   : > { %v1032_v3 = vpop.permute.xlu0 %1031 }
 0x60b   : > { %v1042_v5 = vsel %vm591_vm2, %v693_v48, %v1032_v3 }
 0x62e   : > { %v1036_v4 = vpop.permute.xlu1 %1035 }
 0x62f   : > { %v1044_v6 = vsel %vm1043_vm4, %v1042_v5, %v1036_v4 }
 0x636   : > { %v1040_v7 = vpop.permute.xlu0 %1039 }
 0x637   : > { %v1046_v8 = vsel %vm1045_vm5, %v1044_v6, %v1040_v7 }
 0x638   : > { %v1047_v10 = vpack.c.bf16 %v1046_v8, %v1046_v8 }
 0x63a   : > { %1494 = vmatmul.mubr.msk.bf16.vlgmr.msra.gmra.mrb[16].mxu1 %vm483_vm0, %v1047_v10 }
 0x63b   : > { %1513 = vmatprep.mubr.msk.bf16.mxu1 %vm1580_vm1, %v1579_v9  ;;  %1506 = vmatpush3.bf16.msra.mxu1 %v1547_v25 }
 0x63c   : > { %1507 = vmatprep.subr.bf16.mxu1 %v1579_v9 }
 0x63f   : > { %1508 = vmatpush3.bf16.msra.mxu1 %v1548_v26 }
 0x640   : > { %1509 = vmatprep.subr.bf16.mxu1 %v1579_v9 }
 0x643   : > { %1510 = vmatpush3.bf16.msra.mxu1 %v1549_v37 }
 0x644   : > { %1511 = vmatprep.subr.bf16.mxu1 %v1579_v9 }
 0x647   : > { %1512 = vmatpush3.bf16.msra.mxu1 %v1550_v38 }
 0x70d   : > { %v1108_v12 = vpop.f32.mrb[16].mxu1 }
 0x70e   : > { %v1109_v13 = vadd.f32 %v1385_v11, %v1108_v12  ;;  %v1495_v14 = vpop.f32.mrb[17].mxu1 }
 0x70f   : > { %v1111_v15 = vpop.f32.mrb[18].mxu1 }
 0x710   : > { %v1114_v16 = vadd.f32 %v1109_v13, %v1686_v1  ;;  %v1496_v17 = vpop.f32.mrb[19].mxu1  ;;  %v1546_v1 = vld [vmem:[%s1851_s10 + $0x8] sm:$0xff]  }
 0x711   : > { %1500 = vmatpush3.bf16.msra.mxu0 %v1546_v1 }
 0x712   : > { %v1117_v18 = vsel %vm483_vm0, %v1114_v16, 0.0 }
 0x713   : > { %1118 = vadd.xlane.f32.xlu1 %v1117_v18 }
 0x7a0   : > { %v1119_v19 = vpop.xlane.xlu1 %1118 }
 0x7a1   : > { %v1120_v20 = vmul.f32 0.03125, %v1119_v19 }
 0x7a3   : > { %v1121_v21 = vsub.f32 %v1114_v16, %v1120_v20 }
 0x7a5   : > { %v1122_v22 = vmul.f32 %v1121_v21, %v1121_v21 }
 0x7a7   : > { %v1123_v23 = vsel %vm483_vm0, %v1122_v22, 0.0 }
 0x7a8   : > { %1124 = vadd.xlane.f32.xlu0 %v1123_v23 }
 0x835   : > { %v1125_v28 = vpop.xlane.xlu0 %1124 }
 0x836   : > { %v1126_v29 = vmul.f32 0.03125, %v1125_v28 }
 0x838   : > { %v1127_v30 = vadd.f32 1e-05, %v1126_v29 }
 0x83a   : > { %1569 = vrsqrt.f32 %v1127_v30 }
 0x844   : > { %v1570_v31 = vpop.eup %1569 }
 0x845   : > { %v1129_v32 = vmul.f32 %v1570_v31, %v1121_v21 }
 0x847   : > { %v1136_v34 = vmul.f32 %v1389_v27, %v1129_v32 }
 0x849   : > { %v1143_v35 = vadd.f32 %v1390_v33, %v1136_v34 }
 0x84b   : > { %v1144_v36 = vpack.c.bf16 %v1143_v35, %v1143_v35 }
 0x84d   : > { %1502 = vmatmul.mubr.msk.bf16.vlgmr.msra.gmra.mrb[20].mxu0 %vm483_vm0, %v1144_v36 }
 0x920   : > { %v1205_v40 = vpop.f32.mrb[20].mxu0 }
 0x921   : > { %v1206_v41 = vadd.f32 %v1391_v39, %v1205_v40  ;;  %v1503_v42 = vpop.f32.mrb[21].mxu0 }
 0x922   : > { %v1208_v43 = vpop.f32.mrb[22].mxu0 }
 0x923   : > { %v1211_v44 = vmax.f32 %v1206_v41, 0.0  ;;  %v1504_v45 = vpop.f32.mrb[23].mxu0 }
 0x925   : > { %v1212_v46 = vpack.c.bf16 %v1211_v44, %v1211_v44 }
 0x927   : > { %1514 = vmatmul.mubr.msk.bf16.vlgmr.msra.gmra.mrb[20].mxu1 %vm1245_vm6, %v1212_v46 }
 0x9fa   : > { %v1283_v9 = vpop.f32.mrb[20].mxu1 }
 0x9fb   : > { %v1289_v48 = vadd.f32 %v1283_v9, %v1114_v16  ;;  %v1515_v49 = vpop.f32.mrb[21].mxu1 }
 0x9fc   : > { %v1286_v50 = vpop.f32.mrb[22].mxu1 }
 0x9fd   : > { %v1297_v51 = vadd.f32 %v1400_v47, %v1289_v48  ;;  %v1516_v52 = vpop.f32.mrb[23].mxu1 }
 0x9ff   : > { %v1298_v53 = vpack.c.bf16 %v1297_v51, %v1297_v51 }
 0xa01   : > { %1300 = vst.msk [vmem:[%s476_s22] sm:$0xf] %vm1299_vm7, %v1298_v53 }
 0xa02 PF: > { %s24_s29 = sadd.s32 1, %s1577_s29  }
 0xa03   : > { %p21_p4 = scmp.ge.s32.totalorder %s24_s29, 4  }
 0xa05   :  { %23 = sbr.rel (!%p21_p4) target bundleno = 1 (0x1), region = 109 }

// kernel: transformer_forward.8
= control target key start
LH: loop header
LB: loop body
LE: loop exit
PB: predicated region body
PF: predicated region fallthrough
CT: control target
= control target key end

     0   :  { %s4149_s0 = inlined_call_operand.vmem [shape: bf16[2,8,32], index: 0, kind: input, shape index: {}]   ;;  %s4150_s1 = inlined_call_operand.vmem [shape: bf16[2,8,32], index: 1, kind: input, shape index: {}]   ;;  %s4151_s2 = inlined_call_operand.vmem [shape: f32[2,8,1], index: 2, kind: input, shape index: {}]   ;;  %s4152_s3 = inlined_call_operand.vmem [shape: f32[2,1,8], index: 3, kind: input, shape index: {}]   ;;  %s4153_s4 = inlined_call_operand.vmem [shape: f32[1,32], index: 4, kind: input, shape index: {}]   ;;  %s4154_s5 = inlined_call_operand.vmem [shape: f32[1,32], index: 5, kind: input, shape index: {}]   ;;  %s4155_s6 = inlined_call_operand.vmem [shape: bf16[32,96], index: 6, kind: input, shape index: {}]   ;;  %s4156_s7 = inlined_call_operand.vmem [shape: f32[1,96], index: 7, kind: input, shape index: {}]   ;;  %s4157_s8 = inlined_call_operand.vmem [shape: bf16[32,32], index: 8, kind: input, shape index: {}]   ;;  %s4158_s9 = inlined_call_operand.vmem [shape: f32[1,32], index: 9, kind: input, shape index: {}]   ;;  %s4159_s10 = inlined_call_operand.vmem [shape: f32[1,32], index: 10, kind: input, shape index: {}]   ;;  %s4160_s11 = inlined_call_operand.vmem [shape: f32[1,32], index: 11, kind: input, shape index: {}]   ;;  %s4161_s12 = inlined_call_operand.vmem [shape: bf16[32,32], index: 12, kind: input, shape index: {}]   ;;  %s4162_s13 = inlined_call_operand.hbm [shape: f32[1,32], index: 13, kind: input, shape index: {}]   ;;  %s4163_s14 = inlined_call_operand.vmem [shape: bf16[32,64], index: 14, kind: input, shape index: {}]   ;;  %s4164_s15 = inlined_call_operand.hbm [shape: f32[1,64], index: 15, kind: input, shape index: {}]   ;;  %s4165_s16 = inlined_call_operand.vmem [shape: bf16[32,32], index: 16, kind: input, shape index: {}]   ;;  %s4166_s17 = inlined_call_operand.hbm [shape: f32[1,32], index: 17, kind: input, shape index: {}]   ;;  %s4167_s18 = inlined_call_operand.hbm [shape: f32[1,32], index: 18, kind: input, shape index: {}]   ;;  %s4168_s19 = inlined_call_operand.hbm [shape: f32[1,32], index: 19, kind: input, shape index: {}]   ;;  %s4169_s20 = inlined_call_operand.vmem [shape: bf16[32,64], index: 20, kind: input, shape index: {}]   ;;  %s4170_s21 = inlined_call_operand.hbm [shape: f32[1,64], index: 21, kind: input, shape index: {}]   ;;  %s4171_s22 = inlined_call_operand.vmem [shape: bf16[64,32], index: 22, kind: input, shape index: {}]   ;;  %s4172_s23 = inlined_call_operand.hbm [shape: f32[1,32], index: 23, kind: input, shape index: {}]   ;;  %s4173_s24 = inlined_call_operand.vmem [shape: bf16[2,8,32], index: 24, kind: output, shape index: {0}]   ;;  %s4174_s25 = inlined_call_operand.hbm [shape: f32[2,4,8,8], index: 25, kind: output, shape index: {1}]  }
   0x1   :  { %4197 = sst [smem:[#allocation27_spill]] %s4149_s0 }
   0x2   :  { %4198 = sst [smem:[#allocation28_spill]] %s4150_s1 }
   0x3   :  { %4199 = sst [smem:[#allocation29_spill]] %s4151_s2 }
   0x4   :  { %4200 = sst [smem:[#allocation30_spill]] %s4152_s3 }
   0x5   :  { %4201 = sst [smem:[#allocation31_spill]] %s4153_s4 }
   0x6   :  { %4202 = sst [smem:[#allocation32_spill]] %s4154_s5 }
   0x7   :  { %4203 = sst [smem:[#allocation33_spill]] %s4155_s6 }
   0x8   :  { %4204 = sst [smem:[#allocation34_spill]] %s4156_s7 }
   0x9   :  { %4205 = sst [smem:[#allocation35_spill]] %s4157_s8 }
   0xa   :  { %4206 = sst [smem:[#allocation36_spill]] %s4158_s9 }
   0xb   :  { %4207 = sst [smem:[#allocation37_spill]] %s4164_s15 }
   0xc   :  { %4208 = sst [smem:[#allocation38_spill]] %s4173_s24 }
   0xd   :  { %4209 = sst [smem:[#allocation39_spill]] %s4174_s25 }
   0xe   :  { %31 = vsyncpa [#allocation3], 0 }
   0xf   :  { %32 = vsyncpa [#allocation6], 0 }
  0x10   :  { %33 = vsyncpa [#allocation9], 0 }
  0x11   :  { %34 = vsyncpa [#allocation12], 0 }
  0x12   :  { %35 = vsyncpa [#allocation4], 0 }
  0x13   :  { %37 = vsyncpa [#allocation4 + $0x1], 0  ;;  %s3561_s29 = smov 0   ;;  %s3563_s2 = smov 0  }
  0x14   :  { %s3565_s6 = smov 0   ;;  %s3567_s30 = smov 0  }
  0x15 LB: > { %4210 = sst [smem:[#allocation20_spill]] %s3390_s29  ;;  %s3582_s7 = sadd.s32 4294967295, %s3402_s30   ;;  %s3402_s30 = sphi %s3567_s30, %s4257_s30   ;;  %s3398_s6 = sphi %s3565_s6, %s4259_s6   ;;  %s3394_s2 = sphi %s3563_s2, %s4261_s2   ;;  %s3390_s29 = sphi %s3561_s29, %s4260_s29  }
  0x16   : > { %4211 = sst [smem:[#allocation21_spill]] %s3398_s6  ;;  %s2647_s3 = sadd.s32 4294967294, %s3402_s30  }
  0x17   : > { %4212 = sst [smem:[#allocation22_spill]] %s3402_s30  ;;  %s3586_s26 = sadd.s32 1, %s3402_s30  }
  0x18   : > { %4213 = sst [smem:[#allocation23_spill]] %s3586_s26  ;;  %s600_s1 = sadd.s32 1, %s3398_s6 }
  0x19   : > { %s597_s8 = ssub.s32 %s3402_s30, %s3586_s26  ;;  %p610_p0 = scmp.ne.s32.totalorder %s3398_s6, %s3394_s2 }
  0x1a   : > { %p598_p1 = scmp.eq.s32.totalorder %s597_s8, 0  ;;  %p611_p2 = scmp.eq.s32.totalorder %s3582_s7, 1 }
  0x1b   : > { %p616_p3 = scmp.ne.s32.totalorder %s3394_s2, %s3390_s29  ;;  %p617_p4 = scmp.eq.s32.totalorder %s2647_s3, 1 }
  0x1c   : > { %s3597_s27 = scalar_select %p598_p1, %s3398_s6, %s600_s1  }
  0x1d   : > { %p3599_p5 = por %p611_p2, %p610_p0  ;;  %p3603_p6 = por %p617_p4, %p616_p3 }
  0x1e   : > { %4214 = sst [smem:[#allocation24_spill]] %s3597_s27  ;;  %p2648_p7 = scmp.ge.s32.totalorder %s3402_s30, 1 }
  0x1f   : > { %s4215_s4 = scalar_select %p3599_p5, 1, 0 }
  0x20   : > { %s4217_s28 = scalar_select %p3603_p6, 1, 0 }
  0x21   : > { %4216 = sst [smem:[#allocation25_spill]] %s4215_s4  ;;  %p624_p8 = scmp.lt.s32.totalorder %s3402_s30, 3 }
  0x22   : > { %4218 = sst [smem:[#allocation26_spill]] %s4217_s28  ;;  %p4183_p9 = scmp.eq.s32.totalorder %s3582_s7, 0 }
  0x23   : > { %p3610_p10 = pnand %p2648_p7, %p624_p8  ;;  %s3404_s5 = smov [#allocation5]  }
  0x24   : > { %s678_s0 = sshll.u32 %s3404_s5, 4  ;;  %s3405_s3 = smov [#allocation8]   ;;  %s679_s0 = int_to_ptr.vmem [resolvable:$true] %s678_s0 }
  0x25   : > { %s4219_s9 = scalar_select %p3610_p10, 1, 0 }
  0x26   : > { %p2973_p11 = pneg %p3610_p10  ;;  %s703_s1 = sshll.u32 %s3405_s3, 4  ;;  %s3622_s1 = int_to_ptr.vmem [resolvable:$true] %s703_s1 }
  0x27   : > { %s3406_s27 = smov [#allocation11]   ;;  %s4221_s15 = sld [smem:[#allocation37_spill]] }
  0x28   : > { %p3618_p12 = pnand %p4183_p9, %p2973_p11  ;;  %s728_s6 = sshll.u32 %s3406_s27, 4  ;;  %s3624_s6 = int_to_ptr.vmem [resolvable:$true] %s728_s6 }
  0x2a   : > { %p3634_p0 = pneg %p3618_p12 }
  0x2d   : > { %s3128_s5 = scalar_lea.hbm %s4221_s15, 16 }
  0x2e   : > { %p3129_p13 = scmp.ne.s32.totalorder %s4221_s15, %s3128_s5  ;;  %p3135_p3 = scmp.lt.u32.totalorder %s3128_s5, %s4221_s15 }
  0x30   : > { %p3131_p1 = pnand %p3634_p0, %p3129_p13 }
  0x32   : > { %p3132_p2 = pneg %p3131_p1 }
  0x34   : > { %p3137_p4 = pnand %p3135_p3, %p3132_p2 }
  0x36   : > { %3140 = shalt.err (!%p3137_p4)
}
  0x37   : > { %s3141_s26 = scalar_lea.vmem %s679_s0, 16  ;;  %s3148_s29 = scalar_lea.vmem %s679_s0, 32 }
  0x38   : > { %p3142_p7 = scmp.ne.s32.totalorder %s679_s0, %s3141_s26  ;;  %p3149_p9 = scmp.lt.s32.totalorder %s679_s0, %s679_s0 }
  0x39   : > { %p3150_p6 = scmp.lt.s32.totalorder %s3148_s29, %s3141_s26 }
  0x3a   : > { %p3144_p8 = pnand %p3142_p7, %p3634_p0 }
  0x3b   : > { %p3151_p5 = por %p3150_p6, %p3149_p9 }
  0x3c   : > { %p3145_p11 = pneg %p3144_p8 }
  0x3e   : > { %p3152_p10 = pnand %p3151_p5, %p3145_p11 }
  0x40   : > { %3155 = shalt.err (!%p3152_p10)
}
  0x41   : > { %2979 = dma.hbm_to_vmem [thread:$0]  (!%p3618_p12), %s4221_s15, 16, %s679_s0, [#allocation6]  }
  0x42   : > { %s3156_s27 = scalar_lea.hbm %s4167_s18, 16 }
  0x43   : > { %p3157_p13 = scmp.ne.s32.totalorder %s4167_s18, %s3156_s27  ;;  %p3163_p5 = scmp.lt.u32.totalorder %s3156_s27, %s4167_s18 }
  0x45   : > { %p3159_p1 = pnand %p3157_p13, %p3634_p0 }
  0x47   : > { %p3160_p6 = pneg %p3159_p1 }
  0x49   : > { %p3165_p9 = pnand %p3163_p5, %p3160_p6 }
  0x4b   : > { %3168 = shalt.err (!%p3165_p9)
}
  0x4c   : > { %s3169_s0 = scalar_lea.vmem %s3622_s1, 16  ;;  %s3176_s25 = scalar_lea.vmem %s3622_s1, 32 }
  0x4d   : > { %p3170_p10 = scmp.ne.s32.totalorder %s3622_s1, %s3169_s0  ;;  %p3177_p4 = scmp.lt.s32.totalorder %s3622_s1, %s3622_s1 }
  0x4e   : > { %p3178_p7 = scmp.lt.s32.totalorder %s3176_s25, %s3169_s0 }
  0x4f   : > { %p3172_p2 = pnand %p3170_p10, %p3634_p0 }
  0x50   : > { %p3179_p8 = por %p3178_p7, %p3177_p4 }
  0x51   : > { %p3173_p3 = pneg %p3172_p2 }
  0x53   : > { %p3180_p11 = pnand %p3179_p8, %p3173_p3 }
  0x55   : > { %3183 = shalt.err (!%p3180_p11)
}
  0x56   : > { %2985 = dma.hbm_to_vmem [thread:$0]  (!%p3618_p12), %s4167_s18, 16, %s3622_s1, [#allocation9]  }
  0x57   : > { %s3184_s5 = scalar_lea.hbm %s4170_s21, 16 }
  0x58   : > { %p3185_p13 = scmp.ne.s32.totalorder %s4170_s21, %s3184_s5  ;;  %p3191_p5 = scmp.lt.u32.totalorder %s3184_s5, %s4170_s21 }
  0x5a   : > { %p3187_p1 = pnand %p3185_p13, %p3634_p0 }
  0x5c   : > { %p3188_p6 = pneg %p3187_p1 }
  0x5e   : > { %p3193_p9 = pnand %p3191_p5, %p3188_p6 }
  0x60   : > { %3196 = shalt.err (!%p3193_p9)
}
  0x61   : > { %s3197_s1 = scalar_lea.vmem %s3624_s6, 16  ;;  %s3204_s25 = scalar_lea.vmem %s3624_s6, 32 }
  0x62   : > { %p3198_p10 = scmp.ne.s32.totalorder %s3624_s6, %s3197_s1  ;;  %p3205_p4 = scmp.lt.s32.totalorder %s3624_s6, %s3624_s6 }
  0x63   : > { %p3206_p7 = scmp.lt.s32.totalorder %s3204_s25, %s3197_s1 }
  0x64   : > { %p3200_p2 = pnand %p3198_p10, %p3634_p0 }
  0x65   : > { %p3207_p8 = por %p3206_p7, %p3205_p4 }
  0x66   : > { %p3201_p3 = pneg %p3200_p2 }
  0x68   : > { %p3208_p11 = pnand %p3207_p8, %p3201_p3 }
  0x6a   : > { %3211 = shalt.err (!%p3208_p11)
}
  0x6b   : > { %2991 = dma.hbm_to_vmem [thread:$0]  (!%p3618_p12), %s4170_s21, 16, %s3624_s6, [#allocation12]  }
  0x6c   : > { %s3407_s28 = smov [#allocation2]   ;;  %s3408_s5 = smov [#allocation7]  }
  0x6d   : > { %s664_s24 = sshll.u32 %s3407_s28, 4  ;;  %s692_s27 = sshll.u32 %s3408_s5, 4  ;;  %s665_s24 = int_to_ptr.vmem [resolvable:$true] %s664_s24  ;;  %s693_s27 = int_to_ptr.vmem [resolvable:$true] %s692_s27 }
  0x6e   : > { %s3212_s0 = scalar_lea.hbm %s4162_s13, 16 }
  0x6f   : > { %p3213_p13 = scmp.ne.s32.totalorder %s4162_s13, %s3212_s0  ;;  %p3219_p5 = scmp.lt.u32.totalorder %s3212_s0, %s4162_s13 }
  0x71   : > { %p3215_p1 = pnand %p3213_p13, %p3634_p0 }
  0x73   : > { %p3216_p6 = pneg %p3215_p1 }
  0x75   : > { %p3221_p9 = pnand %p3219_p5, %p3216_p6 }
  0x77   : > { %3224 = shalt.err (!%p3221_p9)
}
  0x78   : > { %s3225_s6 = scalar_lea.vmem %s665_s24, 16  ;;  %s3232_s30 = scalar_lea.vmem %s665_s24, 32 }
  0x79   : > { %p3226_p10 = scmp.ne.s32.totalorder %s665_s24, %s3225_s6  ;;  %p3233_p4 = scmp.lt.s32.totalorder %s665_s24, %s665_s24 }
  0x7a   : > { %p3234_p7 = scmp.lt.s32.totalorder %s3232_s30, %s3225_s6 }
  0x7b   : > { %p3228_p2 = pnand %p3226_p10, %p3634_p0 }
  0x7c   : > { %p3235_p8 = por %p3234_p7, %p3233_p4 }
  0x7d   : > { %p3229_p3 = pneg %p3228_p2 }
  0x7f   : > { %p3236_p11 = pnand %p3235_p8, %p3229_p3 }
  0x81   : > { %3239 = shalt.err (!%p3236_p11)
}
  0x82   : > { %2976 = dma.hbm_to_vmem [thread:$0]  (!%p3618_p12), %s4162_s13, 16, %s665_s24, [#allocation3]  }
  0x83   : > { %s3240_s29 = scalar_lea.hbm %s4166_s17, 16 }
  0x84   : > { %p3241_p13 = scmp.ne.s32.totalorder %s4166_s17, %s3240_s29  ;;  %p3247_p5 = scmp.lt.u32.totalorder %s3240_s29, %s4166_s17 }
  0x86   : > { %p3243_p1 = pnand %p3241_p13, %p3634_p0 }
  0x88   : > { %p3244_p6 = pneg %p3243_p1 }
  0x8a   : > { %p3249_p9 = pnand %p3247_p5, %p3244_p6 }
  0x8c   : > { %3252 = shalt.err (!%p3249_p9)
}
  0x8d   : > { %s3253_s6 = scalar_lea.vmem %s693_s27, 16  ;;  %s3260_s24 = scalar_lea.vmem %s693_s27, 32 }
  0x8e   : > { %p3254_p10 = scmp.ne.s32.totalorder %s693_s27, %s3253_s6  ;;  %p3261_p4 = scmp.lt.s32.totalorder %s693_s27, %s693_s27 }
  0x8f   : > { %p3262_p7 = scmp.lt.s32.totalorder %s3260_s24, %s3253_s6 }
  0x90   : > { %p3256_p2 = pnand %p3254_p10, %p3634_p0 }
  0x91   : > { %p3263_p8 = por %p3262_p7, %p3261_p4 }
  0x92   : > { %p3257_p3 = pneg %p3256_p2 }
  0x94   : > { %p3264_p11 = pnand %p3263_p8, %p3257_p3 }
  0x96   : > { %3267 = shalt.err (!%p3264_p11)
}
  0x97   : > { %2982 = dma.hbm_to_vmem [thread:$0]  (!%p3618_p12), %s4166_s17, 16, %s693_s27, [#allocation6]  }
  0x98   : > { %s3409_s5 = smov [#allocation10]   ;;  %s3410_s26 = smov [#allocation13]  }
  0x99   : > { %s714_s15 = sshll.u32 %s3409_s5, 4  ;;  %s742_s29 = sshll.u32 %s3410_s26, 4  ;;  %s715_s15 = int_to_ptr.vmem [resolvable:$true] %s714_s15  ;;  %s743_s29 = int_to_ptr.vmem [resolvable:$true] %s742_s29 }
  0x9a   : > { %s3268_s25 = scalar_lea.hbm %s4168_s19, 16 }
  0x9b   : > { %p3269_p13 = scmp.ne.s32.totalorder %s4168_s19, %s3268_s25  ;;  %p3275_p5 = scmp.lt.u32.totalorder %s3268_s25, %s4168_s19 }
  0x9d   : > { %p3271_p1 = pnand %p3269_p13, %p3634_p0 }
  0x9f   : > { %p3272_p6 = pneg %p3271_p1 }
  0xa1   : > { %p3277_p9 = pnand %p3275_p5, %p3272_p6 }
  0xa3   : > { %3280 = shalt.err (!%p3277_p9)
}
  0xa4   : > { %s3281_s27 = scalar_lea.vmem %s715_s15, 16  ;;  %s3288_s28 = scalar_lea.vmem %s715_s15, 32 }
  0xa5   : > { %p3282_p10 = scmp.ne.s32.totalorder %s715_s15, %s3281_s27  ;;  %p3289_p4 = scmp.lt.s32.totalorder %s715_s15, %s715_s15 }
  0xa6   : > { %p3290_p7 = scmp.lt.s32.totalorder %s3288_s28, %s3281_s27 }
  0xa7   : > { %p3284_p2 = pnand %p3282_p10, %p3634_p0 }
  0xa8   : > { %p3291_p8 = por %p3290_p7, %p3289_p4 }
  0xa9   : > { %p3285_p3 = pneg %p3284_p2 }
  0xab   : > { %p3292_p11 = pnand %p3291_p8, %p3285_p3 }
  0xad   : > { %3295 = shalt.err (!%p3292_p11)
}
  0xae   : > { %2988 = dma.hbm_to_vmem [thread:$0]  (!%p3618_p12), %s4168_s19, 16, %s715_s15, [#allocation9]  }
  0xaf   : > { %s3296_s25 = scalar_lea.hbm %s4172_s23, 16 }
  0xb0   : > { %p3297_p13 = scmp.ne.s32.totalorder %s4172_s23, %s3296_s25  ;;  %p3303_p5 = scmp.lt.u32.totalorder %s3296_s25, %s4172_s23 }
  0xb2   : > { %p3299_p1 = pnand %p3297_p13, %p3634_p0 }
  0xb4   : > { %p3300_p6 = pneg %p3299_p1 }
  0xb6   : > { %p3305_p9 = pnand %p3303_p5, %p3300_p6 }
  0xb8   : > { %3308 = shalt.err (!%p3305_p9)
}
  0xb9   : > { %s3309_s27 = scalar_lea.vmem %s743_s29, 16  ;;  %s3316_s15 = scalar_lea.vmem %s743_s29, 32 }
  0xba   : > { %p3310_p10 = scmp.ne.s32.totalorder %s743_s29, %s3309_s27  ;;  %p3317_p4 = scmp.lt.s32.totalorder %s743_s29, %s743_s29 }
  0xbb   : > { %p3318_p7 = scmp.lt.s32.totalorder %s3316_s15, %s3309_s27 }
  0xbc   : > { %p3312_p2 = pnand %p3310_p10, %p3634_p0 }
  0xbd   : > { %p3319_p8 = por %p3318_p7, %p3317_p4 }
  0xbe   : > { %p3313_p3 = pneg %p3312_p2 }
  0xc0   : > { %p3320_p11 = pnand %p3319_p8, %p3313_p3 }
  0xc2   : > { %3323 = shalt.err (!%p3320_p11)
}
  0xc3   : > { %2994 = dma.hbm_to_vmem [thread:$0]  (!%p3618_p12), %s4172_s23, 16, %s743_s29, [#allocation12]  }
  0xc4   : > { %p4223_p13 = scmp.ne.s32.totalorder %s4219_s9, 0 }
  0xc5   : > { %p4224_p1 = scmp.eq.s32.totalorder (!%p4223_p13), %s3582_s7, 0 }
  0xc6   : > { %782 = sbr.rel (%p4223_p13) target bundleno = 4519 (0x11a7), region = 116 }
  0xcd   : > { %3369 = dma.done.wait (%p4224_p1), [#allocation3], 16   ;;  %p4225_p0 = pmov %p4224_p1 }
  0xcf   : > { %3371 = vsyncadd (%p4225_p0), [#allocation3], 4294967280  ;;  %p4226_p6 = pmov %p4225_p0 }
  0xd0   : > { %p4227_p5 = pmov %p4225_p0 }
  0xd1   : > { %3373 = dma.done.wait (%p4226_p6), [#allocation6], 32  }
  0xd2   : > { %3375 = vsyncadd (%p4227_p5), [#allocation6], 4294967264  ;;  %p4228_p9 = pmov %p4225_p0 }
  0xd3   : > { %p4229_p12 = pmov %p4225_p0 }
  0xd4   : > { %3377 = dma.done.wait (%p4228_p9), [#allocation9], 32  }
  0xd5   : > { %3379 = vsyncadd (%p4229_p12), [#allocation9], 4294967264  ;;  %p4230_p10 = pmov %p4225_p0 }
  0xd6   : > { %p4231_p2 = pmov %p4225_p0 }
  0xd7   : > { %3381 = dma.done.wait (%p4230_p10), [#allocation12], 32  }
  0xd8   : > { %3383 = vsyncadd (%p4231_p2), [#allocation12], 4294967264  ;;  %p888_p3 = scmp.lt.s32.totalorder %s3582_s7, 1  ;;  %s4232_s26 = sld [smem:[#allocation27_spill]]  ;;  %vm926_vm0 = vcmask 261120   ;;  %v3411_v9 = vmov 0.0   ;;  %v911_v43 = vlaneseq }
  0xd9   : > { %s4233_s4 = sld [smem:[#allocation33_spill]]  ;;  %2787 = vmatprep.subr.bf16.mxu1 %v3411_v9  ;;  %vm3412_vm1 = vmmov 0   ;;  %2801 = vmatprep.subr.bf16.mxu0 %v3411_v9  ;;  %s4234_s15 = sld [smem:[#allocation31_spill]]  ;;  %v3420_v30 = vmov 0   ;;  %vm1028_vm2 = vcmask 64512   ;;  %vm1092_vm4 = vcmask 1043456  }
  0xda   : > { %s3790_s9 = scalar_select %p888_p3, %s3582_s7, 1  ;;  %2791 = vmatprep.mubr.msk.bf16.mxu1 %vm3412_vm1, %v3411_v9  ;;  %2803 = vmatprep.mubr.msk.bf16.mxu0 %vm3412_vm1, %v3411_v9  ;;  %v912_v44 = vshrl.u32 %v911_v43, 7  ;;  %v914_v45 = vand.u32 127, %v911_v43  ;;  %v3421_v46 = vmov -1e+30   ;;  %vm1480_vm5 = vcmask 130048  }
  0xdb   : > { %s4235_s3 = sld [smem:[#allocation32_spill]]  ;;  %s3413_s1 = smov 96   ;;  %3073 = vset.pattern.permute.xlu0 %v3420_v30  ;;  %3072 = vset.pattern.permute.xlu1 %v3420_v30  ;;  %vm1482_vm6 = vcmask 195584   ;;  %vm2382_vm7 = vcmask 523264  }
  0xdc   : > { %s3793_s8 = sshll.u32 %s3790_s9, 2  ;;  %s3414_s25 = smov 120   ;;  %vm915_vm3 = vcmp.le.s32.totalorder %v914_v45, %v912_v44 }
  0xdd   : > { %s4189_s6 = smov 88   ;;  %s4195_s24 = smov 80   ;;  %v916_v47 = vsel %vm915_vm3, 0.0, %v3421_v46 }
  0xde   : > { %s891_s0 = scalar_lea.vmem %s4232_s26, %s3793_s8  ;;  %s3417_s30 = smov 112  }
  0xdf   : > { %v908_v0 = vld [vmem:[%s891_s0] sm:$0xf]  ;;  %v3075_v10 = vld [vmem:[%s4233_s4 + $0x8] sm:$0xff]   ;;  %s4236_s0 = sld [smem:[#allocation34_spill]]  ;;  %s4194_s27 = smov 72  }
  0xe0   : > { %v3799_v1 = vunpack.c.l.bf16 %v908_v0  ;;  %v3074_v8 = vld [vmem:[%s4233_s4] sm:$0xff]   ;;  %s3419_s28 = smov 104   ;;  %s4237_s29 = sld [smem:[#allocation29_spill]] }
  0xe1   : > { %2788 = vmatpush3.bf16.msra.mxu1 %v3074_v8  ;;  %v2670_v15 = vld [vmem:[%s4234_s15] ss:$0 sm:$0xff]  ;;  %s2668_s15 = sshll.u32 %s3790_s9, 3  ;;  %s3424_s5 = smov 40  }
  0xe2   : > { %v927_v2 = vsel %vm926_vm0, %v3799_v1, 0.0  ;;  %2789 = vmatprep.subr.bf16.mxu1 %v3411_v9  ;;  %v2671_v17 = vld [vmem:[%s4235_s3] ss:$0 sm:$0xff]  ;;  %s3425_s3 = smov 48  }
  0xe3   : > { %928 = vadd.xlane.f32.xlu0 %v927_v2 }
  0xe5   : > { %2790 = vmatpush3.bf16.msra.mxu1 %v3075_v10  ;;  %v2672_v21 = vld [vmem:[%s4236_s0] ss:$0 sm:$0xff]  ;;  %s3422_s0 = smov 56  }
  0xe6   : > { %2795 = vmatprep.subr.bf16.mxu1 %v3411_v9  ;;  %s899_s26 = scalar_lea.vmem %s4237_s29, %s2668_s15  ;;  %s3423_s15 = smov 64  }
  0xe7   : > { %v917_v31 = vld [vmem:[%s899_s26] sm:$0xff]  ;;  %s4192_s29 = smov 8   ;;  %s4190_s26 = smov 24  }
 0x170   : > { %v929_v3 = vpop.xlane.xlu0 %928 }
 0x171   : > { %v931_v4 = vmul.f32 0.03125, %v929_v3 }
 0x173   : > { %v932_v5 = vsub.f32 %v3799_v1, %v931_v4 }
 0x175   : > { %v933_v6 = vmul.f32 %v932_v5, %v932_v5 }
 0x177   : > { %v934_v7 = vsel %vm926_vm0, %v933_v6, 0.0 }
 0x178   : > { %935 = vadd.xlane.f32.xlu0 %v934_v7 }
 0x205   : > { %v936_v11 = vpop.xlane.xlu0 %935 }
 0x206   : > { %v937_v12 = vmul.f32 0.03125, %v936_v11 }
 0x208   : > { %v938_v13 = vadd.f32 1e-05, %v937_v12 }
 0x20a   : > { %3090 = vrsqrt.f32 %v938_v13 }
 0x214   : > { %v3091_v14 = vpop.eup %3090 }
 0x215   : > { %v940_v16 = vmul.f32 %v3091_v14, %v932_v5 }
 0x217   : > { %v947_v18 = vmul.f32 %v2670_v15, %v940_v16 }
 0x219   : > { %v954_v19 = vadd.f32 %v2671_v17, %v947_v18 }
 0x21b   : > { %v955_v20 = vpack.c.bf16 %v954_v19, %v954_v19 }
 0x21d   : > { %2792 = vmatmul.mubr.msk.bf16.vlgmr.msra.gmra.mrb[0].mxu1 %vm926_vm0, %v955_v20 }
 0x21e   : > { %2797 = vmatprep.mubr.msk.bf16.mxu1 %vm3412_vm1, %v3411_v9 }
 0x2f0   : > { %v1016_v22 = vpop.f32.mrb[0].mxu1 }
 0x2f1   : > { %v1017_v23 = vadd.f32 %v2672_v21, %v1016_v22  ;;  %v2793_v24 = vpop.f32.mrb[1].mxu1 }
 0x2f2   : > { %v1019_v25 = vpop.f32.mrb[2].mxu1 }
 0x2f3   : > { %v1022_v26 = vmul.f32 0.35355338, %v1017_v23  ;;  %v3831_v27 = vpack.c.bf16 %v1017_v23, %v1017_v23  ;;  %v2794_v28 = vpop.f32.mrb[3].mxu1 }
 0x2f5   : > { %v1023_v29 = vpack.c.bf16 %v1022_v26, %v1022_v26  ;;  %1026 = vrot.lane.b32.xlu1 %v3831_v27, %s3413_s1 }
 0x2f7   : > { %1137 = vrot.lane.b32.xlu0 %v1023_v29, %s3414_s25 }
 0x2f9   : > { %1139 = vrot.lane.b32.xlu1 %v3831_v27, %s4189_s6  ;;  %s4191_s6 = smov 16  }
 0x2fd   : > { %1249 = vrot.lane.b32.xlu1 %v3831_v27, %s4195_s24 }
 0x301   : > { %1247 = vrot.lane.b32.xlu1 %v1023_v29, %s3417_s30 }
 0x305   : > { %1359 = vrot.lane.b32.xlu1 %v3831_v27, %s4194_s27  ;;  %s4240_s27 = sld [smem:[#allocation28_spill]] }
 0x309   : > { %1357 = vrot.lane.b32.xlu1 %v1023_v29, %s3419_s28 }
 0x30b   : > { %s895_s24 = scalar_lea.vmem %s4240_s27, %s3793_s8 }
 0x30d   : > { %920 = vperm.xlu1 %3072, %v917_v31  }
 0x367   : > { %v1027_v32 = vpop.permute.xlu1 %1026 }
 0x368   : > { %v1033_v33 = vsel %vm1028_vm2, %v1027_v32, 0 }
 0x369   : > { %2796 = vmatpush3.bf16.xpose.msra.mxu1 %v1033_v33  ;;  %v1138_v37 = vpop.permute.xlu0 %1137 }
 0x36a   : > { %2807 = vmatprep.subr.bf16.mxu1 %v3411_v9 }
 0x36b   : > { %v1140_v34 = vpop.permute.xlu1 %1139 }
 0x36c   : > { %v1145_v35 = vsel %vm1028_vm2, %v1140_v34, 0 }
 0x36f   : > { %v1250_v36 = vpop.permute.xlu1 %1249 }
 0x370   : > { %2798 = vmatmul.mubr.msk.bf16.vlgmr.msra.gmra.mrb[4].mxu1 %vm1028_vm2, %v1023_v29  ;;  %v1255_v39 = vsel %vm1028_vm2, %v1250_v36, 0 }
 0x371   : > { %2808 = vmatpush3.bf16.xpose.msra.mxu1 %v1145_v35  ;;  %2809 = vmatprep.mubr.msk.bf16.mxu1 %vm3412_vm1, %v3411_v9 }
 0x372   : > { %2819 = vmatprep.subr.bf16.mxu1 %v3411_v9 }
 0x373   : > { %v1248_v38 = vpop.permute.xlu1 %1247 }
 0x377   : > { %v1360_v40 = vpop.permute.xlu1 %1359 }
 0x378   : > { %2810 = vmatmul.mubr.msk.bf16.vlgmr.msra.gmra.mrb[8].mxu1 %vm1028_vm2, %v1138_v37  ;;  %v1365_v41 = vsel %vm1028_vm2, %v1360_v40, 0 }
 0x379   : > { %2820 = vmatpush3.bf16.xpose.msra.mxu1 %v1255_v39  ;;  %2821 = vmatprep.mubr.msk.bf16.mxu1 %vm3412_vm1, %v3411_v9 }
 0x37a   : > { %2831 = vmatprep.subr.bf16.mxu1 %v3411_v9 }
 0x37b   : > { %v1358_v42 = vpop.permute.xlu1 %1357 }
 0x380   : > { %2822 = vmatmul.mubr.msk.bf16.vlgmr.msra.gmra.mrb[12].mxu1 %vm1028_vm2, %v1248_v38 }
 0x381   : > { %2832 = vmatpush3.bf16.xpose.msra.mxu1 %v1365_v41  ;;  %2833 = vmatprep.mubr.msk.bf16.mxu1 %vm3412_vm1, %v3411_v9 }
 0x382   : > { %2843 = vmatprep.subr.bf16.mxu1 %v3411_v9 }
 0x388   : > { %2834 = vmatmul.mubr.msk.bf16.vlgmr.msra.gmra.mrb[16].mxu1 %vm1028_vm2, %v1358_v42 }
 0x389   : > { %2847 = vmatprep.mubr.msk.bf16.mxu1 %vm3412_vm1, %v3411_v9 }
 0x38c   : > { %v921_v48 = vpop.permute.xlu1 %920 }
 0x38d   : > { %v923_v49 = vadd.f32 %v921_v48, %v916_v47 }
 0x443   : > { %v1069_v50 = vpop.f32.mrb[4].mxu1 }
 0x444   : > { %v1070_v51 = vadd.f32 %v1069_v50, %v923_v49  ;;  %v2799_v52 = vpop.f32.mrb[5].mxu1 }
 0x445   : > { %v1072_v53 = vpop.f32.mrb[6].mxu1 }
 0x446   : > { %v2800_v54 = vpop.f32.mrb[7].mxu1  ;;  %v1075_v55 = vsel %vm1028_vm2, %v1070_v51, -inf }
 0x447   : > { %1076 = vmax.xlane.f32.xlu1 %v1075_v55 }
 0x44b   : > { %v1181_v56 = vpop.f32.mrb[8].mxu1 }
 0x44c   : > { %v1182_v57 = vadd.f32 %v1181_v56, %v923_v49  ;;  %v2811_v58 = vpop.f32.mrb[9].mxu1 }
 0x44d   : > { %v1184_v59 = vpop.f32.mrb[10].mxu1 }
 0x44e   : > { %v2812_v60 = vpop.f32.mrb[11].mxu1  ;;  %v1187_v61 = vsel %vm1028_vm2, %v1182_v57, -inf }
 0x44f   : > { %1188 = vmax.xlane.f32.xlu0 %v1187_v61 }
 0x453   : > { %v1291_v62 = vpop.f32.mrb[12].mxu1 }
 0x454   : > { %v1292_v63 = vadd.f32 %v1291_v62, %v923_v49  ;;  %v2823_v0 = vpop.f32.mrb[13].mxu1 }
 0x455   : > { %v1294_v2 = vpop.f32.mrb[14].mxu1 }
 0x456   : > { %v2824_v3 = vpop.f32.mrb[15].mxu1  ;;  %v1297_v4 = vsel %vm1028_vm2, %v1292_v63, -inf }
 0x457   : > { %1298 = vmax.xlane.f32.xlu0 %v1297_v4 }
 0x45b   : > { %v1401_v5 = vpop.f32.mrb[16].mxu1 }
 0x45c   : > { %v1402_v6 = vadd.f32 %v1401_v5, %v923_v49  ;;  %v2835_v7 = vpop.f32.mrb[17].mxu1 }
 0x45d   : > { %v1404_v8 = vpop.f32.mrb[18].mxu1 }
 0x45e   : > { %v2836_v10 = vpop.f32.mrb[19].mxu1  ;;  %v1407_v11 = vsel %vm1028_vm2, %v1402_v6, -inf }
 0x45f   : > { %1408 = vmax.xlane.f32.xlu1 %v1407_v11 }
 0x4d4   : > { %v1077_v12 = vpop.xlane.xlu1 %1076 }
 0x4d5   : > { %v1078_v13 = vsub.f32 %v1070_v51, %v1077_v12 }
 0x4d7   : > { %v1079_v14 = vmul.f32 1.442695, %v1078_v13 }
 0x4d9   : > { %3092 = vpow2.f32 %v1079_v14 }
 0x4dc   : > { %v1189_v15 = vpop.xlane.xlu0 %1188 }
 0x4dd   : > { %v1190_v16 = vsub.f32 %v1182_v57, %v1189_v15 }
 0x4df   : > { %v1191_v17 = vmul.f32 1.442695, %v1190_v16 }
 0x4e1   : > { %3094 = vpow2.f32 %v1191_v17 }
 0x4e3   : > { %v3093_v18 = vpop.eup %3092 }
 0x4e4   : > { %v1299_v19 = vpop.xlane.xlu0 %1298  ;;  %v1081_v20 = vsel %vm1028_vm2, %v3093_v18, 0.0 }
 0x4e5   : > { %v1300_v21 = vsub.f32 %v1292_v63, %v1299_v19  ;;  %1082 = vadd.xlane.f32.xlu0 %v1081_v20 }
 0x4e7   : > { %v1301_v22 = vmul.f32 1.442695, %v1300_v21 }
 0x4e9   : > { %3096 = vpow2.f32 %v1301_v22 }
 0x4eb   : > { %v3095_v23 = vpop.eup %3094 }
 0x4ec   : > { %v1193_v24 = vsel %vm1028_vm2, %v3095_v23, 0.0  ;;  %v1409_v28 = vpop.xlane.xlu1 %1408 }
 0x4ed   : > { %1194 = vadd.xlane.f32.xlu1 %v1193_v24  ;;  %v1410_v29 = vsub.f32 %v1402_v6, %v1409_v28 }
 0x4ef   : > { %v1411_v30 = vmul.f32 1.442695, %v1410_v29 }
 0x4f1   : > { %3098 = vpow2.f32 %v1411_v30 }
 0x4f3   : > { %v3097_v25 = vpop.eup %3096 }
 0x4f4   : > { %v1303_v26 = vsel %vm1028_vm2, %v3097_v25, 0.0 }
 0x4f5   : > { %1304 = vadd.xlane.f32.xlu0 %v1303_v26 }
 0x4fb   : > { %v3099_v31 = vpop.eup %3098 }
 0x4fc   : > { %v1413_v32 = vsel %vm1028_vm2, %v3099_v31, 0.0 }
 0x4fe   : > { %1199 = vrot.lane.b32.xlu1 %v3831_v27, %s3422_s0 }
 0x50b   : > { %1087 = vrot.lane.b32.xlu0 %v3831_v27, %s3423_s15  ;;  %s4238_s15 = sld [smem:[#allocation35_spill]] }
 0x50f   : > { %1419 = vrot.lane.b32.xlu0 %v3831_v27, %s3424_s5  ;;  %s885_s5 = sand.u32 1, %s3394_s2  }
 0x511   : > { %v3076_v0 = vld [vmem:[%s4238_s15] sm:$0xff]   ;;  %v3077_v2 = vld [vmem:[%s4238_s15 + $0x8] sm:$0xff]  }
 0x512   : > { %2844 = vmatpush3.bf16.msra.mxu1 %v3076_v0 }
 0x513   : > { %2845 = vmatprep.subr.bf16.mxu1 %v3411_v9 }
 0x516   : > { %2846 = vmatpush3.bf16.msra.mxu1 %v3077_v2 }
 0x517   : > { %2859 = vmatprep.subr.bf16.mxu1 %v3411_v9 }
 0x522   : > { %1414 = vadd.xlane.f32.xlu1 %v1413_v32 }
 0x533   : > { %1309 = vrot.lane.b32.xlu1 %v3831_v27, %s3425_s3  ;;  %s4239_s3 = sld [smem:[#allocation36_spill]] }
 0x539   : > { %v2684_v19 = vld [vmem:[%s4239_s3] ss:$0 sm:$0xff]  ;;  %s4244_s3 = smov 88  }
 0x572   : > { %v1083_v33 = vpop.xlane.xlu0 %1082 }
 0x573   : > { %3100 = vrcp.f32 %v1083_v33  ;;  %v3078_v33 = vld [vmem:[%s4163_s14] sm:$0xff]  }
 0x57a   : > { %v1195_v34 = vpop.xlane.xlu1 %1194 }
 0x57b   : > { %3102 = vrcp.f32 %v1195_v34  ;;  %v910_v34 = vld [vmem:[%s895_s24] sm:$0xf] }
 0x57d   : > { %v3101_v35 = vpop.eup %3100 }
 0x57e   : > { %v1085_v37 = vmul.f32 %v3101_v35, %v3093_v18  ;;  %v1200_v40 = vpop.permute.xlu1 %1199  ;;  %v3080_v35 = vld [vmem:[%s4161_s12] sm:$0xff]  }
 0x57f   : > { %v1205_v43 = vsel %vm1092_vm4, %v1200_v40, 0 }
 0x580   : > { %v1086_v41 = vpack.c.bf16 %v1085_v37, %v1085_v37 }
 0x582   : > { %v1305_v36 = vpop.xlane.xlu0 %1304 }
 0x583   : > { %3104 = vrcp.f32 %v1305_v36  ;;  %v3081_v36 = vld [vmem:[%s4161_s12 + $0x8] sm:$0xff]  }
 0x585   : > { %v3103_v42 = vpop.eup %3102 }
 0x586   : > { %v1088_v38 = vpop.permute.xlu0 %1087  ;;  %v1197_v27 = vmul.f32 %v3103_v42, %v3095_v23 }
 0x587   : > { %v1094_v39 = vsel %vm1092_vm4, %v1088_v38, 0 }
 0x588   : > { %2802 = vmatpush3.bf16.msra.mxu0 %v1094_v39  ;;  %v1198_v44 = vpack.c.bf16 %v1197_v27, %v1197_v27 }
 0x589   : > { %2813 = vmatprep.subr.bf16.mxu0 %v3411_v9 }
 0x58a   : > { %v1420_v50 = vpop.permute.xlu0 %1419 }
 0x58b   : > { %2804 = vmatmul.mubr.msk.bf16.vlgmr.msra.gmra.mrb[0].mxu0 %vm1028_vm2, %v1086_v41  ;;  %v1425_v52 = vsel %vm1092_vm4, %v1420_v50, 0  ;;  %v2688_v41 = vld [vmem:[%s4159_s10] ss:$0 sm:$0xff] }
 0x58c   : > { %2814 = vmatpush3.bf16.msra.mxu0 %v1205_v43  ;;  %2815 = vmatprep.mubr.msk.bf16.mxu0 %vm3412_vm1, %v3411_v9  ;;  %v2689_v43 = vld [vmem:[%s4160_s11] ss:$0 sm:$0xff] }
 0x58d   : > { %2825 = vmatprep.subr.bf16.mxu0 %v3411_v9  ;;  %v3105_v45 = vpop.eup %3104 }
 0x58e   : > { %v1307_v47 = vmul.f32 %v3105_v45, %v3097_v25 }
 0x590   : > { %v1308_v51 = vpack.c.bf16 %v1307_v47, %v1307_v47 }
 0x593   : > { %2816 = vmatmul.mubr.msk.bf16.vlgmr.msra.gmra.mrb[4].mxu0 %vm1028_vm2, %v1198_v44 }
 0x594   : > { %2827 = vmatprep.mubr.msk.bf16.mxu0 %vm3412_vm1, %v3411_v9 }
 0x5af   : > { %v1415_v46 = vpop.xlane.xlu1 %1414 }
 0x5b0   : > { %3106 = vrcp.f32 %v1415_v46  ;;  %v2694_v46 = vld [vmem:[#allocation5] ss:$0 sm:$0xff] }
 0x5b3   : > { %v1310_v48 = vpop.permute.xlu1 %1309 }
 0x5b4   : > { %v1315_v49 = vsel %vm1092_vm4, %v1310_v48, 0 }
 0x5b5   : > { %2826 = vmatpush3.bf16.msra.mxu0 %v1315_v49 }
 0x5b6   : > { %2837 = vmatprep.subr.bf16.mxu0 %v3411_v9 }
 0x5b8   : > { %2828 = vmatmul.mubr.msk.bf16.vlgmr.msra.gmra.mrb[8].mxu0 %vm1028_vm2, %v1308_v51 }
 0x5b9   : > { %2838 = vmatpush3.bf16.msra.mxu0 %v1425_v52  ;;  %2839 = vmatprep.mubr.msk.bf16.mxu0 %vm3412_vm1, %v3411_v9 }
 0x5ba   : > { %v3107_v53 = vpop.eup %3106  ;;  %2851 = vmatprep.subr.bf16.mxu0 %v3411_v9 }
 0x5bb   : > { %v1417_v54 = vmul.f32 %v3107_v53, %v3099_v31 }
 0x5bd   : > { %v1418_v55 = vpack.c.bf16 %v1417_v54, %v1417_v54  ;;  %v2690_v54 = vld [vmem:[#allocation2] ss:$0 sm:$0xff] }
 0x5c0   : > { %2840 = vmatmul.mubr.msk.bf16.vlgmr.msra.gmra.mrb[12].mxu0 %vm1028_vm2, %v1418_v55 }
 0x5c1   : > { %2855 = vmatprep.mubr.msk.bf16.mxu0 %vm3412_vm1, %v3411_v9  ;;  %2852 = vmatpush3.bf16.msra.mxu0 %v3080_v35 }
 0x5c2   : > { %2853 = vmatprep.subr.bf16.mxu0 %v3411_v9 }
 0x5c5   : > { %2854 = vmatpush3.bf16.msra.mxu0 %v3081_v36 }
 0x5c6   : > { %2867 = vmatprep.subr.bf16.mxu0 %v3411_v9 }
 0x65e   : > { %v1130_v56 = vpop.f32.mrb[0].mxu0 }
 0x65f   : > { %v2805_v57 = vpop.f32.mrb[1].mxu0 }
 0x660   : > { %v1133_v58 = vpop.f32.mrb[2].mxu0 }
 0x661   : > { %v2806_v59 = vpop.f32.mrb[3].mxu0 }
 0x666   : > { %v1241_v60 = vpop.f32.mrb[4].mxu0 }
 0x667   : > { %1468 = vrot.lane.b32.xlu1 %v1241_v60, %s4192_s29  ;;  %v2817_v61 = vpop.f32.mrb[5].mxu0  ;;  %s4245_s29 = smov 8  }
 0x668   : > { %v1244_v62 = vpop.f32.mrb[6].mxu0 }
 0x669   : > { %v2818_v63 = vpop.f32.mrb[7].mxu0 }
 0x68b   : > { %v1351_v3 = vpop.f32.mrb[8].mxu0 }
 0x68c   : > { %1472 = vrot.lane.b32.xlu0 %v1351_v3, %s4191_s6  ;;  %v2829_v4 = vpop.f32.mrb[9].mxu0 }
 0x68d   : > { %v1354_v5 = vpop.f32.mrb[10].mxu0 }
 0x68e   : > { %v2830_v6 = vpop.f32.mrb[11].mxu0 }
 0x693   : > { %v1461_v7 = vpop.f32.mrb[12].mxu0 }
 0x694   : > { %1476 = vrot.lane.b32.xlu1 %v1461_v7, %s4190_s26  ;;  %v2841_v8 = vpop.f32.mrb[13].mxu0  ;;  %s2665_s26 = sshll.u32 %s885_s5, 5 }
 0x695   : > { %v1464_v10 = vpop.f32.mrb[14].mxu0  ;;  %s4016_s6 = scalar_lea.vmem [#allocation14], %s2665_s26  ;;  %s4248_s26 = sld [smem:[#allocation25_spill]] }
 0x696   : > { %v2842_v11 = vpop.f32.mrb[15].mxu0  ;;  %s2459_s24 = sshll.u32 %s4016_s6, 4  ;;  %s4098_s24 = int_to_ptr.vmem [resolvable:$true] %s2459_s24 }
 0x69b   : > { %p4251_p7 = scmp.ne.s32.totalorder %s4248_s26, 0 }
 0x6d9   : > { %v1469_v12 = vpop.permute.xlu1 %1468 }
 0x6da   : > { %v1479_v14 = vsel %vm1028_vm2, %v1130_v56, %v1469_v12 }
 0x6fe   : > { %v1473_v13 = vpop.permute.xlu0 %1472 }
 0x6ff   : > { %v1481_v15 = vsel %vm1480_vm5, %v1479_v14, %v1473_v13 }
 0x706   : > { %v1477_v16 = vpop.permute.xlu1 %1476 }
 0x707   : > { %v1483_v17 = vsel %vm1482_vm6, %v1481_v15, %v1477_v16 }
 0x708   : > { %v1484_v18 = vpack.c.bf16 %v1483_v17, %v1483_v17 }
 0x70a   : > { %2848 = vmatmul.mubr.msk.bf16.vlgmr.msra.gmra.mrb[20].mxu1 %vm926_vm0, %v1484_v18 }
 0x70b   : > { %2863 = vmatprep.mubr.msk.bf16.mxu1 %vm3412_vm1, %v3411_v9  ;;  %2860 = vmatpush3.bf16.msra.mxu1 %v3078_v33 }
 0x70c   : > { %2861 = vmatprep.subr.bf16.mxu1 %v3411_v9 }
 0x7dd   : > { %v1545_v20 = vpop.f32.mrb[20].mxu1 }
 0x7de   : > { %v1546_v21 = vadd.f32 %v2684_v19, %v1545_v20  ;;  %v2849_v22 = vpop.f32.mrb[21].mxu1 }
 0x7df   : > { %v1548_v23 = vpop.f32.mrb[22].mxu1 }
 0x7e0   : > { %v3921_v24 = vadd.f32 %v1546_v21, %v3799_v1  ;;  %v2850_v25 = vpop.f32.mrb[23].mxu1  ;;  %v3079_v1 = vld [vmem:[%s4163_s14 + $0x8] sm:$0xff]  }
 0x7e1   : > { %2862 = vmatpush3.bf16.msra.mxu1 %v3079_v1 }
 0x7e2   : > { %v1555_v26 = vsel %vm926_vm0, %v3921_v24, 0.0  ;;  %2873 = vmatprep.subr.bf16.mxu1 %v3411_v9 }
 0x7e3   : > { %1556 = vadd.xlane.f32.xlu0 %v1555_v26 }
 0x7e4   : > { %2864 = vmatmul.mubr.msk.bf16.vlgmr.msra.gmra.mrb[24].mxu1 %vm926_vm0, %v910_v34 }
 0x7e5   : > { %2875 = vmatprep.mubr.msk.bf16.mxu1 %vm3412_vm1, %v3411_v9 }
 0x870   : > { %v1557_v28 = vpop.xlane.xlu0 %1556 }
 0x871   : > { %v1558_v29 = vmul.f32 0.03125, %v1557_v28 }
 0x873   : > { %v1559_v30 = vsub.f32 %v3921_v24, %v1558_v29 }
 0x875   : > { %v1560_v31 = vmul.f32 %v1559_v30, %v1559_v30 }
 0x877   : > { %v1561_v32 = vsel %vm926_vm0, %v1560_v31, 0.0 }
 0x878   : > { %1562 = vadd.xlane.f32.xlu1 %v1561_v32 }
 0x8b7   : > { %v1709_v47 = vpop.f32.mrb[24].mxu1 }
 0x8b8   : > { %v1710_v48 = vadd.f32 %v2694_v46, %v1709_v47  ;;  %v2865_v49 = vpop.f32.mrb[25].mxu1 }
 0x8b9   : > { %v1712_v50 = vpop.f32.mrb[26].mxu1 }
 0x8ba   : > { %v3959_v51 = vpack.c.bf16 %v1710_v48, %v1710_v48  ;;  %v2866_v52 = vpop.f32.mrb[27].mxu1 }
 0x8bc   : > { %1835 = vrot.lane.b32.xlu0 %v3959_v51, %s3414_s25  ;;  %v1728_v53 = vsel %vm1028_vm2, %v3959_v51, 0 }
 0x8c0   : > { %1947 = vrot.lane.b32.xlu0 %v3959_v51, %s3417_s30 }
 0x8c4   : > { %2059 = vrot.lane.b32.xlu0 %v3959_v51, %s3419_s28 }
 0x905   : > { %v1563_v37 = vpop.xlane.xlu1 %1562 }
 0x906   : > { %v1564_v38 = vmul.f32 0.03125, %v1563_v37 }
 0x908   : > { %v1565_v39 = vadd.f32 1e-05, %v1564_v38 }
 0x90a   : > { %3108 = vrsqrt.f32 %v1565_v39 }
 0x914   : > { %v3109_v40 = vpop.eup %3108 }
 0x915   : > { %v1567_v42 = vmul.f32 %v3109_v40, %v1559_v30 }
 0x917   : > { %v1574_v27 = vmul.f32 %v2688_v41, %v1567_v42 }
 0x919   : > { %v1581_v44 = vadd.f32 %v2689_v43, %v1574_v27 }
 0x91b   : > { %v1582_v45 = vpack.c.bf16 %v1581_v44, %v1581_v44 }
 0x91d   : > { %2856 = vmatmul.mubr.msk.bf16.vlgmr.msra.gmra.mrb[16].mxu0 %vm926_vm0, %v1582_v45 }
 0x91e   : > { %2869 = vmatprep.mubr.msk.bf16.mxu0 %vm3412_vm1, %v3411_v9  ;;  %2868 = vmatpush3.bf16.xpose.msra.mxu0 %v1728_v53 }
 0x91f   : > { %2879 = vmatprep.subr.bf16.mxu0 %v3411_v9 }
 0x92e   : > { %v1836_v61 = vpop.permute.xlu0 %1835 }
 0x92f   : > { %v1841_v63 = vsel %vm1028_vm2, %v1836_v61, 0 }
 0x932   : > { %v1948_v0 = vpop.permute.xlu0 %1947 }
 0x933   : > { %v1953_v3 = vsel %vm1028_vm2, %v1948_v0, 0 }
 0x936   : > { %v2060_v4 = vpop.permute.xlu0 %2059 }
 0x937   : > { %v2065_v6 = vsel %vm1028_vm2, %v2060_v4, 0 }
 0x9f0   : > { %v1643_v55 = vpop.f32.mrb[16].mxu0 }
 0x9f1   : > { %v1644_v56 = vadd.f32 %v2690_v54, %v1643_v55  ;;  %v2857_v57 = vpop.f32.mrb[17].mxu0 }
 0x9f2   : > { %v1646_v58 = vpop.f32.mrb[18].mxu0 }
 0x9f3   : > { %v1715_v59 = vmul.f32 0.35355338, %v1644_v56  ;;  %v2858_v60 = vpop.f32.mrb[19].mxu0 }
 0x9f5   : > { %v1716_v62 = vpack.c.bf16 %v1715_v59, %v1715_v59 }
 0x9f7   : > { %1833 = vrot.lane.b32.xlu1 %v1716_v62, %s3414_s25  ;;  %2870 = vmatmul.mubr.msk.bf16.vlgmr.msra.gmra.mrb[20].mxu0 %vm1028_vm2, %v1716_v62 }
 0x9f8   : > { %2880 = vmatpush3.bf16.xpose.msra.mxu0 %v1841_v63  ;;  %2881 = vmatprep.mubr.msk.bf16.mxu0 %vm3412_vm1, %v3411_v9 }
 0x9f9   : > { %2891 = vmatprep.subr.bf16.mxu0 %v3411_v9 }
 0x9fb   : > { %1945 = vrot.lane.b32.xlu1 %v1716_v62, %s3417_s30  ;;  %s4249_s30 = sld [smem:[#allocation39_spill]] }
 0x9ff   : > { %2057 = vrot.lane.b32.xlu1 %v1716_v62, %s3419_s28  ;;  %s4241_s28 = sld [smem:[#allocation30_spill]] }
 0xa05   : > { %s902_s0 = scalar_lea.vmem %s4241_s28, %s3790_s9  ;;  %s4242_s9 = smov 80  }
 0xa06   : > { %v2698_v8 = vld [vmem:[%s902_s0] ss:$0 sm:$0xff]  ;;  %s4246_s28 = smov 16   ;;  %s4247_s0 = smov 24  }
 0xa69   : > { %v1834_v2 = vpop.permute.xlu1 %1833 }
 0xa6a   : > { %2882 = vmatmul.mubr.msk.bf16.vlgmr.msra.gmra.mrb[24].mxu0 %vm1028_vm2, %v1834_v2 }
 0xa6b   : > { %2892 = vmatpush3.bf16.xpose.msra.mxu0 %v1953_v3  ;;  %2893 = vmatprep.mubr.msk.bf16.mxu0 %vm3412_vm1, %v3411_v9 }
 0xa6c   : > { %2903 = vmatprep.subr.bf16.mxu0 %v3411_v9 }
 0xa6d   : > { %v1946_v5 = vpop.permute.xlu1 %1945 }
 0xa71   : > { %v2058_v7 = vpop.permute.xlu1 %2057 }
 0xa72   : > { %2894 = vmatmul.mubr.msk.bf16.vlgmr.msra.gmra.mrb[28].mxu0 %vm1028_vm2, %v1946_v5 }
 0xa73   : > { %2904 = vmatpush3.bf16.xpose.msra.mxu0 %v2065_v6  ;;  %2905 = vmatprep.mubr.msk.bf16.mxu0 %vm3412_vm1, %v3411_v9 }
 0xa74   : > { %2915 = vmatprep.subr.bf16.mxu0 %v3411_v9 }
 0xa7a   : > { %2906 = vmatmul.mubr.msk.bf16.vlgmr.msra.gmra.mrb[32].mxu0 %vm1028_vm2, %v2058_v7 }
 0xa7b   : > { %2919 = vmatprep.mubr.msk.bf16.mxu0 %vm3412_vm1, %v3411_v9 }
 0xaca   : > { %v1764_v10 = vpop.f32.mrb[20].mxu0 }
 0xacb   : > { %v1765_v11 = vadd.f32 %v2698_v8, %v1764_v10  ;;  %v2871_v12 = vpop.f32.mrb[21].mxu0 }
 0xacc   : > { %v1767_v13 = vpop.f32.mrb[22].mxu0 }
 0xacd   : > { %v2872_v14 = vpop.f32.mrb[23].mxu0  ;;  %v1770_v15 = vsel %vm1028_vm2, %v1765_v11, -inf }
 0xace   : > { %1771 = vmax.xlane.f32.xlu0 %v1770_v15 }
 0xb3d   : > { %v1877_v16 = vpop.f32.mrb[24].mxu0 }
 0xb3e   : > { %v1878_v17 = vadd.f32 %v2698_v8, %v1877_v16  ;;  %v2883_v18 = vpop.f32.mrb[25].mxu0 }
 0xb3f   : > { %v1880_v19 = vpop.f32.mrb[26].mxu0 }
 0xb40   : > { %v2884_v20 = vpop.f32.mrb[27].mxu0  ;;  %v1883_v21 = vsel %vm1028_vm2, %v1878_v17, -inf }
 0xb41   : > { %1884 = vmax.xlane.f32.xlu1 %v1883_v21  ;;  %v3082_v20 = vld [vmem:[%s4165_s16] sm:$0xff]  }
 0xb42   : > { %2916 = vmatpush3.bf16.msra.mxu0 %v3082_v20 }
 0xb43   : > { %2917 = vmatprep.subr.bf16.mxu0 %v3411_v9 }
 0xb45   : > { %v1989_v22 = vpop.f32.mrb[28].mxu0 }
 0xb46   : > { %v1990_v23 = vadd.f32 %v2698_v8, %v1989_v22  ;;  %v2895_v25 = vpop.f32.mrb[29].mxu0 }
 0xb47   : > { %v1992_v26 = vpop.f32.mrb[30].mxu0 }
 0xb48   : > { %v2896_v28 = vpop.f32.mrb[31].mxu0  ;;  %v1995_v29 = vsel %vm1028_vm2, %v1990_v23, -inf  ;;  %v3083_v26 = vld [vmem:[%s4165_s16 + $0x8] sm:$0xff]  }
 0xb49   : > { %1996 = vmax.xlane.f32.xlu0 %v1995_v29  ;;  %2918 = vmatpush3.bf16.msra.mxu0 %v3083_v26 }
 0xb4a   : > { %2931 = vmatprep.subr.bf16.mxu0 %v3411_v9 }
 0xb4d   : > { %v2101_v30 = vpop.f32.mrb[32].mxu0 }
 0xb4e   : > { %v2102_v31 = vadd.f32 %v2698_v8, %v2101_v30  ;;  %v2907_v32 = vpop.f32.mrb[33].mxu0 }
 0xb4f   : > { %v2104_v33 = vpop.f32.mrb[34].mxu0 }
 0xb50   : > { %v2908_v1 = vpop.f32.mrb[35].mxu0  ;;  %v2107_v34 = vsel %vm1028_vm2, %v2102_v31, -inf }
 0xb51   : > { %2108 = vmax.xlane.f32.xlu0 %v2107_v34 }
 0xb5b   : > { %v1772_v35 = vpop.xlane.xlu0 %1771 }
 0xb5c   : > { %v1773_v36 = vsub.f32 %v1765_v11, %v1772_v35 }
 0xb5e   : > { %v1774_v37 = vmul.f32 1.442695, %v1773_v36 }
 0xb60   : > { %3110 = vpow2.f32 %v1774_v37 }
 0xb6a   : > { %v3111_v38 = vpop.eup %3110 }
 0xb6b   : > { %v1776_v39 = vsel %vm1028_vm2, %v3111_v38, 0.0 }
 0xb6c   : > { %1777 = vadd.xlane.f32.xlu1 %v1776_v39 }
 0xb7d   : > { %1784 = vrot.lane.b32.xlu1 %v3959_v51, %s3413_s1  ;;  %s4243_s1 = smov 72  }
 0xbce   : > { %v1885_v40 = vpop.xlane.xlu1 %1884 }
 0xbcf   : > { %v1886_v41 = vsub.f32 %v1878_v17, %v1885_v40 }
 0xbd1   : > { %v1887_v42 = vmul.f32 1.442695, %v1886_v41 }
 0xbd3   : > { %3112 = vpow2.f32 %v1887_v42  ;;  %v2710_v42 = vld [vmem:[#allocation7] ss:$0 sm:$0xff] }
 0xbd6   : > { %v1997_v43 = vpop.xlane.xlu0 %1996 }
 0xbd7   : > { %v1998_v27 = vsub.f32 %v1990_v23, %v1997_v43 }
 0xbd9   : > { %v1999_v44 = vmul.f32 1.442695, %v1998_v27 }
 0xbdb   : > { %3114 = vpow2.f32 %v1999_v44 }
 0xbdd   : > { %v3113_v45 = vpop.eup %3112 }
 0xbde   : > { %v2109_v46 = vpop.xlane.xlu0 %2108  ;;  %v1889_v47 = vsel %vm1028_vm2, %v3113_v45, 0.0 }
 0xbdf   : > { %v2110_v48 = vsub.f32 %v2102_v31, %v2109_v46  ;;  %1890 = vadd.xlane.f32.xlu0 %v1889_v47 }
 0xbe1   : > { %v2111_v49 = vmul.f32 1.442695, %v2110_v48 }
 0xbe3   : > { %3116 = vpow2.f32 %v2111_v49 }
 0xbe5   : > { %v3115_v50 = vpop.eup %3114 }
 0xbe6   : > { %v2001_v52 = vsel %vm1028_vm2, %v3115_v50, 0.0 }
 0xbe7   : > { %2002 = vadd.xlane.f32.xlu1 %v2001_v52 }
 0xbed   : > { %v3117_v53 = vpop.eup %3116 }
 0xbee   : > { %v2113_v54 = vsel %vm1028_vm2, %v3117_v53, 0.0 }
 0xbef   : > { %2114 = vadd.xlane.f32.xlu0 %v2113_v54 }
 0xbf8   : > { %2009 = vrot.lane.b32.xlu1 %v3959_v51, %s4242_s9  ;;  %s4102_s9 = scalar_lea.sflag [#allocation4], %s885_s5 }
 0xbf9   : > { %v1778_v55 = vpop.xlane.xlu1 %1777 }
 0xbfa   : > { %3118 = vrcp.f32 %v1778_v55  ;;  %v3084_v55 = vld [vmem:[%s4169_s20] sm:$0xff]  }
 0xbfc   : > { %2121 = vrot.lane.b32.xlu1 %v3959_v51, %s4243_s1  ;;  %s3324_s1 = scalar_lea.vmem %s4098_s24, 512 }
 0xbfd   : > { %v1785_v56 = vpop.permute.xlu1 %1784  ;;  %p3325_p4 = scmp.ne.s32.totalorder %s4098_s24, %s3324_s1 }
 0xbfe   : > { %v1790_v57 = vsel %vm1092_vm4, %v1785_v56, 0  ;;  %v3086_v56 = vld [vmem:[%s4171_s22] sm:$0xff]  }
 0xbff   : > { %2874 = vmatpush3.bf16.msra.mxu1 %v1790_v57  ;;  %v3087_v57 = vld [vmem:[%s4171_s22 + $0x8] sm:$0xff]   ;;  %p3326_p8 = pnand %p3325_p4, %p4251_p7 }
 0xc00   : > { %2885 = vmatprep.subr.bf16.mxu1 %v3411_v9 }
 0xc01   : > { %p3327_p11 = pneg %p3326_p8 }
 0xc04   : > { %v3119_v58 = vpop.eup %3118 }
 0xc05   : > { %v1780_v59 = vmul.f32 %v3119_v58, %v3111_v38  ;;  %1897 = vrot.lane.b32.xlu0 %v3959_v51, %s4244_s3  ;;  %s2731_s3 = sshll.u32 %s3582_s7, 9  ;;  %s3429_s7 = smov [#allocation14]  }
 0xc07   : > { %1781 = vst.msk [vmem:[%s4016_s6] sm:$0xff] %vm1028_vm2, %v1780_v59  ;;  %v1782_v60 = vpack.c.bf16 %v1780_v59, %v1780_v59 }
 0xc09   : > { %2876 = vmatmul.mubr.msk.bf16.vlgmr.msra.gmra.mrb[28].mxu1 %vm1028_vm2, %v1782_v60 }
 0xc0a   : > { %2887 = vmatprep.mubr.msk.bf16.mxu1 %vm3412_vm1, %v3411_v9 }
 0xc6c   : > { %v1891_v61 = vpop.xlane.xlu0 %1890 }
 0xc6d   : > { %3120 = vrcp.f32 %v1891_v61 }
 0xc74   : > { %v2003_v62 = vpop.xlane.xlu1 %2002 }
 0xc75   : > { %3122 = vrcp.f32 %v2003_v62  ;;  %v2714_v62 = vld [vmem:[#allocation8] ss:$0 sm:$0xff] }
 0xc77   : > { %v3121_v63 = vpop.eup %3120 }
 0xc78   : > { %v1893_v0 = vmul.f32 %v3121_v63, %v3113_v45  ;;  %v2010_v6 = vpop.permute.xlu1 %2009 }
 0xc79   : > { %v2015_v8 = vsel %vm1092_vm4, %v2010_v6, 0  ;;  %v2716_v6 = vld [vmem:[#allocation11] ss:$0 sm:$0xff] }
 0xc7a   : > { %2702 = vst.msk [vmem:[%s4016_s6 + $0x8] sm:$0xff] %vm1028_vm2, %v1893_v0  ;;  %v1896_v7 = vpack.c.bf16 %v1893_v0, %v1893_v0  ;;  %v2715_v0 = vld [vmem:[#allocation10] ss:$0 sm:$0xff] }
 0xc7c   : > { %v2115_v51 = vpop.xlane.xlu0 %2114  ;;  %v2122_v12 = vpop.permute.xlu1 %2121 }
 0xc7d   : > { %3124 = vrcp.f32 %v2115_v51  ;;  %v2127_v14 = vsel %vm1092_vm4, %v2122_v12, 0 }
 0xc7f   : > { %v3123_v2 = vpop.eup %3122 }
 0xc80   : > { %v2005_v3 = vmul.f32 %v3123_v2, %v3115_v50  ;;  %v1898_v4 = vpop.permute.xlu0 %1897 }
 0xc81   : > { %v1903_v5 = vsel %vm1092_vm4, %v1898_v4, 0  ;;  %v3088_v4 = vld [vmem:[%s4171_s22 + $0x10] sm:$0xff]  }
 0xc82   : > { %2705 = vst.msk [vmem:[%s4016_s6 + $0x10] sm:$0xff] %vm1028_vm2, %v2005_v3  ;;  %2886 = vmatpush3.bf16.msra.mxu1 %v1903_v5  ;;  %v2008_v13 = vpack.c.bf16 %v2005_v3, %v2005_v3  ;;  %v3089_v5 = vld [vmem:[%s4171_s22 + $0x18] sm:$0xff]  }
 0xc83   : > { %2897 = vmatprep.subr.bf16.mxu1 %v3411_v9 }
 0xc85   : > { %2888 = vmatmul.mubr.msk.bf16.vlgmr.msra.gmra.mrb[32].mxu1 %vm1028_vm2, %v1896_v7 }
 0xc86   : > { %2898 = vmatpush3.bf16.msra.mxu1 %v2015_v8  ;;  %2899 = vmatprep.mubr.msk.bf16.mxu1 %vm3412_vm1, %v3411_v9 }
 0xc87   : > { %v3125_v10 = vpop.eup %3124  ;;  %2909 = vmatprep.subr.bf16.mxu1 %v3411_v9 }
 0xc88   : > { %v2117_v11 = vmul.f32 %v3125_v10, %v3117_v53 }
 0xc8a   : > { %2708 = vst.msk [vmem:[%s4016_s6 + $0x18] sm:$0xff] %vm1028_vm2, %v2117_v11  ;;  %v2120_v15 = vpack.c.bf16 %v2117_v11, %v2117_v11  ;;  %s3328_s6 = sshll.u32 %s3429_s7, 4  ;;  %s3329_s6 = int_to_ptr.vmem [resolvable:$false] %s3328_s6 }
 0xc8b   : > { %s3330_s4 = scalar_lea.vmem %s3329_s6, 1024  ;;  %p3331_p13 = scmp.lt.s32.totalorder %s4098_s24, %s3329_s6 }
 0xc8c   : > { %p3332_p1 = scmp.lt.s32.totalorder %s3330_s4, %s3324_s1 }
 0xc8d   : > { %2900 = vmatmul.mubr.msk.bf16.vlgmr.msra.gmra.mrb[36].mxu1 %vm1028_vm2, %v2008_v13 }
 0xc8e   : > { %2910 = vmatpush3.bf16.msra.mxu1 %v2127_v14  ;;  %2911 = vmatprep.mubr.msk.bf16.mxu1 %vm3412_vm1, %v3411_v9  ;;  %p3333_p0 = por %p3332_p1, %p3331_p13 }
 0xc8f   : > { %2923 = vmatprep.subr.bf16.mxu1 %v3411_v9 }
 0xc90   : > { %p3334_p6 = pnand %p3333_p0, %p3327_p11 }
 0xc95   : > { %2912 = vmatmul.mubr.msk.bf16.vlgmr.msra.gmra.mrb[40].mxu1 %vm1028_vm2, %v2120_v15 }
 0xc96   : > { %2927 = vmatprep.mubr.msk.bf16.mxu1 %vm3412_vm1, %v3411_v9  ;;  %2924 = vmatpush3.bf16.msra.mxu1 %v3084_v55 }
 0xc97   : > { %2925 = vmatprep.subr.bf16.mxu1 %v3411_v9 }
 0xcdc   : > { %v1826_v16 = vpop.f32.mrb[28].mxu1 }
 0xcdd   : > { %v2877_v17 = vpop.f32.mrb[29].mxu1 }
 0xcde   : > { %v1829_v18 = vpop.f32.mrb[30].mxu1 }
 0xcdf   : > { %v2878_v19 = vpop.f32.mrb[31].mxu1 }
 0xd58   : > { %v1939_v21 = vpop.f32.mrb[32].mxu1 }
 0xd59   : > { %2170 = vrot.lane.b32.xlu0 %v1939_v21, %s4245_s29  ;;  %v2889_v22 = vpop.f32.mrb[33].mxu1 }
 0xd5a   : > { %v1942_v23 = vpop.f32.mrb[34].mxu1 }
 0xd5b   : > { %v2890_v25 = vpop.f32.mrb[35].mxu1 }
 0xd60   : > { %v2051_v28 = vpop.f32.mrb[36].mxu1 }
 0xd61   : > { %2174 = vrot.lane.b32.xlu1 %v2051_v28, %s4246_s28  ;;  %v2901_v29 = vpop.f32.mrb[37].mxu1  ;;  %s4250_s28 = smov %s4249_s30 }
 0xd62   : > { %v2054_v30 = vpop.f32.mrb[38].mxu1 }
 0xd63   : > { %v2902_v31 = vpop.f32.mrb[39].mxu1 }
 0xd68   : > { %v2163_v32 = vpop.f32.mrb[40].mxu1 }
 0xd69   : > { %2178 = vrot.lane.b32.xlu0 %v2163_v32, %s4247_s0  ;;  %v2913_v33 = vpop.f32.mrb[41].mxu1  ;;  %s4096_s0 = scalar_lea.hbm %s4249_s30, %s2731_s3 }
 0xd6a   : > { %v2166_v1 = vpop.f32.mrb[42].mxu1 }
 0xd6b   : > { %v2914_v34 = vpop.f32.mrb[43].mxu1 }
 0xdcb   : > { %v2171_v35 = vpop.permute.xlu0 %2170 }
 0xdcc   : > { %v2181_v37 = vsel %vm1028_vm2, %v1826_v16, %v2171_v35 }
 0xdd3   : > { %v2175_v36 = vpop.permute.xlu1 %2174 }
 0xdd4   : > { %v2182_v38 = vsel %vm1480_vm5, %v2181_v37, %v2175_v36 }
 0xddb   : > { %v2179_v39 = vpop.permute.xlu0 %2178 }
 0xddc   : > { %v2183_v40 = vsel %vm1482_vm6, %v2182_v38, %v2179_v39 }
 0xddd   : > { %v2184_v41 = vpack.c.bf16 %v2183_v40, %v2183_v40 }
 0xddf   : > { %2920 = vmatmul.mubr.msk.bf16.vlgmr.msra.gmra.mrb[36].mxu0 %vm926_vm0, %v2184_v41 }
 0xde0   : > { %2939 = vmatprep.mubr.msk.bf16.mxu0 %vm3412_vm1, %v3411_v9  ;;  %2932 = vmatpush3.bf16.msra.mxu0 %v3086_v56 }
 0xde1   : > { %2933 = vmatprep.subr.bf16.mxu0 %v3411_v9 }
 0xde4   : > { %2934 = vmatpush3.bf16.msra.mxu0 %v3087_v57 }
 0xde5   : > { %2935 = vmatprep.subr.bf16.mxu0 %v3411_v9 }
 0xde8   : > { %2936 = vmatpush3.bf16.msra.mxu0 %v3088_v4 }
 0xde9   : > { %2937 = vmatprep.subr.bf16.mxu0 %v3411_v9 }
 0xdec   : > { %2938 = vmatpush3.bf16.msra.mxu0 %v3089_v5 }
 0xeb2   : > { %v2245_v43 = vpop.f32.mrb[36].mxu0 }
 0xeb3   : > { %v2246_v27 = vadd.f32 %v2710_v42, %v2245_v43  ;;  %v2921_v44 = vpop.f32.mrb[37].mxu0 }
 0xeb4   : > { %v2248_v45 = vpop.f32.mrb[38].mxu0 }
 0xeb5   : > { %v4062_v46 = vadd.f32 %v2246_v27, %v3921_v24  ;;  %v2922_v47 = vpop.f32.mrb[39].mxu0  ;;  %v3085_v24 = vld [vmem:[%s4169_s20 + $0x8] sm:$0xff]  }
 0xeb6   : > { %2926 = vmatpush3.bf16.msra.mxu1 %v3085_v24 }
 0xeb7   : > { %v2254_v48 = vsel %vm926_vm0, %v4062_v46, 0.0 }
 0xeb8   : > { %2255 = vadd.xlane.f32.xlu1 %v2254_v48 }
 0xf45   : > { %v2256_v49 = vpop.xlane.xlu1 %2255 }
 0xf46   : > { %v2257_v50 = vmul.f32 0.03125, %v2256_v49 }
 0xf48   : > { %v2258_v52 = vsub.f32 %v4062_v46, %v2257_v50 }
 0xf4a   : > { %v2259_v53 = vmul.f32 %v2258_v52, %v2258_v52 }
 0xf4c   : > { %v2260_v54 = vsel %vm926_vm0, %v2259_v53, 0.0 }
 0xf4d   : > { %2261 = vadd.xlane.f32.xlu0 %v2260_v54 }
 0xfda   : > { %v2262_v58 = vpop.xlane.xlu0 %2261 }
 0xfdb   : > { %v2263_v59 = vmul.f32 0.03125, %v2262_v58 }
 0xfdd   : > { %v2264_v60 = vadd.f32 1e-05, %v2263_v59 }
 0xfdf   : > { %3126 = vrsqrt.f32 %v2264_v60 }
 0xfe9   : > { %v3127_v61 = vpop.eup %3126 }
 0xfea   : > { %v2266_v63 = vmul.f32 %v3127_v61, %v2258_v52 }
 0xfec   : > { %v2273_v51 = vmul.f32 %v2714_v62, %v2266_v63 }
 0xfee   : > { %v2280_v2 = vadd.f32 %v2715_v0, %v2273_v51 }
 0xff0   : > { %v2281_v3 = vpack.c.bf16 %v2280_v2, %v2280_v2 }
 0xff2   : > { %2928 = vmatmul.mubr.msk.bf16.vlgmr.msra.gmra.mrb[44].mxu1 %vm926_vm0, %v2281_v3 }
0x10c5   : > { %v2342_v7 = vpop.f32.mrb[44].mxu1 }
0x10c6   : > { %v2343_v8 = vadd.f32 %v2716_v6, %v2342_v7  ;;  %v2929_v10 = vpop.f32.mrb[45].mxu1 }
0x10c7   : > { %v2345_v11 = vpop.f32.mrb[46].mxu1 }
0x10c8   : > { %v2348_v12 = vmax.f32 %v2343_v8, 0.0  ;;  %v2930_v13 = vpop.f32.mrb[47].mxu1 }
0x10ca   : > { %v2349_v14 = vpack.c.bf16 %v2348_v12, %v2348_v12 }
0x10cc   : > { %2940 = vmatmul.mubr.msk.bf16.vlgmr.msra.gmra.mrb[40].mxu0 %vm2382_vm7, %v2349_v14 }
0x10cd   : > { %3337 = shalt.err (!%p3334_p6)
}
0x10ce   : > { %s3338_s5 = scalar_lea.hbm %s4096_s0, 512  ;;  %s3342_s25 = scalar_lea.hbm %s4250_s28, 1024 }
0x10cf   : > { %p3339_p5 = scmp.ne.s32.totalorder %s4096_s0, %s3338_s5  ;;  %p3343_p10 = scmp.lt.u32.totalorder %s4096_s0, %s4250_s28 }
0x10d0   : > { %p3344_p2 = scmp.lt.u32.totalorder %s3342_s25, %s3338_s5  ;;  %p3346_p4 = scmp.lt.u32.totalorder %s3338_s5, %s4096_s0 }
0x10d1   : > { %p3340_p9 = pnand %p3339_p5, %p4251_p7 }
0x10d2   : > { %p3345_p3 = por %p3344_p2, %p3343_p10 }
0x10d3   : > { %p3341_p12 = pneg %p3340_p9 }
0x10d4   : > { %p3347_p8 = por %p3346_p4, %p3345_p3 }
0x10d6   : > { %p3348_p11 = pnand %p3347_p8, %p3341_p12 }
0x10d8   : > { %3351 = shalt.err (!%p3348_p11)
}
0x10d9   : > { %s3430_s4 = smov 128   ;;  %v2725_v15 = vld [vmem:[#allocation13] ss:$0 sm:$0xff]  ;;  %s4252_s5 = sld [smem:[#allocation38_spill]]  ;;  %vm2436_vm8 = vcmask 257024  }
0x10da   : > { %2971 = dma.vmem_to_hbm [thread:$0]  (%p4251_p7), %s4098_s24, 512, %s4096_s0, %s4102_s9, %s3430_s4, %s3430_s4, %s4245_s29  }
0x10df   : > { %s906_s3 = scalar_lea.vmem %s4252_s5, %s3793_s8 }
0x119f   : > { %v2420_v9 = vpop.f32.mrb[40].mxu0 }
0x11a0   : > { %v2426_v16 = vadd.f32 %v2420_v9, %v4062_v46  ;;  %v2941_v17 = vpop.f32.mrb[41].mxu0 }
0x11a1   : > { %v2423_v18 = vpop.f32.mrb[42].mxu0 }
0x11a2   : > { %v2434_v19 = vadd.f32 %v2725_v15, %v2426_v16  ;;  %v2942_v20 = vpop.f32.mrb[43].mxu0 }
0x11a4   : > { %v2435_v21 = vpack.c.bf16 %v2434_v19, %v2434_v19 }
0x11a6   : > { %2437 = vst.msk [vmem:[%s906_s3] sm:$0xf] %vm2436_vm8, %v2435_v21 }
0x11a7 PF: > { %s4253_s26 = sld [smem:[#allocation22_spill]]  ;;  %s4254_s27 = sld [smem:[#allocation20_spill]] }
0x11a8   : > { %s4255_s25 = sld [smem:[#allocation26_spill]] }
0x11ad   : > { %p3013_p7 = scmp.ge.s32.totalorder %s4253_s26, 2  ;;  %s2481_s29 = sand.u32 1, %s4254_s27  }
0x11ae   : > { %p4256_p13 = scmp.ne.s32.totalorder %s4255_s25, 0  ;;  %s2482_s24 = scalar_lea.sflag [#allocation4], %s2481_s29 }
0x11b0   : > { %p2996_p1 = pnand %p3013_p7, %p4256_p13 }
0x11b2   : > { %3385 = dma.done.wait (!%p2996_p1), %s2482_s24, 512  }
0x11b3   : > { %3387 = vsyncadd (!%p2996_p1), %s2482_s24, 4294966784  ;;  %s4257_s30 = sld [smem:[#allocation23_spill]]  ;;  %s4258_s0 = sld [smem:[#allocation21_spill]] }
0x11b4   : > { %s4259_s6 = sld [smem:[#allocation24_spill]]  ;;  %s4260_s29 = smov %s3394_s2 }
0x11b9   : > { %p40_p0 = scmp.ge.s32.totalorder %s4257_s30, 4   ;;  %s4261_s2 = smov %s4258_s0 }
0x11bb   :  { %42 = sbr.rel (!%p40_p0) target bundleno = 21 (0x15), region = 204 }
0x11c2   :  { %2487 = vsyncpa [#allocation3], 1 }
0x11c3   :  { %2489 = vsyncpa [#allocation3 + $0x1], 1 }
0x11c4   :  { %2490 = vsyncpa [#allocation6], 1 }
0x11c5   :  { %2491 = vsyncpa [#allocation9], 1 }
0x11c6   :  { %2492 = vsyncpa [#allocation12], 1 }
0x11c7   :  { %2493 = vsyncpa [#allocation4], 1 }
0x11c8   :  { %2495 = vsyncpa [#allocation4 + $0x1], 1 }

// kernel: transformer_forward.7
= control target key start
LH: loop header
LB: loop body
LE: loop exit
PB: predicated region body
PF: predicated region fallthrough
CT: control target
= control target key end

     0   :  { %s3821_s0 = inlined_call_operand.vmem [shape: bf16[2,8,32], index: 0, kind: input, shape index: {}]   ;;  %s3822_s1 = inlined_call_operand.vmem [shape: bf16[2,8,32], index: 1, kind: input, shape index: {}]   ;;  %s3823_s2 = inlined_call_operand.vmem [shape: f32[2,8,1], index: 2, kind: input, shape index: {}]   ;;  %s3824_s3 = inlined_call_operand.vmem [shape: f32[2,1,8], index: 3, kind: input, shape index: {}]   ;;  %s3825_s4 = inlined_call_operand.vmem [shape: f32[1,32], index: 4, kind: input, shape index: {}]   ;;  %s3826_s5 = inlined_call_operand.vmem [shape: f32[1,32], index: 5, kind: input, shape index: {}]   ;;  %s3827_s6 = inlined_call_operand.vmem [shape: bf16[32,96], index: 6, kind: input, shape index: {}]   ;;  %s3828_s7 = inlined_call_operand.vmem [shape: f32[1,96], index: 7, kind: input, shape index: {}]   ;;  %s3829_s8 = inlined_call_operand.vmem [shape: bf16[32,32], index: 8, kind: input, shape index: {}]   ;;  %s3830_s9 = inlined_call_operand.vmem [shape: f32[1,32], index: 9, kind: input, shape index: {}]   ;;  %s3831_s10 = inlined_call_operand.vmem [shape: f32[1,32], index: 10, kind: input, shape index: {}]   ;;  %s3832_s11 = inlined_call_operand.vmem [shape: f32[1,32], index: 11, kind: input, shape index: {}]   ;;  %s3833_s12 = inlined_call_operand.vmem [shape: bf16[32,32], index: 12, kind: input, shape index: {}]   ;;  %s3834_s13 = inlined_call_operand.vmem [shape: f32[1,32], index: 13, kind: input, shape index: {}]   ;;  %s3835_s14 = inlined_call_operand.vmem [shape: bf16[32,64], index: 14, kind: input, shape index: {}]   ;;  %s3836_s15 = inlined_call_operand.vmem [shape: f32[1,64], index: 15, kind: input, shape index: {}]   ;;  %s3837_s16 = inlined_call_operand.vmem [shape: bf16[32,32], index: 16, kind: input, shape index: {}]   ;;  %s3838_s17 = inlined_call_operand.vmem [shape: f32[1,32], index: 17, kind: input, shape index: {}]   ;;  %s3839_s18 = inlined_call_operand.vmem [shape: f32[1,32], index: 18, kind: input, shape index: {}]   ;;  %s3840_s19 = inlined_call_operand.hbm [shape: f32[1,32], index: 19, kind: input, shape index: {}]   ;;  %s3841_s20 = inlined_call_operand.vmem [shape: bf16[32,64], index: 20, kind: input, shape index: {}]   ;;  %s3842_s21 = inlined_call_operand.hbm [shape: f32[1,64], index: 21, kind: input, shape index: {}]   ;;  %s3843_s22 = inlined_call_operand.vmem [shape: bf16[64,32], index: 22, kind: input, shape index: {}]   ;;  %s3844_s23 = inlined_call_operand.hbm [shape: f32[1,32], index: 23, kind: input, shape index: {}]   ;;  %s3845_s24 = inlined_call_operand.vmem [shape: bf16[2,8,32], index: 24, kind: output, shape index: {0}]   ;;  %s3846_s25 = inlined_call_operand.hbm [shape: f32[2,4,8,8], index: 25, kind: output, shape index: {1}]  }
   0x1   :  { %3869 = sst [smem:[#allocation19_spill]] %s3821_s0 }
   0x2   :  { %3870 = sst [smem:[#allocation20_spill]] %s3822_s1 }
   0x3   :  { %3871 = sst [smem:[#allocation21_spill]] %s3823_s2 }
   0x4   :  { %3872 = sst [smem:[#allocation22_spill]] %s3824_s3 }
   0x5   :  { %3873 = sst [smem:[#allocation23_spill]] %s3825_s4 }
   0x6   :  { %3874 = sst [smem:[#allocation24_spill]] %s3826_s5 }
   0x7   :  { %3875 = sst [smem:[#allocation25_spill]] %s3827_s6 }
   0x8   :  { %3876 = sst [smem:[#allocation26_spill]] %s3828_s7 }
   0x9   :  { %3877 = sst [smem:[#allocation27_spill]] %s3829_s8 }
   0xa   :  { %3878 = sst [smem:[#allocation28_spill]] %s3830_s9 }
   0xb   :  { %3879 = sst [smem:[#allocation29_spill]] %s3831_s10 }
   0xc   :  { %3880 = sst [smem:[#allocation30_spill]] %s3845_s24 }
   0xd   :  { %3881 = sst [smem:[#allocation31_spill]] %s3846_s25 }
   0xe   :  { %31 = vsyncpa [#allocation3], 0 }
   0xf   :  { %32 = vsyncpa [#allocation6], 0 }
  0x10   :  { %33 = vsyncpa [#allocation4], 0 }
  0x11   :  { %35 = vsyncpa [#allocation4 + $0x1], 0  ;;  %s3301_s29 = smov 0   ;;  %s3303_s2 = smov 0  }
  0x12   :  { %s3305_s6 = smov 0   ;;  %s3307_s30 = smov 0  }
  0x13 LB: > { %3882 = sst [smem:[#allocation12_spill]] %s3134_s29  ;;  %s3322_s7 = sadd.s32 4294967295, %s3146_s30   ;;  %s3146_s30 = sphi %s3307_s30, %s3925_s30   ;;  %s3142_s6 = sphi %s3305_s6, %s3927_s6   ;;  %s3138_s2 = sphi %s3303_s2, %s3929_s2   ;;  %s3134_s29 = sphi %s3301_s29, %s3928_s29  }
  0x14   : > { %3883 = sst [smem:[#allocation13_spill]] %s3142_s6  ;;  %s2559_s3 = sadd.s32 4294967294, %s3146_s30  }
  0x15   : > { %3884 = sst [smem:[#allocation14_spill]] %s3146_s30  ;;  %s3326_s26 = sadd.s32 1, %s3146_s30  }
  0x16   : > { %3885 = sst [smem:[#allocation15_spill]] %s3326_s26  ;;  %s598_s1 = sadd.s32 1, %s3142_s6 }
  0x17   : > { %s595_s8 = ssub.s32 %s3146_s30, %s3326_s26  ;;  %p608_p0 = scmp.ne.s32.totalorder %s3142_s6, %s3138_s2 }
  0x18   : > { %p596_p1 = scmp.eq.s32.totalorder %s595_s8, 0  ;;  %p609_p2 = scmp.eq.s32.totalorder %s3322_s7, 1 }
  0x19   : > { %p614_p3 = scmp.ne.s32.totalorder %s3138_s2, %s3134_s29  ;;  %p615_p4 = scmp.eq.s32.totalorder %s2559_s3, 1 }
  0x1a   : > { %s3337_s27 = scalar_select %p596_p1, %s3142_s6, %s598_s1  }
  0x1b   : > { %p3339_p5 = por %p609_p2, %p608_p0  ;;  %p3343_p6 = por %p615_p4, %p614_p3 }
  0x1c   : > { %3886 = sst [smem:[#allocation16_spill]] %s3337_s27  ;;  %p2560_p7 = scmp.ge.s32.totalorder %s3146_s30, 1 }
  0x1d   : > { %s3887_s4 = scalar_select %p3339_p5, 1, 0 }
  0x1e   : > { %s3889_s28 = scalar_select %p3343_p6, 1, 0 }
  0x1f   : > { %3888 = sst [smem:[#allocation17_spill]] %s3887_s4  ;;  %p622_p8 = scmp.lt.s32.totalorder %s3146_s30, 3 }
  0x20   : > { %3890 = sst [smem:[#allocation18_spill]] %s3889_s28  ;;  %p3855_p9 = scmp.eq.s32.totalorder %s3322_s7, 0 }
  0x21   : > { %p3350_p10 = pnand %p2560_p7, %p622_p8  ;;  %s3148_s5 = smov [#allocation5]  }
  0x22   : > { %s694_s0 = sshll.u32 %s3148_s5, 4  ;;  %s3149_s3 = smov [#allocation2]   ;;  %s695_s0 = int_to_ptr.vmem [resolvable:$true] %s694_s0 }
  0x23   : > { %s3891_s9 = scalar_select %p3350_p10, 1, 0 }
  0x24   : > { %p2861_p11 = pneg %p3350_p10  ;;  %s680_s1 = sshll.u32 %s3149_s3, 4  ;;  %s3362_s1 = int_to_ptr.vmem [resolvable:$true] %s680_s1 }
  0x25   : > { %s3150_s27 = smov [#allocation7]   ;;  %s2992_s5 = scalar_lea.hbm %s3842_s21, 16 }
  0x26   : > { %p3358_p12 = pnand %p3855_p9, %p2861_p11  ;;  %s708_s6 = sshll.u32 %s3150_s27, 4  ;;  %s3364_s6 = int_to_ptr.vmem [resolvable:$true] %s708_s6 }
  0x27   : > { %p2993_p13 = scmp.ne.s32.totalorder %s3842_s21, %s2992_s5  ;;  %p2999_p3 = scmp.lt.u32.totalorder %s2992_s5, %s3842_s21 }
  0x28   : > { %p3374_p0 = pneg %p3358_p12 }
  0x2a   : > { %p2995_p1 = pnand %p3374_p0, %p2993_p13 }
  0x2c   : > { %p2996_p2 = pneg %p2995_p1 }
  0x2e   : > { %p3001_p4 = pnand %p2999_p3, %p2996_p2 }
  0x30   : > { %3004 = shalt.err (!%p3001_p4)
}
  0x31   : > { %s3005_s26 = scalar_lea.vmem %s695_s0, 16  ;;  %s3012_s29 = scalar_lea.vmem %s695_s0, 32 }
  0x32   : > { %p3006_p7 = scmp.ne.s32.totalorder %s695_s0, %s3005_s26  ;;  %p3013_p9 = scmp.lt.s32.totalorder %s695_s0, %s695_s0 }
  0x33   : > { %p3014_p6 = scmp.lt.s32.totalorder %s3012_s29, %s3005_s26 }
  0x34   : > { %p3008_p8 = pnand %p3006_p7, %p3374_p0 }
  0x35   : > { %p3015_p5 = por %p3014_p6, %p3013_p9 }
  0x36   : > { %p3009_p11 = pneg %p3008_p8 }
  0x38   : > { %p3016_p10 = pnand %p3015_p5, %p3009_p11 }
  0x3a   : > { %3019 = shalt.err (!%p3016_p10)
}
  0x3b   : > { %2867 = dma.hbm_to_vmem [thread:$0]  (!%p3358_p12), %s3842_s21, 16, %s695_s0, [#allocation6]  }
  0x3c   : > { %s3020_s27 = scalar_lea.hbm %s3840_s19, 16 }
  0x3d   : > { %p3021_p13 = scmp.ne.s32.totalorder %s3840_s19, %s3020_s27  ;;  %p3027_p5 = scmp.lt.u32.totalorder %s3020_s27, %s3840_s19 }
  0x3f   : > { %p3023_p1 = pnand %p3021_p13, %p3374_p0 }
  0x41   : > { %p3024_p6 = pneg %p3023_p1 }
  0x43   : > { %p3029_p9 = pnand %p3027_p5, %p3024_p6 }
  0x45   : > { %3032 = shalt.err (!%p3029_p9)
}
  0x46   : > { %s3033_s0 = scalar_lea.vmem %s3362_s1, 16  ;;  %s3040_s25 = scalar_lea.vmem %s3362_s1, 32 }
  0x47   : > { %p3034_p10 = scmp.ne.s32.totalorder %s3362_s1, %s3033_s0  ;;  %p3041_p4 = scmp.lt.s32.totalorder %s3362_s1, %s3362_s1 }
  0x48   : > { %p3042_p7 = scmp.lt.s32.totalorder %s3040_s25, %s3033_s0 }
  0x49   : > { %p3036_p2 = pnand %p3034_p10, %p3374_p0 }
  0x4a   : > { %p3043_p8 = por %p3042_p7, %p3041_p4 }
  0x4b   : > { %p3037_p3 = pneg %p3036_p2 }
  0x4d   : > { %p3044_p11 = pnand %p3043_p8, %p3037_p3 }
  0x4f   : > { %3047 = shalt.err (!%p3044_p11)
}
  0x50   : > { %2864 = dma.hbm_to_vmem [thread:$0]  (!%p3358_p12), %s3840_s19, 16, %s3362_s1, [#allocation3]  }
  0x51   : > { %s3048_s5 = scalar_lea.hbm %s3844_s23, 16 }
  0x52   : > { %p3049_p13 = scmp.ne.s32.totalorder %s3844_s23, %s3048_s5  ;;  %p3055_p5 = scmp.lt.u32.totalorder %s3048_s5, %s3844_s23 }
  0x54   : > { %p3051_p1 = pnand %p3049_p13, %p3374_p0 }
  0x56   : > { %p3052_p6 = pneg %p3051_p1 }
  0x58   : > { %p3057_p9 = pnand %p3055_p5, %p3052_p6 }
  0x5a   : > { %3060 = shalt.err (!%p3057_p9)
}
  0x5b   : > { %s3061_s1 = scalar_lea.vmem %s3364_s6, 16  ;;  %s3068_s25 = scalar_lea.vmem %s3364_s6, 32 }
  0x5c   : > { %p3062_p10 = scmp.ne.s32.totalorder %s3364_s6, %s3061_s1  ;;  %p3069_p4 = scmp.lt.s32.totalorder %s3364_s6, %s3364_s6 }
  0x5d   : > { %p3070_p7 = scmp.lt.s32.totalorder %s3068_s25, %s3061_s1 }
  0x5e   : > { %p3064_p2 = pnand %p3062_p10, %p3374_p0 }
  0x5f   : > { %p3071_p8 = por %p3070_p7, %p3069_p4 }
  0x60   : > { %p3065_p3 = pneg %p3064_p2 }
  0x62   : > { %p3072_p11 = pnand %p3071_p8, %p3065_p3 }
  0x64   : > { %3075 = shalt.err (!%p3072_p11)
}
  0x65   : > { %2870 = dma.hbm_to_vmem [thread:$0]  (!%p3358_p12), %s3844_s23, 16, %s3364_s6, [#allocation6]  }
  0x66   : > { %p3894_p13 = scmp.ne.s32.totalorder %s3891_s9, 0 }
  0x67   : > { %p3895_p0 = scmp.eq.s32.totalorder (!%p3894_p13), %s3322_s7, 0 }
  0x68   : > { %748 = sbr.rel (%p3894_p13) target bundleno = 4418 (0x1142), region = 116 }
  0x6f   : > { %3121 = dma.done.wait (%p3895_p0), [#allocation3], 16   ;;  %p3896_p1 = pmov %p3895_p0 }
  0x70   : > { %p3897_p6 = pmov %p3895_p0 }
  0x71   : > { %3123 = vsyncadd (%p3896_p1), [#allocation3], 4294967280 }
  0x72   : > { %3125 = dma.done.wait (%p3897_p6), [#allocation6], 32   ;;  %p3898_p5 = pmov %p3895_p0 }
  0x73   : > { %p838_p9 = scmp.lt.s32.totalorder %s3322_s7, 1  ;;  %s3899_s28 = sld [smem:[#allocation19_spill]]  ;;  %vm876_vm0 = vcmask 261120   ;;  %v3151_v9 = vmov 0.0   ;;  %vm3152_vm1 = vmmov 0   ;;  %v3160_v30 = vmov 0  }
  0x74   : > { %3127 = vsyncadd (%p3898_p5), [#allocation6], 4294967264  ;;  %s3900_s26 = sld [smem:[#allocation25_spill]]  ;;  %2691 = vmatprep.subr.bf16.mxu1 %v3151_v9  ;;  %2695 = vmatprep.mubr.msk.bf16.mxu1 %vm3152_vm1, %v3151_v9  ;;  %s3901_s4 = sld [smem:[#allocation23_spill]]  ;;  %vm978_vm2 = vcmask 64512   ;;  %v861_v43 = vlaneseq  ;;  %vm1042_vm4 = vcmask 1043456  }
  0x75   : > { %s3450_s8 = scalar_select %p838_p9, %s3322_s7, 1  ;;  %2705 = vmatprep.subr.bf16.mxu0 %v3151_v9  ;;  %2707 = vmatprep.mubr.msk.bf16.mxu0 %vm3152_vm1, %v3151_v9  ;;  %v3161_v46 = vmov -1e+30   ;;  %vm1430_vm5 = vcmask 130048   ;;  %vm1432_vm6 = vcmask 195584   ;;  %vm2332_vm7 = vcmask 523264  }
  0x76   : > { %s3902_s3 = sld [smem:[#allocation24_spill]]  ;;  %s3903_s5 = sld [smem:[#allocation26_spill]]  ;;  %2937 = vset.pattern.permute.xlu0 %v3160_v30  ;;  %2936 = vset.pattern.permute.xlu1 %v3160_v30  ;;  %v862_v44 = vshrl.u32 %v861_v43, 7  ;;  %v864_v45 = vand.u32 127, %v861_v43 }
  0x77   : > { %s3453_s6 = sshll.u32 %s3450_s8, 2  ;;  %s3868_s27 = smov 96  }
  0x78   : > { %s3154_s29 = smov 120   ;;  %s3861_s0 = smov 88   ;;  %vm865_vm3 = vcmp.le.s32.totalorder %v864_v45, %v862_v44 }
  0x79   : > { %s841_s24 = scalar_lea.vmem %s3899_s28, %s3453_s6  ;;  %s3867_s1 = smov 80   ;;  %v866_v47 = vsel %vm865_vm3, 0.0, %v3161_v46 }
  0x7a   : > { %v858_v0 = vld [vmem:[%s841_s24] sm:$0xf]  ;;  %v2939_v10 = vld [vmem:[%s3900_s26 + $0x8] sm:$0xff]   ;;  %s3157_s25 = smov 112   ;;  %s2572_s30 = sshll.u32 %s3450_s8, 3 }
  0x7b   : > { %v3459_v1 = vunpack.c.l.bf16 %v858_v0  ;;  %v2938_v8 = vld [vmem:[%s3900_s26] sm:$0xff]   ;;  %s3159_s9 = smov 104   ;;  %s3904_s24 = sld [smem:[#allocation21_spill]] }
  0x7c   : > { %2692 = vmatpush3.bf16.msra.mxu1 %v2938_v8  ;;  %v2574_v15 = vld [vmem:[%s3901_s4] ss:$0 sm:$0xff]  ;;  %s3862_s4 = smov 72   ;;  %s3164_s28 = smov 40  }
  0x7d   : > { %v877_v2 = vsel %vm876_vm0, %v3459_v1, 0.0  ;;  %2693 = vmatprep.subr.bf16.mxu1 %v3151_v9  ;;  %v2575_v17 = vld [vmem:[%s3902_s3] ss:$0 sm:$0xff]  ;;  %s3163_s3 = smov 64   ;;  %s3908_s10 = sld [smem:[#allocation29_spill]] }
  0x7e   : > { %878 = vadd.xlane.f32.xlu0 %v877_v2  ;;  %v2576_v21 = vld [vmem:[%s3903_s5] ss:$0 sm:$0xff] }
  0x80   : > { %2694 = vmatpush3.bf16.msra.mxu1 %v2939_v10 }
  0x81   : > { %2699 = vmatprep.subr.bf16.mxu1 %v3151_v9  ;;  %s849_s5 = scalar_lea.vmem %s3904_s24, %s2572_s30  ;;  %s3162_s30 = smov 56  }
  0x82   : > { %v867_v31 = vld [vmem:[%s849_s5] sm:$0xff]  ;;  %s3165_s24 = smov 48   ;;  %s3865_s5 = smov 8  }
 0x10b   : > { %v879_v3 = vpop.xlane.xlu0 %878 }
 0x10c   : > { %v881_v4 = vmul.f32 0.03125, %v879_v3 }
 0x10e   : > { %v882_v5 = vsub.f32 %v3459_v1, %v881_v4 }
 0x110   : > { %v883_v6 = vmul.f32 %v882_v5, %v882_v5 }
 0x112   : > { %v884_v7 = vsel %vm876_vm0, %v883_v6, 0.0 }
 0x113   : > { %885 = vadd.xlane.f32.xlu0 %v884_v7 }
 0x1a0   : > { %v886_v11 = vpop.xlane.xlu0 %885 }
 0x1a1   : > { %v887_v12 = vmul.f32 0.03125, %v886_v11 }
 0x1a3   : > { %v888_v13 = vadd.f32 1e-05, %v887_v12 }
 0x1a5   : > { %2954 = vrsqrt.f32 %v888_v13 }
 0x1af   : > { %v2955_v14 = vpop.eup %2954 }
 0x1b0   : > { %v890_v16 = vmul.f32 %v2955_v14, %v882_v5 }
 0x1b2   : > { %v897_v18 = vmul.f32 %v2574_v15, %v890_v16 }
 0x1b4   : > { %v904_v19 = vadd.f32 %v2575_v17, %v897_v18 }
 0x1b6   : > { %v905_v20 = vpack.c.bf16 %v904_v19, %v904_v19 }
 0x1b8   : > { %2696 = vmatmul.mubr.msk.bf16.vlgmr.msra.gmra.mrb[0].mxu1 %vm876_vm0, %v905_v20 }
 0x1b9   : > { %2701 = vmatprep.mubr.msk.bf16.mxu1 %vm3152_vm1, %v3151_v9 }
 0x28b   : > { %v966_v22 = vpop.f32.mrb[0].mxu1 }
 0x28c   : > { %v967_v23 = vadd.f32 %v2576_v21, %v966_v22  ;;  %v2697_v24 = vpop.f32.mrb[1].mxu1 }
 0x28d   : > { %v969_v25 = vpop.f32.mrb[2].mxu1 }
 0x28e   : > { %v972_v26 = vmul.f32 0.35355338, %v967_v23  ;;  %v3491_v27 = vpack.c.bf16 %v967_v23, %v967_v23  ;;  %v2698_v28 = vpop.f32.mrb[3].mxu1 }
 0x290   : > { %v973_v29 = vpack.c.bf16 %v972_v26, %v972_v26  ;;  %976 = vrot.lane.b32.xlu1 %v3491_v27, %s3868_s27 }
 0x292   : > { %1087 = vrot.lane.b32.xlu0 %v973_v29, %s3154_s29 }
 0x294   : > { %1089 = vrot.lane.b32.xlu1 %v3491_v27, %s3861_s0 }
 0x298   : > { %1199 = vrot.lane.b32.xlu1 %v3491_v27, %s3867_s1  ;;  %s3907_s1 = sld [smem:[#allocation20_spill]] }
 0x29c   : > { %1197 = vrot.lane.b32.xlu1 %v973_v29, %s3157_s25 }
 0x29e   : > { %s845_s27 = scalar_lea.vmem %s3907_s1, %s3453_s6  ;;  %s3911_s1 = smov 80  }
 0x2a0   : > { %1309 = vrot.lane.b32.xlu1 %v3491_v27, %s3862_s4  ;;  %s3864_s4 = smov 16  }
 0x2a4   : > { %1307 = vrot.lane.b32.xlu1 %v973_v29, %s3159_s9 }
 0x2a8   : > { %870 = vperm.xlu1 %2936, %v867_v31  }
 0x302   : > { %v977_v32 = vpop.permute.xlu1 %976 }
 0x303   : > { %v983_v33 = vsel %vm978_vm2, %v977_v32, 0 }
 0x304   : > { %2700 = vmatpush3.bf16.xpose.msra.mxu1 %v983_v33  ;;  %v1088_v37 = vpop.permute.xlu0 %1087 }
 0x305   : > { %2711 = vmatprep.subr.bf16.mxu1 %v3151_v9 }
 0x306   : > { %v1090_v34 = vpop.permute.xlu1 %1089 }
 0x307   : > { %v1095_v35 = vsel %vm978_vm2, %v1090_v34, 0 }
 0x30a   : > { %v1200_v36 = vpop.permute.xlu1 %1199 }
 0x30b   : > { %2702 = vmatmul.mubr.msk.bf16.vlgmr.msra.gmra.mrb[4].mxu1 %vm978_vm2, %v973_v29  ;;  %v1205_v39 = vsel %vm978_vm2, %v1200_v36, 0 }
 0x30c   : > { %2712 = vmatpush3.bf16.xpose.msra.mxu1 %v1095_v35  ;;  %2713 = vmatprep.mubr.msk.bf16.mxu1 %vm3152_vm1, %v3151_v9 }
 0x30d   : > { %2723 = vmatprep.subr.bf16.mxu1 %v3151_v9 }
 0x30e   : > { %v1198_v38 = vpop.permute.xlu1 %1197 }
 0x312   : > { %v1310_v40 = vpop.permute.xlu1 %1309 }
 0x313   : > { %2714 = vmatmul.mubr.msk.bf16.vlgmr.msra.gmra.mrb[8].mxu1 %vm978_vm2, %v1088_v37  ;;  %v1315_v41 = vsel %vm978_vm2, %v1310_v40, 0 }
 0x314   : > { %2724 = vmatpush3.bf16.xpose.msra.mxu1 %v1205_v39  ;;  %2725 = vmatprep.mubr.msk.bf16.mxu1 %vm3152_vm1, %v3151_v9 }
 0x315   : > { %2735 = vmatprep.subr.bf16.mxu1 %v3151_v9 }
 0x316   : > { %v1308_v42 = vpop.permute.xlu1 %1307 }
 0x31b   : > { %2726 = vmatmul.mubr.msk.bf16.vlgmr.msra.gmra.mrb[12].mxu1 %vm978_vm2, %v1198_v38 }
 0x31c   : > { %2736 = vmatpush3.bf16.xpose.msra.mxu1 %v1315_v41  ;;  %2737 = vmatprep.mubr.msk.bf16.mxu1 %vm3152_vm1, %v3151_v9 }
 0x31d   : > { %2747 = vmatprep.subr.bf16.mxu1 %v3151_v9 }
 0x323   : > { %2738 = vmatmul.mubr.msk.bf16.vlgmr.msra.gmra.mrb[16].mxu1 %vm978_vm2, %v1308_v42 }
 0x324   : > { %2751 = vmatprep.mubr.msk.bf16.mxu1 %vm3152_vm1, %v3151_v9 }
 0x327   : > { %v871_v48 = vpop.permute.xlu1 %870 }
 0x328   : > { %v873_v49 = vadd.f32 %v871_v48, %v866_v47 }
 0x3de   : > { %v1019_v50 = vpop.f32.mrb[4].mxu1 }
 0x3df   : > { %v1020_v51 = vadd.f32 %v1019_v50, %v873_v49  ;;  %v2703_v52 = vpop.f32.mrb[5].mxu1 }
 0x3e0   : > { %v1022_v53 = vpop.f32.mrb[6].mxu1 }
 0x3e1   : > { %v2704_v54 = vpop.f32.mrb[7].mxu1  ;;  %v1025_v55 = vsel %vm978_vm2, %v1020_v51, -inf }
 0x3e2   : > { %1026 = vmax.xlane.f32.xlu1 %v1025_v55 }
 0x3e6   : > { %v1131_v56 = vpop.f32.mrb[8].mxu1 }
 0x3e7   : > { %v1132_v57 = vadd.f32 %v1131_v56, %v873_v49  ;;  %v2715_v58 = vpop.f32.mrb[9].mxu1 }
 0x3e8   : > { %v1134_v59 = vpop.f32.mrb[10].mxu1 }
 0x3e9   : > { %v2716_v60 = vpop.f32.mrb[11].mxu1  ;;  %v1137_v61 = vsel %vm978_vm2, %v1132_v57, -inf }
 0x3ea   : > { %1138 = vmax.xlane.f32.xlu0 %v1137_v61 }
 0x3ee   : > { %v1241_v62 = vpop.f32.mrb[12].mxu1 }
 0x3ef   : > { %v1242_v63 = vadd.f32 %v1241_v62, %v873_v49  ;;  %v2727_v0 = vpop.f32.mrb[13].mxu1 }
 0x3f0   : > { %v1244_v2 = vpop.f32.mrb[14].mxu1 }
 0x3f1   : > { %v2728_v3 = vpop.f32.mrb[15].mxu1  ;;  %v1247_v4 = vsel %vm978_vm2, %v1242_v63, -inf }
 0x3f2   : > { %1248 = vmax.xlane.f32.xlu0 %v1247_v4 }
 0x3f6   : > { %v1351_v5 = vpop.f32.mrb[16].mxu1 }
 0x3f7   : > { %v1352_v6 = vadd.f32 %v1351_v5, %v873_v49  ;;  %v2739_v7 = vpop.f32.mrb[17].mxu1 }
 0x3f8   : > { %v1354_v8 = vpop.f32.mrb[18].mxu1 }
 0x3f9   : > { %v2740_v10 = vpop.f32.mrb[19].mxu1  ;;  %v1357_v11 = vsel %vm978_vm2, %v1352_v6, -inf }
 0x3fa   : > { %1358 = vmax.xlane.f32.xlu1 %v1357_v11 }
 0x46f   : > { %v1027_v12 = vpop.xlane.xlu1 %1026 }
 0x470   : > { %v1028_v13 = vsub.f32 %v1020_v51, %v1027_v12 }
 0x472   : > { %v1029_v14 = vmul.f32 1.442695, %v1028_v13 }
 0x474   : > { %2956 = vpow2.f32 %v1029_v14 }
 0x477   : > { %v1139_v15 = vpop.xlane.xlu0 %1138 }
 0x478   : > { %v1140_v16 = vsub.f32 %v1132_v57, %v1139_v15 }
 0x47a   : > { %v1141_v17 = vmul.f32 1.442695, %v1140_v16 }
 0x47c   : > { %2958 = vpow2.f32 %v1141_v17 }
 0x47e   : > { %v2957_v18 = vpop.eup %2956 }
 0x47f   : > { %v1249_v19 = vpop.xlane.xlu0 %1248  ;;  %v1031_v20 = vsel %vm978_vm2, %v2957_v18, 0.0 }
 0x480   : > { %v1250_v21 = vsub.f32 %v1242_v63, %v1249_v19  ;;  %1032 = vadd.xlane.f32.xlu0 %v1031_v20 }
 0x482   : > { %v1251_v22 = vmul.f32 1.442695, %v1250_v21 }
 0x484   : > { %2960 = vpow2.f32 %v1251_v22 }
 0x486   : > { %v2959_v23 = vpop.eup %2958 }
 0x487   : > { %v1143_v24 = vsel %vm978_vm2, %v2959_v23, 0.0  ;;  %v1359_v28 = vpop.xlane.xlu1 %1358 }
 0x488   : > { %1144 = vadd.xlane.f32.xlu1 %v1143_v24  ;;  %v1360_v29 = vsub.f32 %v1352_v6, %v1359_v28 }
 0x48a   : > { %v1361_v30 = vmul.f32 1.442695, %v1360_v29 }
 0x48c   : > { %2962 = vpow2.f32 %v1361_v30 }
 0x48e   : > { %v2961_v25 = vpop.eup %2960 }
 0x48f   : > { %v1253_v26 = vsel %vm978_vm2, %v2961_v25, 0.0 }
 0x490   : > { %1254 = vadd.xlane.f32.xlu0 %v1253_v26 }
 0x496   : > { %v2963_v31 = vpop.eup %2962 }
 0x497   : > { %v1363_v32 = vsel %vm978_vm2, %v2963_v31, 0.0 }
 0x499   : > { %1149 = vrot.lane.b32.xlu1 %v3491_v27, %s3162_s30  ;;  %s3863_s30 = smov 24  }
 0x4a6   : > { %1037 = vrot.lane.b32.xlu0 %v3491_v27, %s3163_s3  ;;  %s3913_s3 = smov 88  }
 0x4aa   : > { %1369 = vrot.lane.b32.xlu0 %v3491_v27, %s3164_s28  ;;  %s3905_s28 = sld [smem:[#allocation27_spill]] }
 0x4b0   : > { %v2940_v0 = vld [vmem:[%s3905_s28] sm:$0xff]   ;;  %v2941_v2 = vld [vmem:[%s3905_s28 + $0x8] sm:$0xff]  }
 0x4b1   : > { %2748 = vmatpush3.bf16.msra.mxu1 %v2940_v0 }
 0x4b2   : > { %2749 = vmatprep.subr.bf16.mxu1 %v3151_v9 }
 0x4b5   : > { %2750 = vmatpush3.bf16.msra.mxu1 %v2941_v2 }
 0x4b6   : > { %2763 = vmatprep.subr.bf16.mxu1 %v3151_v9 }
 0x4bd   : > { %1364 = vadd.xlane.f32.xlu1 %v1363_v32 }
 0x4ce   : > { %1259 = vrot.lane.b32.xlu1 %v3491_v27, %s3165_s24  ;;  %s3906_s24 = sld [smem:[#allocation28_spill]] }
 0x4d4   : > { %v2588_v19 = vld [vmem:[%s3906_s24] ss:$0 sm:$0xff]  ;;  %s3918_s24 = sld [smem:[#allocation31_spill]] }
 0x50d   : > { %v1033_v33 = vpop.xlane.xlu0 %1032 }
 0x50e   : > { %2964 = vrcp.f32 %v1033_v33  ;;  %v2942_v33 = vld [vmem:[%s3835_s14] sm:$0xff]  }
 0x515   : > { %v1145_v34 = vpop.xlane.xlu1 %1144 }
 0x516   : > { %2966 = vrcp.f32 %v1145_v34  ;;  %v860_v34 = vld [vmem:[%s845_s27] sm:$0xf] }
 0x518   : > { %v2965_v35 = vpop.eup %2964 }
 0x519   : > { %v1035_v37 = vmul.f32 %v2965_v35, %v2957_v18  ;;  %v1150_v40 = vpop.permute.xlu1 %1149  ;;  %v2944_v35 = vld [vmem:[%s3833_s12] sm:$0xff]  }
 0x51a   : > { %v1155_v43 = vsel %vm1042_vm4, %v1150_v40, 0 }
 0x51b   : > { %v1036_v41 = vpack.c.bf16 %v1035_v37, %v1035_v37 }
 0x51d   : > { %v1255_v36 = vpop.xlane.xlu0 %1254 }
 0x51e   : > { %2968 = vrcp.f32 %v1255_v36  ;;  %v2945_v36 = vld [vmem:[%s3833_s12 + $0x8] sm:$0xff]  }
 0x520   : > { %v2967_v42 = vpop.eup %2966 }
 0x521   : > { %v1038_v38 = vpop.permute.xlu0 %1037  ;;  %v1147_v27 = vmul.f32 %v2967_v42, %v2959_v23 }
 0x522   : > { %v1044_v39 = vsel %vm1042_vm4, %v1038_v38, 0 }
 0x523   : > { %2706 = vmatpush3.bf16.msra.mxu0 %v1044_v39  ;;  %v1148_v44 = vpack.c.bf16 %v1147_v27, %v1147_v27 }
 0x524   : > { %2717 = vmatprep.subr.bf16.mxu0 %v3151_v9 }
 0x525   : > { %v1370_v50 = vpop.permute.xlu0 %1369 }
 0x526   : > { %2708 = vmatmul.mubr.msk.bf16.vlgmr.msra.gmra.mrb[0].mxu0 %vm978_vm2, %v1036_v41  ;;  %v1375_v52 = vsel %vm1042_vm4, %v1370_v50, 0  ;;  %v2592_v41 = vld [vmem:[%s3908_s10] ss:$0 sm:$0xff] }
 0x527   : > { %2718 = vmatpush3.bf16.msra.mxu0 %v1155_v43  ;;  %2719 = vmatprep.mubr.msk.bf16.mxu0 %vm3152_vm1, %v3151_v9  ;;  %v2593_v43 = vld [vmem:[%s3832_s11] ss:$0 sm:$0xff] }
 0x528   : > { %2729 = vmatprep.subr.bf16.mxu0 %v3151_v9  ;;  %v2969_v45 = vpop.eup %2968 }
 0x529   : > { %v1257_v47 = vmul.f32 %v2969_v45, %v2961_v25 }
 0x52b   : > { %v1258_v51 = vpack.c.bf16 %v1257_v47, %v1257_v47 }
 0x52e   : > { %2720 = vmatmul.mubr.msk.bf16.vlgmr.msra.gmra.mrb[4].mxu0 %vm978_vm2, %v1148_v44 }
 0x52f   : > { %2731 = vmatprep.mubr.msk.bf16.mxu0 %vm3152_vm1, %v3151_v9 }
 0x54a   : > { %v1365_v46 = vpop.xlane.xlu1 %1364 }
 0x54b   : > { %2970 = vrcp.f32 %v1365_v46  ;;  %v2598_v46 = vld [vmem:[%s3836_s15] ss:$0 sm:$0xff] }
 0x54e   : > { %v1260_v48 = vpop.permute.xlu1 %1259 }
 0x54f   : > { %v1265_v49 = vsel %vm1042_vm4, %v1260_v48, 0 }
 0x550   : > { %2730 = vmatpush3.bf16.msra.mxu0 %v1265_v49 }
 0x551   : > { %2741 = vmatprep.subr.bf16.mxu0 %v3151_v9 }
 0x553   : > { %2732 = vmatmul.mubr.msk.bf16.vlgmr.msra.gmra.mrb[8].mxu0 %vm978_vm2, %v1258_v51 }
 0x554   : > { %2742 = vmatpush3.bf16.msra.mxu0 %v1375_v52  ;;  %2743 = vmatprep.mubr.msk.bf16.mxu0 %vm3152_vm1, %v3151_v9 }
 0x555   : > { %v2971_v53 = vpop.eup %2970  ;;  %2755 = vmatprep.subr.bf16.mxu0 %v3151_v9 }
 0x556   : > { %v1367_v54 = vmul.f32 %v2971_v53, %v2963_v31 }
 0x558   : > { %v1368_v55 = vpack.c.bf16 %v1367_v54, %v1367_v54  ;;  %v2594_v54 = vld [vmem:[%s3834_s13] ss:$0 sm:$0xff] }
 0x55b   : > { %2744 = vmatmul.mubr.msk.bf16.vlgmr.msra.gmra.mrb[12].mxu0 %vm978_vm2, %v1368_v55 }
 0x55c   : > { %2759 = vmatprep.mubr.msk.bf16.mxu0 %vm3152_vm1, %v3151_v9  ;;  %2756 = vmatpush3.bf16.msra.mxu0 %v2944_v35 }
 0x55d   : > { %2757 = vmatprep.subr.bf16.mxu0 %v3151_v9 }
 0x560   : > { %2758 = vmatpush3.bf16.msra.mxu0 %v2945_v36 }
 0x561   : > { %2771 = vmatprep.subr.bf16.mxu0 %v3151_v9 }
 0x5f9   : > { %v1080_v56 = vpop.f32.mrb[0].mxu0 }
 0x5fa   : > { %v2709_v57 = vpop.f32.mrb[1].mxu0 }
 0x5fb   : > { %v1083_v58 = vpop.f32.mrb[2].mxu0 }
 0x5fc   : > { %v2710_v59 = vpop.f32.mrb[3].mxu0 }
 0x601   : > { %v1191_v60 = vpop.f32.mrb[4].mxu0 }
 0x602   : > { %1418 = vrot.lane.b32.xlu1 %v1191_v60, %s3865_s5  ;;  %v2721_v61 = vpop.f32.mrb[5].mxu0  ;;  %s835_s5 = sand.u32 1, %s3138_s2  }
 0x603   : > { %v1194_v62 = vpop.f32.mrb[6].mxu0  ;;  %s2569_s0 = sshll.u32 %s835_s5, 5 }
 0x604   : > { %v2722_v63 = vpop.f32.mrb[7].mxu0 }
 0x626   : > { %v1301_v3 = vpop.f32.mrb[8].mxu0 }
 0x627   : > { %1422 = vrot.lane.b32.xlu0 %v1301_v3, %s3864_s4  ;;  %v2733_v4 = vpop.f32.mrb[9].mxu0  ;;  %s3912_s4 = smov 72  }
 0x628   : > { %v1304_v5 = vpop.f32.mrb[10].mxu0 }
 0x629   : > { %v2734_v6 = vpop.f32.mrb[11].mxu0 }
 0x62e   : > { %v1411_v7 = vpop.f32.mrb[12].mxu0 }
 0x62f   : > { %1426 = vrot.lane.b32.xlu1 %v1411_v7, %s3863_s30  ;;  %v2745_v8 = vpop.f32.mrb[13].mxu0  ;;  %s3682_s30 = scalar_lea.vmem [#allocation8], %s2569_s0 }
 0x630   : > { %v1414_v10 = vpop.f32.mrb[14].mxu0 }
 0x631   : > { %v2746_v11 = vpop.f32.mrb[15].mxu0 }
 0x674   : > { %v1419_v12 = vpop.permute.xlu1 %1418 }
 0x675   : > { %v1429_v14 = vsel %vm978_vm2, %v1080_v56, %v1419_v12 }
 0x699   : > { %v1423_v13 = vpop.permute.xlu0 %1422 }
 0x69a   : > { %v1431_v15 = vsel %vm1430_vm5, %v1429_v14, %v1423_v13 }
 0x6a1   : > { %v1427_v16 = vpop.permute.xlu1 %1426 }
 0x6a2   : > { %v1433_v17 = vsel %vm1432_vm6, %v1431_v15, %v1427_v16 }
 0x6a3   : > { %v1434_v18 = vpack.c.bf16 %v1433_v17, %v1433_v17 }
 0x6a5   : > { %2752 = vmatmul.mubr.msk.bf16.vlgmr.msra.gmra.mrb[20].mxu1 %vm876_vm0, %v1434_v18 }
 0x6a6   : > { %2767 = vmatprep.mubr.msk.bf16.mxu1 %vm3152_vm1, %v3151_v9  ;;  %2764 = vmatpush3.bf16.msra.mxu1 %v2942_v33 }
 0x6a7   : > { %2765 = vmatprep.subr.bf16.mxu1 %v3151_v9 }
 0x778   : > { %v1495_v20 = vpop.f32.mrb[20].mxu1 }
 0x779   : > { %v1496_v21 = vadd.f32 %v2588_v19, %v1495_v20  ;;  %v2753_v22 = vpop.f32.mrb[21].mxu1 }
 0x77a   : > { %v1498_v23 = vpop.f32.mrb[22].mxu1 }
 0x77b   : > { %v3581_v24 = vadd.f32 %v1496_v21, %v3459_v1  ;;  %v2754_v25 = vpop.f32.mrb[23].mxu1  ;;  %v2943_v1 = vld [vmem:[%s3835_s14 + $0x8] sm:$0xff]  }
 0x77c   : > { %2766 = vmatpush3.bf16.msra.mxu1 %v2943_v1 }
 0x77d   : > { %v1505_v26 = vsel %vm876_vm0, %v3581_v24, 0.0  ;;  %2777 = vmatprep.subr.bf16.mxu1 %v3151_v9 }
 0x77e   : > { %1506 = vadd.xlane.f32.xlu0 %v1505_v26 }
 0x77f   : > { %2768 = vmatmul.mubr.msk.bf16.vlgmr.msra.gmra.mrb[24].mxu1 %vm876_vm0, %v860_v34 }
 0x780   : > { %2779 = vmatprep.mubr.msk.bf16.mxu1 %vm3152_vm1, %v3151_v9 }
 0x80b   : > { %v1507_v28 = vpop.xlane.xlu0 %1506 }
 0x80c   : > { %v1508_v29 = vmul.f32 0.03125, %v1507_v28 }
 0x80e   : > { %v1509_v30 = vsub.f32 %v3581_v24, %v1508_v29 }
 0x810   : > { %v1510_v31 = vmul.f32 %v1509_v30, %v1509_v30 }
 0x812   : > { %v1511_v32 = vsel %vm876_vm0, %v1510_v31, 0.0 }
 0x813   : > { %1512 = vadd.xlane.f32.xlu1 %v1511_v32 }
 0x852   : > { %v1659_v47 = vpop.f32.mrb[24].mxu1 }
 0x853   : > { %v1660_v48 = vadd.f32 %v2598_v46, %v1659_v47  ;;  %v2769_v49 = vpop.f32.mrb[25].mxu1 }
 0x854   : > { %v1662_v50 = vpop.f32.mrb[26].mxu1 }
 0x855   : > { %v3622_v51 = vpack.c.bf16 %v1660_v48, %v1660_v48  ;;  %v2770_v52 = vpop.f32.mrb[27].mxu1 }
 0x857   : > { %1785 = vrot.lane.b32.xlu0 %v3622_v51, %s3154_s29  ;;  %v1678_v53 = vsel %vm978_vm2, %v3622_v51, 0 }
 0x85b   : > { %1897 = vrot.lane.b32.xlu0 %v3622_v51, %s3157_s25 }
 0x85f   : > { %2009 = vrot.lane.b32.xlu0 %v3622_v51, %s3159_s9 }
 0x8a0   : > { %v1513_v37 = vpop.xlane.xlu1 %1512 }
 0x8a1   : > { %v1514_v38 = vmul.f32 0.03125, %v1513_v37 }
 0x8a3   : > { %v1515_v39 = vadd.f32 1e-05, %v1514_v38 }
 0x8a5   : > { %2972 = vrsqrt.f32 %v1515_v39 }
 0x8af   : > { %v2973_v40 = vpop.eup %2972 }
 0x8b0   : > { %v1517_v42 = vmul.f32 %v2973_v40, %v1509_v30 }
 0x8b2   : > { %v1524_v27 = vmul.f32 %v2592_v41, %v1517_v42 }
 0x8b4   : > { %v1531_v44 = vadd.f32 %v2593_v43, %v1524_v27 }
 0x8b6   : > { %v1532_v45 = vpack.c.bf16 %v1531_v44, %v1531_v44 }
 0x8b8   : > { %2760 = vmatmul.mubr.msk.bf16.vlgmr.msra.gmra.mrb[16].mxu0 %vm876_vm0, %v1532_v45 }
 0x8b9   : > { %2773 = vmatprep.mubr.msk.bf16.mxu0 %vm3152_vm1, %v3151_v9  ;;  %2772 = vmatpush3.bf16.xpose.msra.mxu0 %v1678_v53 }
 0x8ba   : > { %2783 = vmatprep.subr.bf16.mxu0 %v3151_v9 }
 0x8c9   : > { %v1786_v61 = vpop.permute.xlu0 %1785 }
 0x8ca   : > { %v1791_v63 = vsel %vm978_vm2, %v1786_v61, 0 }
 0x8cd   : > { %v1898_v0 = vpop.permute.xlu0 %1897 }
 0x8ce   : > { %v1903_v3 = vsel %vm978_vm2, %v1898_v0, 0 }
 0x8d1   : > { %v2010_v4 = vpop.permute.xlu0 %2009 }
 0x8d2   : > { %v2015_v6 = vsel %vm978_vm2, %v2010_v4, 0 }
 0x98b   : > { %v1593_v55 = vpop.f32.mrb[16].mxu0 }
 0x98c   : > { %v1594_v56 = vadd.f32 %v2594_v54, %v1593_v55  ;;  %v2761_v57 = vpop.f32.mrb[17].mxu0 }
 0x98d   : > { %v1596_v58 = vpop.f32.mrb[18].mxu0 }
 0x98e   : > { %v1665_v59 = vmul.f32 0.35355338, %v1594_v56  ;;  %v2762_v60 = vpop.f32.mrb[19].mxu0 }
 0x990   : > { %v1666_v62 = vpack.c.bf16 %v1665_v59, %v1665_v59 }
 0x992   : > { %1783 = vrot.lane.b32.xlu1 %v1666_v62, %s3154_s29  ;;  %2774 = vmatmul.mubr.msk.bf16.vlgmr.msra.gmra.mrb[20].mxu0 %vm978_vm2, %v1666_v62 }
 0x993   : > { %2784 = vmatpush3.bf16.xpose.msra.mxu0 %v1791_v63  ;;  %2785 = vmatprep.mubr.msk.bf16.mxu0 %vm3152_vm1, %v3151_v9 }
 0x994   : > { %2795 = vmatprep.subr.bf16.mxu0 %v3151_v9 }
 0x996   : > { %1895 = vrot.lane.b32.xlu1 %v1666_v62, %s3157_s25  ;;  %s3914_s25 = smov 8  }
 0x99a   : > { %2007 = vrot.lane.b32.xlu1 %v1666_v62, %s3159_s9  ;;  %s3909_s9 = sld [smem:[#allocation22_spill]] }
 0x9a0   : > { %s852_s27 = scalar_lea.vmem %s3909_s9, %s3450_s8  ;;  %s3910_s8 = smov 96  }
 0x9a1   : > { %v2602_v8 = vld [vmem:[%s852_s27] ss:$0 sm:$0xff]  ;;  %s3774_s9 = scalar_lea.sflag [#allocation4], %s835_s5 }
 0xa04   : > { %v1784_v2 = vpop.permute.xlu1 %1783 }
 0xa05   : > { %2786 = vmatmul.mubr.msk.bf16.vlgmr.msra.gmra.mrb[24].mxu0 %vm978_vm2, %v1784_v2 }
 0xa06   : > { %2796 = vmatpush3.bf16.xpose.msra.mxu0 %v1903_v3  ;;  %2797 = vmatprep.mubr.msk.bf16.mxu0 %vm3152_vm1, %v3151_v9 }
 0xa07   : > { %2807 = vmatprep.subr.bf16.mxu0 %v3151_v9 }
 0xa08   : > { %v1896_v5 = vpop.permute.xlu1 %1895 }
 0xa0c   : > { %v2008_v7 = vpop.permute.xlu1 %2007 }
 0xa0d   : > { %2798 = vmatmul.mubr.msk.bf16.vlgmr.msra.gmra.mrb[28].mxu0 %vm978_vm2, %v1896_v5 }
 0xa0e   : > { %2808 = vmatpush3.bf16.xpose.msra.mxu0 %v2015_v6  ;;  %2809 = vmatprep.mubr.msk.bf16.mxu0 %vm3152_vm1, %v3151_v9 }
 0xa0f   : > { %2819 = vmatprep.subr.bf16.mxu0 %v3151_v9 }
 0xa15   : > { %2810 = vmatmul.mubr.msk.bf16.vlgmr.msra.gmra.mrb[32].mxu0 %vm978_vm2, %v2008_v7 }
 0xa16   : > { %2823 = vmatprep.mubr.msk.bf16.mxu0 %vm3152_vm1, %v3151_v9 }
 0xa65   : > { %v1714_v10 = vpop.f32.mrb[20].mxu0 }
 0xa66   : > { %v1715_v11 = vadd.f32 %v2602_v8, %v1714_v10  ;;  %v2775_v12 = vpop.f32.mrb[21].mxu0 }
 0xa67   : > { %v1717_v13 = vpop.f32.mrb[22].mxu0 }
 0xa68   : > { %v2776_v14 = vpop.f32.mrb[23].mxu0  ;;  %v1720_v15 = vsel %vm978_vm2, %v1715_v11, -inf }
 0xa69   : > { %1721 = vmax.xlane.f32.xlu0 %v1720_v15 }
 0xad8   : > { %v1827_v16 = vpop.f32.mrb[24].mxu0 }
 0xad9   : > { %v1828_v17 = vadd.f32 %v2602_v8, %v1827_v16  ;;  %v2787_v18 = vpop.f32.mrb[25].mxu0 }
 0xada   : > { %v1830_v19 = vpop.f32.mrb[26].mxu0 }
 0xadb   : > { %v2788_v20 = vpop.f32.mrb[27].mxu0  ;;  %v1833_v21 = vsel %vm978_vm2, %v1828_v17, -inf }
 0xadc   : > { %1834 = vmax.xlane.f32.xlu1 %v1833_v21  ;;  %v2946_v20 = vld [vmem:[%s3837_s16] sm:$0xff]  }
 0xadd   : > { %2820 = vmatpush3.bf16.msra.mxu0 %v2946_v20 }
 0xade   : > { %2821 = vmatprep.subr.bf16.mxu0 %v3151_v9 }
 0xae0   : > { %v1939_v22 = vpop.f32.mrb[28].mxu0 }
 0xae1   : > { %v1940_v23 = vadd.f32 %v2602_v8, %v1939_v22  ;;  %v2799_v25 = vpop.f32.mrb[29].mxu0 }
 0xae2   : > { %v1942_v26 = vpop.f32.mrb[30].mxu0 }
 0xae3   : > { %v2800_v28 = vpop.f32.mrb[31].mxu0  ;;  %v1945_v29 = vsel %vm978_vm2, %v1940_v23, -inf  ;;  %v2947_v26 = vld [vmem:[%s3837_s16 + $0x8] sm:$0xff]  }
 0xae4   : > { %1946 = vmax.xlane.f32.xlu0 %v1945_v29  ;;  %2822 = vmatpush3.bf16.msra.mxu0 %v2947_v26 }
 0xae5   : > { %2835 = vmatprep.subr.bf16.mxu0 %v3151_v9 }
 0xae8   : > { %v2051_v30 = vpop.f32.mrb[32].mxu0 }
 0xae9   : > { %v2052_v31 = vadd.f32 %v2602_v8, %v2051_v30  ;;  %v2811_v32 = vpop.f32.mrb[33].mxu0 }
 0xaea   : > { %v2054_v33 = vpop.f32.mrb[34].mxu0 }
 0xaeb   : > { %v2812_v1 = vpop.f32.mrb[35].mxu0  ;;  %v2057_v34 = vsel %vm978_vm2, %v2052_v31, -inf }
 0xaec   : > { %2058 = vmax.xlane.f32.xlu0 %v2057_v34 }
 0xaf6   : > { %v1722_v35 = vpop.xlane.xlu0 %1721 }
 0xaf7   : > { %v1723_v36 = vsub.f32 %v1715_v11, %v1722_v35 }
 0xaf9   : > { %v1724_v37 = vmul.f32 1.442695, %v1723_v36 }
 0xafb   : > { %2974 = vpow2.f32 %v1724_v37 }
 0xb05   : > { %v2975_v38 = vpop.eup %2974 }
 0xb06   : > { %v1726_v39 = vsel %vm978_vm2, %v2975_v38, 0.0 }
 0xb07   : > { %1727 = vadd.xlane.f32.xlu1 %v1726_v39 }
 0xb18   : > { %1734 = vrot.lane.b32.xlu1 %v3622_v51, %s3910_s8  ;;  %s3915_s8 = smov 16  }
 0xb69   : > { %v1835_v40 = vpop.xlane.xlu1 %1834 }
 0xb6a   : > { %v1836_v41 = vsub.f32 %v1828_v17, %v1835_v40 }
 0xb6c   : > { %v1837_v42 = vmul.f32 1.442695, %v1836_v41 }
 0xb6e   : > { %2976 = vpow2.f32 %v1837_v42  ;;  %v2614_v42 = vld [vmem:[%s3838_s17] ss:$0 sm:$0xff] }
 0xb71   : > { %v1947_v43 = vpop.xlane.xlu0 %1946 }
 0xb72   : > { %v1948_v27 = vsub.f32 %v1940_v23, %v1947_v43 }
 0xb74   : > { %v1949_v44 = vmul.f32 1.442695, %v1948_v27 }
 0xb76   : > { %2978 = vpow2.f32 %v1949_v44 }
 0xb78   : > { %v2977_v45 = vpop.eup %2976 }
 0xb79   : > { %v2059_v46 = vpop.xlane.xlu0 %2058  ;;  %v1839_v47 = vsel %vm978_vm2, %v2977_v45, 0.0 }
 0xb7a   : > { %v2060_v48 = vsub.f32 %v2052_v31, %v2059_v46  ;;  %1840 = vadd.xlane.f32.xlu0 %v1839_v47 }
 0xb7c   : > { %v2061_v49 = vmul.f32 1.442695, %v2060_v48 }
 0xb7e   : > { %2980 = vpow2.f32 %v2061_v49 }
 0xb80   : > { %v2979_v50 = vpop.eup %2978 }
 0xb81   : > { %v1951_v52 = vsel %vm978_vm2, %v2979_v50, 0.0 }
 0xb82   : > { %1952 = vadd.xlane.f32.xlu1 %v1951_v52 }
 0xb88   : > { %v2981_v53 = vpop.eup %2980 }
 0xb89   : > { %v2063_v54 = vsel %vm978_vm2, %v2981_v53, 0.0 }
 0xb8a   : > { %2064 = vadd.xlane.f32.xlu0 %v2063_v54 }
 0xb93   : > { %1959 = vrot.lane.b32.xlu1 %v3622_v51, %s3911_s1  ;;  %s3916_s1 = smov 24  }
 0xb94   : > { %v1728_v55 = vpop.xlane.xlu1 %1727 }
 0xb95   : > { %2982 = vrcp.f32 %v1728_v55  ;;  %v2948_v55 = vld [vmem:[%s3841_s20] sm:$0xff]  }
 0xb97   : > { %2071 = vrot.lane.b32.xlu1 %v3622_v51, %s3912_s4  ;;  %s2409_s4 = sshll.u32 %s3682_s30, 4  ;;  %s3770_s4 = int_to_ptr.vmem [resolvable:$true] %s2409_s4 }
 0xb98   : > { %v1735_v56 = vpop.permute.xlu1 %1734  ;;  %s3076_s27 = scalar_lea.vmem %s3770_s4, 512 }
 0xb99   : > { %v1740_v57 = vsel %vm1042_vm4, %v1735_v56, 0  ;;  %v2950_v56 = vld [vmem:[%s3843_s22] sm:$0xff]   ;;  %p3077_p12 = scmp.ne.s32.totalorder %s3770_s4, %s3076_s27 }
 0xb9a   : > { %2778 = vmatpush3.bf16.msra.mxu1 %v1740_v57  ;;  %v2951_v57 = vld [vmem:[%s3843_s22 + $0x8] sm:$0xff]  }
 0xb9b   : > { %2789 = vmatprep.subr.bf16.mxu1 %v3151_v9 }
 0xb9f   : > { %v2983_v58 = vpop.eup %2982 }
 0xba0   : > { %v1730_v59 = vmul.f32 %v2983_v58, %v2975_v38  ;;  %1847 = vrot.lane.b32.xlu0 %v3622_v51, %s3913_s3 }
 0xba2   : > { %1731 = vst.msk [vmem:[%s3682_s30] sm:$0xff] %vm978_vm2, %v1730_v59  ;;  %v1732_v60 = vpack.c.bf16 %v1730_v59, %v1730_v59 }
 0xba4   : > { %2780 = vmatmul.mubr.msk.bf16.vlgmr.msra.gmra.mrb[28].mxu1 %vm978_vm2, %v1732_v60 }
 0xba5   : > { %2791 = vmatprep.mubr.msk.bf16.mxu1 %vm3152_vm1, %v3151_v9 }
 0xc07   : > { %v1841_v61 = vpop.xlane.xlu0 %1840 }
 0xc08   : > { %2984 = vrcp.f32 %v1841_v61 }
 0xc0f   : > { %v1953_v62 = vpop.xlane.xlu1 %1952 }
 0xc10   : > { %2986 = vrcp.f32 %v1953_v62  ;;  %v2618_v62 = vld [vmem:[%s3839_s18] ss:$0 sm:$0xff] }
 0xc12   : > { %v2985_v63 = vpop.eup %2984 }
 0xc13   : > { %v1843_v0 = vmul.f32 %v2985_v63, %v2977_v45  ;;  %v1960_v6 = vpop.permute.xlu1 %1959 }
 0xc14   : > { %v1965_v8 = vsel %vm1042_vm4, %v1960_v6, 0  ;;  %v2620_v6 = vld [vmem:[#allocation5] ss:$0 sm:$0xff] }
 0xc15   : > { %2606 = vst.msk [vmem:[%s3682_s30 + $0x8] sm:$0xff] %vm978_vm2, %v1843_v0  ;;  %v1846_v7 = vpack.c.bf16 %v1843_v0, %v1843_v0  ;;  %v2619_v0 = vld [vmem:[#allocation2] ss:$0 sm:$0xff] }
 0xc17   : > { %v2065_v51 = vpop.xlane.xlu0 %2064  ;;  %v2072_v12 = vpop.permute.xlu1 %2071 }
 0xc18   : > { %2988 = vrcp.f32 %v2065_v51  ;;  %v2077_v14 = vsel %vm1042_vm4, %v2072_v12, 0 }
 0xc1a   : > { %v2987_v2 = vpop.eup %2986 }
 0xc1b   : > { %v1955_v3 = vmul.f32 %v2987_v2, %v2979_v50  ;;  %v1848_v4 = vpop.permute.xlu0 %1847 }
 0xc1c   : > { %v1853_v5 = vsel %vm1042_vm4, %v1848_v4, 0  ;;  %v2952_v4 = vld [vmem:[%s3843_s22 + $0x10] sm:$0xff]  }
 0xc1d   : > { %2609 = vst.msk [vmem:[%s3682_s30 + $0x10] sm:$0xff] %vm978_vm2, %v1955_v3  ;;  %2790 = vmatpush3.bf16.msra.mxu1 %v1853_v5  ;;  %v1958_v13 = vpack.c.bf16 %v1955_v3, %v1955_v3  ;;  %v2953_v5 = vld [vmem:[%s3843_s22 + $0x18] sm:$0xff]  }
 0xc1e   : > { %2801 = vmatprep.subr.bf16.mxu1 %v3151_v9 }
 0xc20   : > { %2792 = vmatmul.mubr.msk.bf16.vlgmr.msra.gmra.mrb[32].mxu1 %vm978_vm2, %v1846_v7 }
 0xc21   : > { %2802 = vmatpush3.bf16.msra.mxu1 %v1965_v8  ;;  %2803 = vmatprep.mubr.msk.bf16.mxu1 %vm3152_vm1, %v3151_v9 }
 0xc22   : > { %v2989_v10 = vpop.eup %2988  ;;  %2813 = vmatprep.subr.bf16.mxu1 %v3151_v9 }
 0xc23   : > { %v2067_v11 = vmul.f32 %v2989_v10, %v2981_v53 }
 0xc25   : > { %2612 = vst.msk [vmem:[%s3682_s30 + $0x18] sm:$0xff] %vm978_vm2, %v2067_v11  ;;  %v2070_v15 = vpack.c.bf16 %v2067_v11, %v2067_v11 }
 0xc28   : > { %2804 = vmatmul.mubr.msk.bf16.vlgmr.msra.gmra.mrb[36].mxu1 %vm978_vm2, %v1958_v13 }
 0xc29   : > { %2814 = vmatpush3.bf16.msra.mxu1 %v2077_v14  ;;  %2815 = vmatprep.mubr.msk.bf16.mxu1 %vm3152_vm1, %v3151_v9 }
 0xc2a   : > { %2827 = vmatprep.subr.bf16.mxu1 %v3151_v9 }
 0xc30   : > { %2816 = vmatmul.mubr.msk.bf16.vlgmr.msra.gmra.mrb[40].mxu1 %vm978_vm2, %v2070_v15 }
 0xc31   : > { %2831 = vmatprep.mubr.msk.bf16.mxu1 %vm3152_vm1, %v3151_v9  ;;  %2828 = vmatpush3.bf16.msra.mxu1 %v2948_v55 }
 0xc32   : > { %2829 = vmatprep.subr.bf16.mxu1 %v3151_v9 }
 0xc77   : > { %v1776_v16 = vpop.f32.mrb[28].mxu1 }
 0xc78   : > { %v2781_v17 = vpop.f32.mrb[29].mxu1 }
 0xc79   : > { %v1779_v18 = vpop.f32.mrb[30].mxu1 }
 0xc7a   : > { %v2782_v19 = vpop.f32.mrb[31].mxu1 }
 0xcf3   : > { %v1889_v21 = vpop.f32.mrb[32].mxu1 }
 0xcf4   : > { %2120 = vrot.lane.b32.xlu0 %v1889_v21, %s3914_s25  ;;  %v2793_v22 = vpop.f32.mrb[33].mxu1 }
 0xcf5   : > { %v1892_v23 = vpop.f32.mrb[34].mxu1 }
 0xcf6   : > { %v2794_v25 = vpop.f32.mrb[35].mxu1 }
 0xcfb   : > { %v2001_v28 = vpop.f32.mrb[36].mxu1 }
 0xcfc   : > { %2124 = vrot.lane.b32.xlu1 %v2001_v28, %s3915_s8  ;;  %v2805_v29 = vpop.f32.mrb[37].mxu1  ;;  %s3917_s8 = sld [smem:[#allocation17_spill]] }
 0xcfd   : > { %v2004_v30 = vpop.f32.mrb[38].mxu1 }
 0xcfe   : > { %v2806_v31 = vpop.f32.mrb[39].mxu1 }
 0xd02   : > { %p3919_p10 = scmp.ne.s32.totalorder %s3917_s8, 0 }
 0xd03   : > { %v2113_v32 = vpop.f32.mrb[40].mxu1 }
 0xd04   : > { %2128 = vrot.lane.b32.xlu0 %v2113_v32, %s3916_s1  ;;  %v2817_v33 = vpop.f32.mrb[41].mxu1  ;;  %s2635_s1 = sshll.u32 %s3322_s7, 9  ;;  %p3078_p2 = pnand %p3077_p12, %p3919_p10 }
 0xd05   : > { %v2116_v1 = vpop.f32.mrb[42].mxu1  ;;  %s3768_s29 = scalar_lea.hbm %s3918_s24, %s2635_s1  ;;  %s3169_s7 = smov [#allocation8]  }
 0xd06   : > { %v2818_v34 = vpop.f32.mrb[43].mxu1  ;;  %p3079_p3 = pneg %p3078_p2  ;;  %s3080_s30 = sshll.u32 %s3169_s7, 4  ;;  %s3081_s30 = int_to_ptr.vmem [resolvable:$false] %s3080_s30 }
 0xd07   : > { %s3082_s10 = scalar_lea.vmem %s3081_s30, 1024  ;;  %p3083_p4 = scmp.lt.s32.totalorder %s3770_s4, %s3081_s30 }
 0xd08   : > { %p3084_p7 = scmp.lt.s32.totalorder %s3082_s10, %s3076_s27 }
 0xd0a   : > { %p3085_p8 = por %p3084_p7, %p3083_p4 }
 0xd0c   : > { %p3086_p11 = pnand %p3085_p8, %p3079_p3 }
 0xd66   : > { %v2121_v35 = vpop.permute.xlu0 %2120 }
 0xd67   : > { %v2131_v37 = vsel %vm978_vm2, %v1776_v16, %v2121_v35 }
 0xd6e   : > { %v2125_v36 = vpop.permute.xlu1 %2124 }
 0xd6f   : > { %v2132_v38 = vsel %vm1430_vm5, %v2131_v37, %v2125_v36 }
 0xd76   : > { %v2129_v39 = vpop.permute.xlu0 %2128 }
 0xd77   : > { %v2133_v40 = vsel %vm1432_vm6, %v2132_v38, %v2129_v39 }
 0xd78   : > { %v2134_v41 = vpack.c.bf16 %v2133_v40, %v2133_v40 }
 0xd7a   : > { %2824 = vmatmul.mubr.msk.bf16.vlgmr.msra.gmra.mrb[36].mxu0 %vm876_vm0, %v2134_v41 }
 0xd7b   : > { %2843 = vmatprep.mubr.msk.bf16.mxu0 %vm3152_vm1, %v3151_v9  ;;  %2836 = vmatpush3.bf16.msra.mxu0 %v2950_v56 }
 0xd7c   : > { %2837 = vmatprep.subr.bf16.mxu0 %v3151_v9 }
 0xd7f   : > { %2838 = vmatpush3.bf16.msra.mxu0 %v2951_v57 }
 0xd80   : > { %2839 = vmatprep.subr.bf16.mxu0 %v3151_v9 }
 0xd83   : > { %2840 = vmatpush3.bf16.msra.mxu0 %v2952_v4 }
 0xd84   : > { %2841 = vmatprep.subr.bf16.mxu0 %v3151_v9 }
 0xd87   : > { %2842 = vmatpush3.bf16.msra.mxu0 %v2953_v5 }
 0xe4d   : > { %v2195_v43 = vpop.f32.mrb[36].mxu0 }
 0xe4e   : > { %v2196_v27 = vadd.f32 %v2614_v42, %v2195_v43  ;;  %v2825_v44 = vpop.f32.mrb[37].mxu0 }
 0xe4f   : > { %v2198_v45 = vpop.f32.mrb[38].mxu0 }
 0xe50   : > { %v3731_v46 = vadd.f32 %v2196_v27, %v3581_v24  ;;  %v2826_v47 = vpop.f32.mrb[39].mxu0  ;;  %v2949_v24 = vld [vmem:[%s3841_s20 + $0x8] sm:$0xff]  }
 0xe51   : > { %2830 = vmatpush3.bf16.msra.mxu1 %v2949_v24 }
 0xe52   : > { %v2204_v48 = vsel %vm876_vm0, %v3731_v46, 0.0 }
 0xe53   : > { %2205 = vadd.xlane.f32.xlu1 %v2204_v48 }
 0xee0   : > { %v2206_v49 = vpop.xlane.xlu1 %2205 }
 0xee1   : > { %v2207_v50 = vmul.f32 0.03125, %v2206_v49 }
 0xee3   : > { %v2208_v52 = vsub.f32 %v3731_v46, %v2207_v50 }
 0xee5   : > { %v2209_v53 = vmul.f32 %v2208_v52, %v2208_v52 }
 0xee7   : > { %v2210_v54 = vsel %vm876_vm0, %v2209_v53, 0.0 }
 0xee8   : > { %2211 = vadd.xlane.f32.xlu0 %v2210_v54 }
 0xf75   : > { %v2212_v58 = vpop.xlane.xlu0 %2211 }
 0xf76   : > { %v2213_v59 = vmul.f32 0.03125, %v2212_v58 }
 0xf78   : > { %v2214_v60 = vadd.f32 1e-05, %v2213_v59 }
 0xf7a   : > { %2990 = vrsqrt.f32 %v2214_v60 }
 0xf84   : > { %v2991_v61 = vpop.eup %2990 }
 0xf85   : > { %v2216_v63 = vmul.f32 %v2991_v61, %v2208_v52 }
 0xf87   : > { %v2223_v51 = vmul.f32 %v2618_v62, %v2216_v63 }
 0xf89   : > { %v2230_v2 = vadd.f32 %v2619_v0, %v2223_v51 }
 0xf8b   : > { %v2231_v3 = vpack.c.bf16 %v2230_v2, %v2230_v2 }
 0xf8d   : > { %2832 = vmatmul.mubr.msk.bf16.vlgmr.msra.gmra.mrb[44].mxu1 %vm876_vm0, %v2231_v3 }
0x1060   : > { %v2292_v7 = vpop.f32.mrb[44].mxu1 }
0x1061   : > { %v2293_v8 = vadd.f32 %v2620_v6, %v2292_v7  ;;  %v2833_v10 = vpop.f32.mrb[45].mxu1 }
0x1062   : > { %v2295_v11 = vpop.f32.mrb[46].mxu1 }
0x1063   : > { %v2298_v12 = vmax.f32 %v2293_v8, 0.0  ;;  %v2834_v13 = vpop.f32.mrb[47].mxu1 }
0x1065   : > { %v2299_v14 = vpack.c.bf16 %v2298_v12, %v2298_v12 }
0x1067   : > { %2844 = vmatmul.mubr.msk.bf16.vlgmr.msra.gmra.mrb[40].mxu0 %vm2332_vm7, %v2299_v14 }
0x1068   : > { %3089 = shalt.err (!%p3086_p11)
}
0x1069   : > { %s3090_s5 = scalar_lea.hbm %s3768_s29, 512  ;;  %s3094_s3 = scalar_lea.hbm %s3918_s24, 1024 }
0x106a   : > { %p3091_p13 = scmp.ne.s32.totalorder %s3768_s29, %s3090_s5  ;;  %p3095_p6 = scmp.lt.u32.totalorder %s3768_s29, %s3918_s24 }
0x106b   : > { %p3096_p5 = scmp.lt.u32.totalorder %s3094_s3, %s3090_s5  ;;  %p3098_p12 = scmp.lt.u32.totalorder %s3090_s5, %s3768_s29 }
0x106c   : > { %p3092_p0 = pnand %p3091_p13, %p3919_p10 }
0x106d   : > { %p3097_p9 = por %p3096_p5, %p3095_p6 }
0x106e   : > { %p3093_p1 = pneg %p3092_p0 }
0x106f   : > { %p3099_p2 = por %p3098_p12, %p3097_p9 }
0x1071   : > { %p3100_p3 = pnand %p3099_p2, %p3093_p1 }
0x1073   : > { %3103 = shalt.err (!%p3100_p3)
}
0x1074   : > { %s3170_s10 = smov 128   ;;  %v2629_v15 = vld [vmem:[#allocation7] ss:$0 sm:$0xff]  ;;  %s3920_s1 = sld [smem:[#allocation30_spill]]  ;;  %vm2386_vm8 = vcmask 257024  }
0x1075   : > { %2859 = dma.vmem_to_hbm [thread:$0]  (%p3919_p10), %s3770_s4, 512, %s3768_s29, %s3774_s9, %s3170_s10, %s3170_s10, %s3914_s25  }
0x107a   : > { %s856_s0 = scalar_lea.vmem %s3920_s1, %s3453_s6 }
0x113a   : > { %v2370_v9 = vpop.f32.mrb[40].mxu0 }
0x113b   : > { %v2376_v16 = vadd.f32 %v2370_v9, %v3731_v46  ;;  %v2845_v17 = vpop.f32.mrb[41].mxu0 }
0x113c   : > { %v2373_v18 = vpop.f32.mrb[42].mxu0 }
0x113d   : > { %v2384_v19 = vadd.f32 %v2629_v15, %v2376_v16  ;;  %v2846_v20 = vpop.f32.mrb[43].mxu0 }
0x113f   : > { %v2385_v21 = vpack.c.bf16 %v2384_v19, %v2384_v19 }
0x1141   : > { %2387 = vst.msk [vmem:[%s856_s0] sm:$0xf] %vm2386_vm8, %v2385_v21 }
0x1142 PF: > { %s3921_s8 = sld [smem:[#allocation14_spill]]  ;;  %s3922_s3 = sld [smem:[#allocation12_spill]] }
0x1143   : > { %s3923_s7 = sld [smem:[#allocation18_spill]] }
0x1148   : > { %p2881_p10 = scmp.ge.s32.totalorder %s3921_s8, 2  ;;  %s2431_s25 = sand.u32 1, %s3922_s3  }
0x1149   : > { %p3924_p4 = scmp.ne.s32.totalorder %s3923_s7, 0  ;;  %s2432_s4 = scalar_lea.sflag [#allocation4], %s2431_s25 }
0x114b   : > { %p2872_p7 = pnand %p2881_p10, %p3924_p4 }
0x114d   : > { %3129 = dma.done.wait (!%p2872_p7), %s2432_s4, 512  }
0x114e   : > { %3131 = vsyncadd (!%p2872_p7), %s2432_s4, 4294966784  ;;  %s3925_s30 = sld [smem:[#allocation15_spill]]  ;;  %s3926_s9 = sld [smem:[#allocation13_spill]] }
0x114f   : > { %s3927_s6 = sld [smem:[#allocation16_spill]]  ;;  %s3928_s29 = smov %s3138_s2 }
0x1154   : > { %p38_p8 = scmp.ge.s32.totalorder %s3925_s30, 4   ;;  %s3929_s2 = smov %s3926_s9 }
0x1156   :  { %40 = sbr.rel (!%p38_p8) target bundleno = 19 (0x13), region = 188 }
0x115d   :  { %2437 = vsyncpa [#allocation3], 1 }
0x115e   :  { %2439 = vsyncpa [#allocation3 + $0x1], 1 }
0x115f   :  { %2440 = vsyncpa [#allocation6], 1 }
0x1160   :  { %2441 = vsyncpa [#allocation4], 1 }
0x1161   :  { %2443 = vsyncpa [#allocation4 + $0x1], 1 }

</bundles_post_ra>
